<compile_context>
chip_gen: v7x
topology: tpu7x:2x2x1
jax: 0.10.0
libtpu: 0.0.40
codegen_flags: <defaults>
</compile_context>

<pallas_src>
import functools

import jax
import jax.numpy as jnp
import numpy as np
from jax import lax
from jax.experimental import pallas as pl
from jax.experimental.pallas import tpu as pltpu

MATMUL_DTYPE = jnp.float32       # set to jnp.bfloat16 for the v6e/v7x MXU fast path
_VMEM_LIMIT = 32 * 1024 * 1024   # within the scoped default on v5e/v6e/v7x
_VMEM_BUDGET = 40 * 1024 * 1024  # guard for the fully fused (single kernel) path


# -----------------------------------------------------------------------------
# Host-side weight packing (tiny einsums, done once per call under jit).
# -----------------------------------------------------------------------------
def _pack_conv_banded(w_hwio, W):
    """Stride-1 'same' Conv2d weights -> per-kh banded matrices.

    m[kh, wi*Cin+ci, wo*Cout+co] = w[kh, wi-wo+pad, ci, co] (0 outside the band),
    so conv(x) = sum_kh rowshift(x, kh-pad) @ m[kh]; the horizontal zero padding
    is baked into the band, only the vertical shift/mask stays in-kernel.
    """
    K = w_hwio.shape[0]
    Cin, Cout = w_hwio.shape[2], w_hwio.shape[3]
    pad = K // 2
    wi = jnp.arange(W)[:, None, None]
    wo = jnp.arange(W)[None, :, None]
    kw = jnp.arange(K)[None, None, :]
    band = (wi == wo + kw - pad).astype(jnp.float32)           # (W, W, K)
    m = jnp.einsum('abk,hkio->haibo', band, w_hwio)            # (K, W, Cin, W, Cout)
    return m.reshape(K, W * Cin, W * Cout)


def _pack_up_mat(w_iokk, W):
    """ConvTranspose2d(k=2,s=2) weights -> (W*Cin, W*4*Cout), lanes (w,di,dj,co)."""
    wt = jnp.transpose(w_iokk, (0, 2, 3, 1))                   # (Cin, 2, 2, Cout)
    m = jnp.einsum('ab,idec->aibdec', jnp.eye(W, dtype=jnp.float32), wt)
    return m.reshape(W * w_iokk.shape[0], W * 4 * w_iokk.shape[1])


# -----------------------------------------------------------------------------
# The fused DecoderBlock kernel (runs once; everything resident in VMEM).
# -----------------------------------------------------------------------------
def _decoder_block_kernel(x_ref,
                          m1, b1, g1, t1,
                          m2, b2, g2, t2,
                          m3, b3, g3, t3,
                          m4, b4, g4, t4,
                          m5, b5, g5, t5,
                          mu, bu, gu, tu,
                          out_ref, *, N, H, W, C, Ks, eps, mm_dtype):
    NH = N * H
    hq = lax.broadcasted_iota(jnp.int32, (NH, 1), 0) % H       # image-row per row

    def mxu(a, b):   # conv / upsample matmuls (optionally bf16 inputs, f32 acc)
        return jnp.dot(a.astype(mm_dtype), b.astype(mm_dtype),
                       preferred_element_type=jnp.float32)

    def f32dot(a, b):  # BN statistic reduce/broadcast matmuls stay f32
        return jnp.dot(a, b, preferred_element_type=jnp.float32)

    def group_mats(WC):
        # G  (WC, C): sums all lanes belonging to the same channel (lane % C).
        # Gt (C, WC): broadcasts a per-channel row back across all lanes.
        lane = lax.broadcasted_iota(jnp.int32, (WC, C), 0)
        chan = lax.broadcasted_iota(jnp.int32, (WC, C), 1)
        G = (lane % C == chan).astype(jnp.float32)
        lane_t = lax.broadcasted_iota(jnp.int32, (C, WC), 1)
        chan_t = lax.broadcasted_iota(jnp.int32, (C, WC), 0)
        Gt = (lane_t % C == chan_t).astype(jnp.float32)
        return G, Gt

    def bn_act(y, gamma_ref, beta_ref, G, Gt, count, act):
        # Training-mode BatchNorm (biased batch variance), centered two-pass.
        col_sum = jnp.sum(y, axis=0, keepdims=True)            # (1, WC)
        mean_c = f32dot(col_sum, G) * (1.0 / count)            # (1, C)
        cent = y - f32dot(mean_c, Gt)                          # (NH, WC)
        var_c = f32dot(jnp.sum(cent * cent, axis=0, keepdims=True), G) * (1.0 / count)
        scale_c = gamma_ref[...] * lax.rsqrt(var_c + eps)      # (1, C)
        z = cent * f32dot(scale_c, Gt) + f32dot(beta_ref[...], Gt)
        if act == "relu":
            return jnp.maximum(z, 0.0)
        return 1.0 / (1.0 + jnp.exp(-z))                       # sigmoid (EUP)

    def conv_same(a, m_ref, brow_ref, K):
        # a: (NH, W*Cin); m_ref: (K, W*Cin, W*Cout) banded (w-padding baked in).
        pad = K // 2
        WCin = a.shape[1]
        zrow = jnp.zeros((pad, WCin), jnp.float32)
        ap = jnp.concatenate([zrow, a, zrow], axis=0)          # (NH + 2*pad, WCin)
        acc = jnp.zeros((NH, m_ref.shape[-1]), jnp.float32)
        for kh in range(K):
            dy = kh - pad
            valid = jnp.logical_and(hq + dy >= 0, hq + dy < H)  # (NH,1) row mask
            a_sh = jnp.where(valid, ap[kh:kh + NH, :], 0.0)
            acc = acc + mxu(a_sh, m_ref[kh])
        return acc + brow_ref[...]

    G_c, Gt_c = group_mats(W * C)
    G_u, Gt_u = group_mats(W * 4 * C)
    cnt_c = float(NH * W)
    cnt_u = float(NH * W * 4)

    a = x_ref[...]
    layers = ((m1, b1, g1, t1), (m2, b2, g2, t2), (m3, b3, g3, t3),
              (m4, b4, g4, t4), (m5, b5, g5, t5))
    for (m_ref, brow, gamma, beta), K in zip(layers, Ks):
        y = conv_same(a, m_ref, brow, K)                       # Conv2d + bias
        a = bn_act(y, gamma, beta, G_c, Gt_c, cnt_c, "relu")   # fused BN + ReLU

    up = mxu(a, mu[...]) + bu[...]                 # ConvT 2x2/s2; lanes (w,di,dj,c)
    out_ref[...] = bn_act(up, gu, tu, G_u, Gt_u, cnt_u, "sigmoid")


# -----------------------------------------------------------------------------
# DecoderBlock forward (apply_bn_last=True, last_activation=Sigmoid)
# -----------------------------------------------------------------------------
def decoder_block_forward(x_nchw, p, eps=1e-5):
    N, Cin, H, W = x_nchw.shape
    C = p["conv1_w"].shape[3]
    NH = N * H

    # NCHW -> lane-dense (N*H, W*Cin): rows=(n,h), lanes=(w,ci).
    x2 = jnp.transpose(x_nchw, (0, 2, 3, 1)).reshape(NH, W * Cin)

    Ks = tuple(int(p[f"conv{i}_w"].shape[0]) for i in range(1, 6))
    inputs = [x2]
    for i in range(1, 6):
        inputs += [
            _pack_conv_banded(p[f"conv{i}_w"], W),
            jnp.tile(p[f"conv{i}_b"], W).reshape(1, W * C),
            p[f"bn{i}_g"].reshape(1, C),
            p[f"bn{i}_b"].reshape(1, C),
        ]
    inputs += [
        _pack_up_mat(p["up_w"], W),
        jnp.tile(p["up_b"], W * 4).reshape(1, W * 4 * C),
        p["bn_up_g"].reshape(1, C),
        p["bn_up_b"].reshape(1, C),
    ]

    # Fully fused path: packed weights + activations must fit in VMEM.
    # TODO(synk): add a row-tiled multi-pallas_call fallback for large shapes
    # whose activations / packed banded weights exceed the VMEM budget.
    tot = sum(int(np.prod(a.shape)) * 4 for a in inputs) + NH * W * 4 * C * 4
    assert tot < _VMEM_BUDGET, f"fused DecoderBlock path needs {tot} bytes of VMEM"

    kernel = functools.partial(_decoder_block_kernel, N=N, H=H, W=W, C=C,
                               Ks=Ks, eps=eps, mm_dtype=MATMUL_DTYPE)
    vmem = pl.BlockSpec(memory_space=pltpu.MemorySpace.VMEM)
    out2d = pl.pallas_call(
        kernel,
        out_shape=jax.ShapeDtypeStruct((NH, W * 4 * C), jnp.float32),
        in_specs=[vmem] * len(inputs),
        out_specs=vmem,
        compiler_params=pltpu.CompilerParams(vmem_limit_bytes=_VMEM_LIMIT),
    )(*inputs)

    # Only remaining full-tensor XLA op: 2x2 pixel interleave to NCHW (64 KiB).
    out = out2d.reshape(N, H, W, 2, 2, C).transpose(0, 5, 1, 3, 2, 4)
    return out.reshape(N, C, 2 * H, 2 * W)


# -----------------------------------------------------------------------------
# Pure-JAX reference (for the correctness check).
# -----------------------------------------------------------------------------
def reference_forward(x_nchw, p, last_act="sigmoid", eps=1e-5):
    x = jnp.transpose(x_nchw, (0, 2, 3, 1))

    def bn_act(x, g, b, act):
        mean = jnp.mean(x, axis=(0, 1, 2), keepdims=True)
        var = jnp.mean((x - mean) ** 2, axis=(0, 1, 2), keepdims=True)
        y = (x - mean) / jnp.sqrt(var + eps) * g + b
        if act == "relu":
            y = jnp.maximum(y, 0.0)
        elif act == "sigmoid":
            y = jax.nn.sigmoid(y)
        return y

    for i in range(1, 6):
        x = lax.conv_general_dilated(
            x, p[f"conv{i}_w"], (1, 1), "SAME",
            dimension_numbers=("NHWC", "HWIO", "NHWC"),
            precision=lax.Precision.HIGHEST) + p[f"conv{i}_b"]
        x = bn_act(x, p[f"bn{i}_g"], p[f"bn{i}_b"], "relu")

    Wt = p["up_w"]  # (Cin, Cout, 2, 2)
    N, H, Wd, _ = x.shape
    Cout = Wt.shape[1]
    up = jnp.einsum("nijc,cokl->nikjlo", x, Wt, precision=lax.Precision.HIGHEST)
    up = up.reshape(N, 2 * H, 2 * Wd, Cout) + p["up_b"]
    x = bn_act(up, p["bn_up_g"], p["bn_up_b"], last_act)
    return jnp.transpose(x, (0, 3, 1, 2))


# -----------------------------------------------------------------------------
# Deterministic parameter init (synthetic; shapes follow the nn.Module).
# -----------------------------------------------------------------------------
def init_params(key, cin, cout):
    p = {}
    specs = [(5, cin, cout), (5, cout, cout), (3, cout, cout),
             (3, cout, cout), (3, cout, cout)]
    for i, (k, ci, co) in enumerate(specs, start=1):
        key, k1, k2, k3, k4 = jax.random.split(key, 5)
        p[f"conv{i}_w"] = 0.1 * jax.random.normal(k1, (k, k, ci, co), jnp.float32)  # HWIO
        p[f"conv{i}_b"] = 0.1 * jax.random.normal(k2, (co,), jnp.float32)
        p[f"bn{i}_g"] = 1.0 + 0.05 * jax.random.normal(k3, (co,), jnp.float32)
        p[f"bn{i}_b"] = 0.05 * jax.random.normal(k4, (co,), jnp.float32)
    key, k1, k2, k3, k4 = jax.random.split(key, 5)
    p["up_w"] = 0.1 * jax.random.normal(k1, (cout, cout, 2, 2), jnp.float32)  # (Cin,Cout,KH,KW)
    p["up_b"] = 0.1 * jax.random.normal(k2, (cout,), jnp.float32)
    p["bn_up_g"] = 1.0 + 0.05 * jax.random.normal(k3, (cout,), jnp.float32)
    p["bn_up_b"] = 0.05 * jax.random.normal(k4, (cout,), jnp.float32)
    return p


if __name__ == "__main__":
    key = jax.random.PRNGKey(0)
    k_x, k_p = jax.random.split(key)

    N, CIN, COUT, H, W = 2, 4, 8, 16, 16
    x = jax.random.normal(k_x, (N, CIN, H, W), jnp.float32)   # NCHW, like PyTorch
    params = init_params(k_p, CIN, COUT)

    fwd = jax.jit(decoder_block_forward)
    out = jax.block_until_ready(fwd(x, params))
    assert out.shape == (N, COUT, 2 * H, 2 * W), out.shape

    ref = jax.block_until_ready(reference_forward(x, params))
    np.testing.assert_allclose(np.asarray(out), np.asarray(ref), rtol=2e-3, atol=2e-3)

    print("KERNEL_OK")
</pallas_src>

<mosaic_0001>
module attributes {stable_mosaic.version = 11 : i64} {
  func.func @_decoder_block_kernel(%arg0: memref<32x64xf32, #tpu.memory_space<vmem>>, %arg1: memref<5x64x128xf32, #tpu.memory_space<vmem>>, %arg2: memref<1x128xf32, #tpu.memory_space<vmem>>, %arg3: memref<1x8xf32, #tpu.memory_space<vmem>>, %arg4: memref<1x8xf32, #tpu.memory_space<vmem>>, %arg5: memref<5x128x128xf32, #tpu.memory_space<vmem>>, %arg6: memref<1x128xf32, #tpu.memory_space<vmem>>, %arg7: memref<1x8xf32, #tpu.memory_space<vmem>>, %arg8: memref<1x8xf32, #tpu.memory_space<vmem>>, %arg9: memref<3x128x128xf32, #tpu.memory_space<vmem>>, %arg10: memref<1x128xf32, #tpu.memory_space<vmem>>, %arg11: memref<1x8xf32, #tpu.memory_space<vmem>>, %arg12: memref<1x8xf32, #tpu.memory_space<vmem>>, %arg13: memref<3x128x128xf32, #tpu.memory_space<vmem>>, %arg14: memref<1x128xf32, #tpu.memory_space<vmem>>, %arg15: memref<1x8xf32, #tpu.memory_space<vmem>>, %arg16: memref<1x8xf32, #tpu.memory_space<vmem>>, %arg17: memref<3x128x128xf32, #tpu.memory_space<vmem>>, %arg18: memref<1x128xf32, #tpu.memory_space<vmem>>, %arg19: memref<1x8xf32, #tpu.memory_space<vmem>>, %arg20: memref<1x8xf32, #tpu.memory_space<vmem>>, %arg21: memref<128x512xf32, #tpu.memory_space<vmem>>, %arg22: memref<1x512xf32, #tpu.memory_space<vmem>>, %arg23: memref<1x8xf32, #tpu.memory_space<vmem>>, %arg24: memref<1x8xf32, #tpu.memory_space<vmem>>, %arg25: memref<32x512xf32, #tpu.memory_space<vmem>>) attributes {dimension_semantics = [], scalar_prefetch = 0 : i64, scratch_operands = 0 : i64, tpu.core_type = #tpu.core_type<tc>} {
    %0 = tpu.iota {dimensions = array<i32: 0>} : vector<32x1xi32>
    %c16_i32 = arith.constant 16 : i32
    %c0_i32 = arith.constant 0 : i32
    %1 = arith.cmpi eq, %c16_i32, %c0_i32 : i32
    %c1_i32 = arith.constant 1 : i32
    %2 = arith.select %1, %c1_i32, %c16_i32 : i32
    %3 = vector.broadcast %2 : i32 to vector<32x1xi32>
    %4 = arith.remsi %0, %3 : vector<32x1xi32>
    %c0_i32_0 = arith.constant 0 : i32
    %5 = vector.broadcast %c0_i32_0 : i32 to vector<32x1xi32>
    %6 = arith.cmpi ne, %4, %5 : vector<32x1xi32>
    %c0_i32_1 = arith.constant 0 : i32
    %7 = vector.broadcast %c0_i32_1 : i32 to vector<32x1xi32>
    %8 = arith.cmpi slt, %4, %7 : vector<32x1xi32>
    %c0_i32_2 = arith.constant 0 : i32
    %9 = arith.cmpi slt, %2, %c0_i32_2 : i32
    %10 = vector.broadcast %9 : i1 to vector<32x1xi1>
    %11 = vector.broadcast %10 : vector<32x1xi1> to vector<32x1xi1>
    %12 = arith.xori %8, %11 : vector<32x1xi1>
    %13 = arith.andi %12, %6 : vector<32x1xi1>
    %14 = vector.broadcast %2 : i32 to vector<32x1xi32>
    %15 = arith.addi %4, %14 : vector<32x1xi32>
    %16 = arith.select %13, %15, %4 : vector<32x1xi1>, vector<32x1xi32>
    %17 = tpu.iota {dimensions = array<i32: 0>} : vector<128x8xi32>
    %18 = tpu.iota {dimensions = array<i32: 1>} : vector<128x8xi32>
    %c8_i32 = arith.constant 8 : i32
    %c0_i32_3 = arith.constant 0 : i32
    %19 = arith.cmpi eq, %c8_i32, %c0_i32_3 : i32
    %c1_i32_4 = arith.constant 1 : i32
    %20 = arith.select %19, %c1_i32_4, %c8_i32 : i32
    %21 = vector.broadcast %20 : i32 to vector<128x8xi32>
    %22 = arith.remsi %17, %21 : vector<128x8xi32>
    %c0_i32_5 = arith.constant 0 : i32
    %23 = vector.broadcast %c0_i32_5 : i32 to vector<128x8xi32>
    %24 = arith.cmpi ne, %22, %23 : vector<128x8xi32>
    %c0_i32_6 = arith.constant 0 : i32
    %25 = vector.broadcast %c0_i32_6 : i32 to vector<128x8xi32>
    %26 = arith.cmpi slt, %22, %25 : vector<128x8xi32>
    %c0_i32_7 = arith.constant 0 : i32
    %27 = arith.cmpi slt, %20, %c0_i32_7 : i32
    %28 = vector.broadcast %27 : i1 to vector<128x8xi1>
    %29 = vector.broadcast %28 : vector<128x8xi1> to vector<128x8xi1>
    %30 = arith.xori %26, %29 : vector<128x8xi1>
    %31 = arith.andi %30, %24 : vector<128x8xi1>
    %32 = vector.broadcast %20 : i32 to vector<128x8xi32>
    %33 = arith.addi %22, %32 : vector<128x8xi32>
    %34 = arith.select %31, %33, %22 : vector<128x8xi1>, vector<128x8xi32>
    %35 = arith.cmpi eq, %34, %18 : vector<128x8xi32>
    %36 = arith.extui %35 : vector<128x8xi1> to vector<128x8xi32>
    %37 = arith.sitofp %36 : vector<128x8xi32> to vector<128x8xf32>
    %38 = tpu.iota {dimensions = array<i32: 1>} : vector<8x128xi32>
    %39 = tpu.iota {dimensions = array<i32: 0>} : vector<8x128xi32>
    %c8_i32_8 = arith.constant 8 : i32
    %c0_i32_9 = arith.constant 0 : i32
    %40 = arith.cmpi eq, %c8_i32_8, %c0_i32_9 : i32
    %c1_i32_10 = arith.constant 1 : i32
    %41 = arith.select %40, %c1_i32_10, %c8_i32_8 : i32
    %42 = vector.broadcast %41 : i32 to vector<8x128xi32>
    %43 = arith.remsi %38, %42 : vector<8x128xi32>
    %c0_i32_11 = arith.constant 0 : i32
    %44 = vector.broadcast %c0_i32_11 : i32 to vector<8x128xi32>
    %45 = arith.cmpi ne, %43, %44 : vector<8x128xi32>
    %c0_i32_12 = arith.constant 0 : i32
    %46 = vector.broadcast %c0_i32_12 : i32 to vector<8x128xi32>
    %47 = arith.cmpi slt, %43, %46 : vector<8x128xi32>
    %c0_i32_13 = arith.constant 0 : i32
    %48 = arith.cmpi slt, %41, %c0_i32_13 : i32
    %49 = vector.broadcast %48 : i1 to vector<8x128xi1>
    %50 = vector.broadcast %49 : vector<8x128xi1> to vector<8x128xi1>
    %51 = arith.xori %47, %50 : vector<8x128xi1>
    %52 = arith.andi %51, %45 : vector<8x128xi1>
    %53 = vector.broadcast %41 : i32 to vector<8x128xi32>
    %54 = arith.addi %43, %53 : vector<8x128xi32>
    %55 = arith.select %52, %54, %43 : vector<8x128xi1>, vector<8x128xi32>
    %56 = arith.cmpi eq, %55, %39 : vector<8x128xi32>
    %57 = arith.extui %56 : vector<8x128xi1> to vector<8x128xi32>
    %58 = arith.sitofp %57 : vector<8x128xi32> to vector<8x128xf32>
    %59 = tpu.iota {dimensions = array<i32: 0>} : vector<512x8xi32>
    %60 = tpu.iota {dimensions = array<i32: 1>} : vector<512x8xi32>
    %c8_i32_14 = arith.constant 8 : i32
    %c0_i32_15 = arith.constant 0 : i32
    %61 = arith.cmpi eq, %c8_i32_14, %c0_i32_15 : i32
    %c1_i32_16 = arith.constant 1 : i32
    %62 = arith.select %61, %c1_i32_16, %c8_i32_14 : i32
    %63 = vector.broadcast %62 : i32 to vector<512x8xi32>
    %64 = arith.remsi %59, %63 : vector<512x8xi32>
    %c0_i32_17 = arith.constant 0 : i32
    %65 = vector.broadcast %c0_i32_17 : i32 to vector<512x8xi32>
    %66 = arith.cmpi ne, %64, %65 : vector<512x8xi32>
    %c0_i32_18 = arith.constant 0 : i32
    %67 = vector.broadcast %c0_i32_18 : i32 to vector<512x8xi32>
    %68 = arith.cmpi slt, %64, %67 : vector<512x8xi32>
    %c0_i32_19 = arith.constant 0 : i32
    %69 = arith.cmpi slt, %62, %c0_i32_19 : i32
    %70 = vector.broadcast %69 : i1 to vector<512x8xi1>
    %71 = vector.broadcast %70 : vector<512x8xi1> to vector<512x8xi1>
    %72 = arith.xori %68, %71 : vector<512x8xi1>
    %73 = arith.andi %72, %66 : vector<512x8xi1>
    %74 = vector.broadcast %62 : i32 to vector<512x8xi32>
    %75 = arith.addi %64, %74 : vector<512x8xi32>
    %76 = arith.select %73, %75, %64 : vector<512x8xi1>, vector<512x8xi32>
    %77 = arith.cmpi eq, %76, %60 : vector<512x8xi32>
    %78 = arith.extui %77 : vector<512x8xi1> to vector<512x8xi32>
    %79 = arith.sitofp %78 : vector<512x8xi32> to vector<512x8xf32>
    %80 = tpu.iota {dimensions = array<i32: 1>} : vector<8x512xi32>
    %81 = tpu.iota {dimensions = array<i32: 0>} : vector<8x512xi32>
    %c8_i32_20 = arith.constant 8 : i32
    %c0_i32_21 = arith.constant 0 : i32
    %82 = arith.cmpi eq, %c8_i32_20, %c0_i32_21 : i32
    %c1_i32_22 = arith.constant 1 : i32
    %83 = arith.select %82, %c1_i32_22, %c8_i32_20 : i32
    %84 = vector.broadcast %83 : i32 to vector<8x512xi32>
    %85 = arith.remsi %80, %84 : vector<8x512xi32>
    %c0_i32_23 = arith.constant 0 : i32
    %86 = vector.broadcast %c0_i32_23 : i32 to vector<8x512xi32>
    %87 = arith.cmpi ne, %85, %86 : vector<8x512xi32>
    %c0_i32_24 = arith.constant 0 : i32
    %88 = vector.broadcast %c0_i32_24 : i32 to vector<8x512xi32>
    %89 = arith.cmpi slt, %85, %88 : vector<8x512xi32>
    %c0_i32_25 = arith.constant 0 : i32
    %90 = arith.cmpi slt, %83, %c0_i32_25 : i32
    %91 = vector.broadcast %90 : i1 to vector<8x512xi1>
    %92 = vector.broadcast %91 : vector<8x512xi1> to vector<8x512xi1>
    %93 = arith.xori %89, %92 : vector<8x512xi1>
    %94 = arith.andi %93, %87 : vector<8x512xi1>
    %95 = vector.broadcast %83 : i32 to vector<8x512xi32>
    %96 = arith.addi %85, %95 : vector<8x512xi32>
    %97 = arith.select %94, %96, %85 : vector<8x512xi1>, vector<8x512xi32>
    %98 = arith.cmpi eq, %97, %81 : vector<8x512xi32>
    %99 = arith.extui %98 : vector<8x512xi1> to vector<8x512xi32>
    %100 = arith.sitofp %99 : vector<8x512xi32> to vector<8x512xf32>
    %c0 = arith.constant 0 : index
    %c0_26 = arith.constant 0 : index
    %101 = vector.load %arg0[%c0, %c0_26] : memref<32x64xf32, #tpu.memory_space<vmem>>, vector<32x64xf32>
    %cst = arith.constant 0.000000e+00 : f32
    %102 = vector.broadcast %cst : f32 to vector<2x64xf32>
    %103 = tpu.concatenate %102, %101, %102 in 0 : vector<2x64xf32>, vector<32x64xf32>, vector<2x64xf32> -> vector<36x64xf32>
    %cst_27 = arith.constant 0.000000e+00 : f32
    %104 = vector.broadcast %cst_27 : f32 to vector<32x128xf32>
    %c-2_i32 = arith.constant -2 : i32
    %105 = vector.broadcast %c-2_i32 : i32 to vector<32x1xi32>
    %106 = arith.addi %16, %105 : vector<32x1xi32>
    %c0_i32_28 = arith.constant 0 : i32
    %107 = vector.broadcast %c0_i32_28 : i32 to vector<32x1xi32>
    %108 = arith.cmpi sge, %106, %107 : vector<32x1xi32>
    %c-2_i32_29 = arith.constant -2 : i32
    %109 = vector.broadcast %c-2_i32_29 : i32 to vector<32x1xi32>
    %110 = arith.addi %16, %109 : vector<32x1xi32>
    %c16_i32_30 = arith.constant 16 : i32
    %111 = vector.broadcast %c16_i32_30 : i32 to vector<32x1xi32>
    %112 = arith.cmpi slt, %110, %111 : vector<32x1xi32>
    %113 = arith.andi %108, %112 : vector<32x1xi1>
    %114 = vector.extract_strided_slice %103 {offsets = [0, 0], sizes = [32, 64], strides = [1, 1]} : vector<36x64xf32> to vector<32x64xf32>
    %cst_31 = arith.constant 0.000000e+00 : f32
    %115 = vector.shape_cast %113 : vector<32x1xi1> to vector<32x1xi1>
    %116 = vector.broadcast %115 : vector<32x1xi1> to vector<32x64xi1>
    %117 = vector.broadcast %cst_31 : f32 to vector<32x64xf32>
    %118 = arith.select %116, %114, %117 : vector<32x64xi1>, vector<32x64xf32>
    %c0_32 = arith.constant 0 : index
    %c0_33 = arith.constant 0 : index
    %c0_34 = arith.constant 0 : index
    %119 = vector.load %arg1[%c0_32, %c0_33, %c0_34] : memref<5x64x128xf32, #tpu.memory_space<vmem>>, vector<1x64x128xf32>
    %120 = vector.shape_cast %119 : vector<1x64x128xf32> to vector<64x128xf32>
    %cst_35 = arith.constant dense<0.000000e+00> : vector<32x128xf32>
    %121 = tpu.matmul %118, %120, %cst_35 {dimension_numbers = #tpu.dot_dimension_numbers<[1], [0], [0], [1], [0, 0, 1, 1], [], []>} : vector<32x64xf32>, vector<64x128xf32>, vector<32x128xf32> -> vector<32x128xf32>
    %122 = arith.addf %104, %121 : vector<32x128xf32>
    %c-1_i32 = arith.constant -1 : i32
    %123 = vector.broadcast %c-1_i32 : i32 to vector<32x1xi32>
    %124 = arith.addi %16, %123 : vector<32x1xi32>
    %c0_i32_36 = arith.constant 0 : i32
    %125 = vector.broadcast %c0_i32_36 : i32 to vector<32x1xi32>
    %126 = arith.cmpi sge, %124, %125 : vector<32x1xi32>
    %c-1_i32_37 = arith.constant -1 : i32
    %127 = vector.broadcast %c-1_i32_37 : i32 to vector<32x1xi32>
    %128 = arith.addi %16, %127 : vector<32x1xi32>
    %c16_i32_38 = arith.constant 16 : i32
    %129 = vector.broadcast %c16_i32_38 : i32 to vector<32x1xi32>
    %130 = arith.cmpi slt, %128, %129 : vector<32x1xi32>
    %131 = arith.andi %126, %130 : vector<32x1xi1>
    %132 = vector.extract_strided_slice %103 {offsets = [1, 0], sizes = [32, 64], strides = [1, 1]} : vector<36x64xf32> to vector<32x64xf32>
    %cst_39 = arith.constant 0.000000e+00 : f32
    %133 = vector.shape_cast %131 : vector<32x1xi1> to vector<32x1xi1>
    %134 = vector.broadcast %133 : vector<32x1xi1> to vector<32x64xi1>
    %135 = vector.broadcast %cst_39 : f32 to vector<32x64xf32>
    %136 = arith.select %134, %132, %135 : vector<32x64xi1>, vector<32x64xf32>
    %c1 = arith.constant 1 : index
    %c0_40 = arith.constant 0 : index
    %c0_41 = arith.constant 0 : index
    %137 = vector.load %arg1[%c1, %c0_40, %c0_41] : memref<5x64x128xf32, #tpu.memory_space<vmem>>, vector<1x64x128xf32>
    %138 = vector.shape_cast %137 : vector<1x64x128xf32> to vector<64x128xf32>
    %cst_42 = arith.constant dense<0.000000e+00> : vector<32x128xf32>
    %139 = tpu.matmul %136, %138, %cst_42 {dimension_numbers = #tpu.dot_dimension_numbers<[1], [0], [0], [1], [0, 0, 1, 1], [], []>} : vector<32x64xf32>, vector<64x128xf32>, vector<32x128xf32> -> vector<32x128xf32>
    %140 = arith.addf %122, %139 : vector<32x128xf32>
    %c0_i32_43 = arith.constant 0 : i32
    %141 = vector.broadcast %c0_i32_43 : i32 to vector<32x1xi32>
    %142 = arith.addi %16, %141 : vector<32x1xi32>
    %c0_i32_44 = arith.constant 0 : i32
    %143 = vector.broadcast %c0_i32_44 : i32 to vector<32x1xi32>
    %144 = arith.cmpi sge, %142, %143 : vector<32x1xi32>
    %c0_i32_45 = arith.constant 0 : i32
    %145 = vector.broadcast %c0_i32_45 : i32 to vector<32x1xi32>
    %146 = arith.addi %16, %145 : vector<32x1xi32>
    %c16_i32_46 = arith.constant 16 : i32
    %147 = vector.broadcast %c16_i32_46 : i32 to vector<32x1xi32>
    %148 = arith.cmpi slt, %146, %147 : vector<32x1xi32>
    %149 = arith.andi %144, %148 : vector<32x1xi1>
    %150 = vector.extract_strided_slice %103 {offsets = [2, 0], sizes = [32, 64], strides = [1, 1]} : vector<36x64xf32> to vector<32x64xf32>
    %cst_47 = arith.constant 0.000000e+00 : f32
    %151 = vector.shape_cast %149 : vector<32x1xi1> to vector<32x1xi1>
    %152 = vector.broadcast %151 : vector<32x1xi1> to vector<32x64xi1>
    %153 = vector.broadcast %cst_47 : f32 to vector<32x64xf32>
    %154 = arith.select %152, %150, %153 : vector<32x64xi1>, vector<32x64xf32>
    %c2 = arith.constant 2 : index
    %c0_48 = arith.constant 0 : index
    %c0_49 = arith.constant 0 : index
    %155 = vector.load %arg1[%c2, %c0_48, %c0_49] : memref<5x64x128xf32, #tpu.memory_space<vmem>>, vector<1x64x128xf32>
    %156 = vector.shape_cast %155 : vector<1x64x128xf32> to vector<64x128xf32>
    %cst_50 = arith.constant dense<0.000000e+00> : vector<32x128xf32>
    %157 = tpu.matmul %154, %156, %cst_50 {dimension_numbers = #tpu.dot_dimension_numbers<[1], [0], [0], [1], [0, 0, 1, 1], [], []>} : vector<32x64xf32>, vector<64x128xf32>, vector<32x128xf32> -> vector<32x128xf32>
    %158 = arith.addf %140, %157 : vector<32x128xf32>
    %c1_i32_51 = arith.constant 1 : i32
    %159 = vector.broadcast %c1_i32_51 : i32 to vector<32x1xi32>
    %160 = arith.addi %16, %159 : vector<32x1xi32>
    %c0_i32_52 = arith.constant 0 : i32
    %161 = vector.broadcast %c0_i32_52 : i32 to vector<32x1xi32>
    %162 = arith.cmpi sge, %160, %161 : vector<32x1xi32>
    %c1_i32_53 = arith.constant 1 : i32
    %163 = vector.broadcast %c1_i32_53 : i32 to vector<32x1xi32>
    %164 = arith.addi %16, %163 : vector<32x1xi32>
    %c16_i32_54 = arith.constant 16 : i32
    %165 = vector.broadcast %c16_i32_54 : i32 to vector<32x1xi32>
    %166 = arith.cmpi slt, %164, %165 : vector<32x1xi32>
    %167 = arith.andi %162, %166 : vector<32x1xi1>
    %168 = vector.extract_strided_slice %103 {offsets = [3, 0], sizes = [32, 64], strides = [1, 1]} : vector<36x64xf32> to vector<32x64xf32>
    %cst_55 = arith.constant 0.000000e+00 : f32
    %169 = vector.shape_cast %167 : vector<32x1xi1> to vector<32x1xi1>
    %170 = vector.broadcast %169 : vector<32x1xi1> to vector<32x64xi1>
    %171 = vector.broadcast %cst_55 : f32 to vector<32x64xf32>
    %172 = arith.select %170, %168, %171 : vector<32x64xi1>, vector<32x64xf32>
    %c3 = arith.constant 3 : index
    %c0_56 = arith.constant 0 : index
    %c0_57 = arith.constant 0 : index
    %173 = vector.load %arg1[%c3, %c0_56, %c0_57] : memref<5x64x128xf32, #tpu.memory_space<vmem>>, vector<1x64x128xf32>
    %174 = vector.shape_cast %173 : vector<1x64x128xf32> to vector<64x128xf32>
    %cst_58 = arith.constant dense<0.000000e+00> : vector<32x128xf32>
    %175 = tpu.matmul %172, %174, %cst_58 {dimension_numbers = #tpu.dot_dimension_numbers<[1], [0], [0], [1], [0, 0, 1, 1], [], []>} : vector<32x64xf32>, vector<64x128xf32>, vector<32x128xf32> -> vector<32x128xf32>
    %176 = arith.addf %158, %175 : vector<32x128xf32>
    %c2_i32 = arith.constant 2 : i32
    %177 = vector.broadcast %c2_i32 : i32 to vector<32x1xi32>
    %178 = arith.addi %16, %177 : vector<32x1xi32>
    %c0_i32_59 = arith.constant 0 : i32
    %179 = vector.broadcast %c0_i32_59 : i32 to vector<32x1xi32>
    %180 = arith.cmpi sge, %178, %179 : vector<32x1xi32>
    %c2_i32_60 = arith.constant 2 : i32
    %181 = vector.broadcast %c2_i32_60 : i32 to vector<32x1xi32>
    %182 = arith.addi %16, %181 : vector<32x1xi32>
    %c16_i32_61 = arith.constant 16 : i32
    %183 = vector.broadcast %c16_i32_61 : i32 to vector<32x1xi32>
    %184 = arith.cmpi slt, %182, %183 : vector<32x1xi32>
    %185 = arith.andi %180, %184 : vector<32x1xi1>
    %186 = vector.extract_strided_slice %103 {offsets = [4, 0], sizes = [32, 64], strides = [1, 1]} : vector<36x64xf32> to vector<32x64xf32>
    %cst_62 = arith.constant 0.000000e+00 : f32
    %187 = vector.shape_cast %185 : vector<32x1xi1> to vector<32x1xi1>
    %188 = vector.broadcast %187 : vector<32x1xi1> to vector<32x64xi1>
    %189 = vector.broadcast %cst_62 : f32 to vector<32x64xf32>
    %190 = arith.select %188, %186, %189 : vector<32x64xi1>, vector<32x64xf32>
    %c4 = arith.constant 4 : index
    %c0_63 = arith.constant 0 : index
    %c0_64 = arith.constant 0 : index
    %191 = vector.load %arg1[%c4, %c0_63, %c0_64] : memref<5x64x128xf32, #tpu.memory_space<vmem>>, vector<1x64x128xf32>
    %192 = vector.shape_cast %191 : vector<1x64x128xf32> to vector<64x128xf32>
    %cst_65 = arith.constant dense<0.000000e+00> : vector<32x128xf32>
    %193 = tpu.matmul %190, %192, %cst_65 {dimension_numbers = #tpu.dot_dimension_numbers<[1], [0], [0], [1], [0, 0, 1, 1], [], []>} : vector<32x64xf32>, vector<64x128xf32>, vector<32x128xf32> -> vector<32x128xf32>
    %194 = arith.addf %176, %193 : vector<32x128xf32>
    %c0_66 = arith.constant 0 : index
    %c0_67 = arith.constant 0 : index
    %195 = vector.load %arg2[%c0_66, %c0_67] : memref<1x128xf32, #tpu.memory_space<vmem>>, vector<1x128xf32>
    %196 = vector.broadcast %195 : vector<1x128xf32> to vector<32x128xf32>
    %197 = arith.addf %194, %196 : vector<32x128xf32>
    %cst_68 = arith.constant dense<0.000000e+00> : vector<128xf32>
    %198 = vector.multi_reduction <add>, %197, %cst_68 [0] : vector<32x128xf32> to vector<128xf32>
    %199 = vector.shape_cast %198 : vector<128xf32> to vector<1x128xf32>
    %cst_69 = arith.constant dense<0.000000e+00> : vector<1x8xf32>
    %200 = tpu.matmul %199, %37, %cst_69 {dimension_numbers = #tpu.dot_dimension_numbers<[1], [0], [0], [1], [0, 0, 1, 1], [], []>} : vector<1x128xf32>, vector<128x8xf32>, vector<1x8xf32> -> vector<1x8xf32>
    %cst_70 = arith.constant 0.001953125 : f32
    %201 = vector.broadcast %cst_70 : f32 to vector<1x8xf32>
    %202 = arith.mulf %200, %201 : vector<1x8xf32>
    %cst_71 = arith.constant dense<0.000000e+00> : vector<1x128xf32>
    %203 = tpu.matmul %202, %58, %cst_71 {dimension_numbers = #tpu.dot_dimension_numbers<[1], [0], [0], [1], [0, 0, 1, 1], [], []>} : vector<1x8xf32>, vector<8x128xf32>, vector<1x128xf32> -> vector<1x128xf32>
    %204 = vector.broadcast %203 : vector<1x128xf32> to vector<32x128xf32>
    %205 = arith.subf %197, %204 : vector<32x128xf32>
    %206 = arith.mulf %205, %205 : vector<32x128xf32>
    %cst_72 = arith.constant dense<0.000000e+00> : vector<128xf32>
    %207 = vector.multi_reduction <add>, %206, %cst_72 [0] : vector<32x128xf32> to vector<128xf32>
    %208 = vector.shape_cast %207 : vector<128xf32> to vector<1x128xf32>
    %cst_73 = arith.constant dense<0.000000e+00> : vector<1x8xf32>
    %209 = tpu.matmul %208, %37, %cst_73 {dimension_numbers = #tpu.dot_dimension_numbers<[1], [0], [0], [1], [0, 0, 1, 1], [], []>} : vector<1x128xf32>, vector<128x8xf32>, vector<1x8xf32> -> vector<1x8xf32>
    %cst_74 = arith.constant 0.001953125 : f32
    %210 = vector.broadcast %cst_74 : f32 to vector<1x8xf32>
    %211 = arith.mulf %209, %210 : vector<1x8xf32>
    %c0_75 = arith.constant 0 : index
    %c0_76 = arith.constant 0 : index
    %212 = vector.load %arg3[%c0_75, %c0_76] : memref<1x8xf32, #tpu.memory_space<vmem>>, vector<1x8xf32>
    %cst_77 = arith.constant 9.99999974E-6 : f32
    %213 = vector.broadcast %cst_77 : f32 to vector<1x8xf32>
    %214 = arith.addf %211, %213 : vector<1x8xf32>
    %215 = math.rsqrt %214 : vector<1x8xf32>
    %216 = arith.mulf %212, %215 : vector<1x8xf32>
    %cst_78 = arith.constant dense<0.000000e+00> : vector<1x128xf32>
    %217 = tpu.matmul %216, %58, %cst_78 {dimension_numbers = #tpu.dot_dimension_numbers<[1], [0], [0], [1], [0, 0, 1, 1], [], []>} : vector<1x8xf32>, vector<8x128xf32>, vector<1x128xf32> -> vector<1x128xf32>
    %218 = vector.broadcast %217 : vector<1x128xf32> to vector<32x128xf32>
    %219 = arith.mulf %205, %218 : vector<32x128xf32>
    %c0_79 = arith.constant 0 : index
    %c0_80 = arith.constant 0 : index
    %220 = vector.load %arg4[%c0_79, %c0_80] : memref<1x8xf32, #tpu.memory_space<vmem>>, vector<1x8xf32>
    %cst_81 = arith.constant dense<0.000000e+00> : vector<1x128xf32>
    %221 = tpu.matmul %220, %58, %cst_81 {dimension_numbers = #tpu.dot_dimension_numbers<[1], [0], [0], [1], [0, 0, 1, 1], [], []>} : vector<1x8xf32>, vector<8x128xf32>, vector<1x128xf32> -> vector<1x128xf32>
    %222 = vector.broadcast %221 : vector<1x128xf32> to vector<32x128xf32>
    %223 = arith.addf %219, %222 : vector<32x128xf32>
    %cst_82 = arith.constant 0.000000e+00 : f32
    %224 = vector.broadcast %cst_82 : f32 to vector<32x128xf32>
    %225 = arith.maximumf %223, %224 : vector<32x128xf32>
    %cst_83 = arith.constant 0.000000e+00 : f32
    %226 = vector.broadcast %cst_83 : f32 to vector<2x128xf32>
    %227 = tpu.concatenate %226, %225, %226 in 0 : vector<2x128xf32>, vector<32x128xf32>, vector<2x128xf32> -> vector<36x128xf32>
    %cst_84 = arith.constant 0.000000e+00 : f32
    %228 = vector.broadcast %cst_84 : f32 to vector<32x128xf32>
    %c-2_i32_85 = arith.constant -2 : i32
    %229 = vector.broadcast %c-2_i32_85 : i32 to vector<32x1xi32>
    %230 = arith.addi %16, %229 : vector<32x1xi32>
    %c0_i32_86 = arith.constant 0 : i32
    %231 = vector.broadcast %c0_i32_86 : i32 to vector<32x1xi32>
    %232 = arith.cmpi sge, %230, %231 : vector<32x1xi32>
    %c-2_i32_87 = arith.constant -2 : i32
    %233 = vector.broadcast %c-2_i32_87 : i32 to vector<32x1xi32>
    %234 = arith.addi %16, %233 : vector<32x1xi32>
    %c16_i32_88 = arith.constant 16 : i32
    %235 = vector.broadcast %c16_i32_88 : i32 to vector<32x1xi32>
    %236 = arith.cmpi slt, %234, %235 : vector<32x1xi32>
    %237 = arith.andi %232, %236 : vector<32x1xi1>
    %238 = vector.extract_strided_slice %227 {offsets = [0, 0], sizes = [32, 128], strides = [1, 1]} : vector<36x128xf32> to vector<32x128xf32>
    %cst_89 = arith.constant 0.000000e+00 : f32
    %239 = vector.shape_cast %237 : vector<32x1xi1> to vector<32x1xi1>
    %240 = vector.broadcast %239 : vector<32x1xi1> to vector<32x128xi1>
    %241 = vector.broadcast %cst_89 : f32 to vector<32x128xf32>
    %242 = arith.select %240, %238, %241 : vector<32x128xi1>, vector<32x128xf32>
    %c0_90 = arith.constant 0 : index
    %c0_91 = arith.constant 0 : index
    %c0_92 = arith.constant 0 : index
    %243 = vector.load %arg5[%c0_90, %c0_91, %c0_92] : memref<5x128x128xf32, #tpu.memory_space<vmem>>, vector<1x128x128xf32>
    %244 = vector.shape_cast %243 : vector<1x128x128xf32> to vector<128x128xf32>
    %cst_93 = arith.constant dense<0.000000e+00> : vector<32x128xf32>
    %245 = tpu.matmul %242, %244, %cst_93 {dimension_numbers = #tpu.dot_dimension_numbers<[1], [0], [0], [1], [0, 0, 1, 1], [], []>} : vector<32x128xf32>, vector<128x128xf32>, vector<32x128xf32> -> vector<32x128xf32>
    %246 = arith.addf %228, %245 : vector<32x128xf32>
    %c-1_i32_94 = arith.constant -1 : i32
    %247 = vector.broadcast %c-1_i32_94 : i32 to vector<32x1xi32>
    %248 = arith.addi %16, %247 : vector<32x1xi32>
    %c0_i32_95 = arith.constant 0 : i32
    %249 = vector.broadcast %c0_i32_95 : i32 to vector<32x1xi32>
    %250 = arith.cmpi sge, %248, %249 : vector<32x1xi32>
    %c-1_i32_96 = arith.constant -1 : i32
    %251 = vector.broadcast %c-1_i32_96 : i32 to vector<32x1xi32>
    %252 = arith.addi %16, %251 : vector<32x1xi32>
    %c16_i32_97 = arith.constant 16 : i32
    %253 = vector.broadcast %c16_i32_97 : i32 to vector<32x1xi32>
    %254 = arith.cmpi slt, %252, %253 : vector<32x1xi32>
    %255 = arith.andi %250, %254 : vector<32x1xi1>
    %256 = vector.extract_strided_slice %227 {offsets = [1, 0], sizes = [32, 128], strides = [1, 1]} : vector<36x128xf32> to vector<32x128xf32>
    %cst_98 = arith.constant 0.000000e+00 : f32
    %257 = vector.shape_cast %255 : vector<32x1xi1> to vector<32x1xi1>
    %258 = vector.broadcast %257 : vector<32x1xi1> to vector<32x128xi1>
    %259 = vector.broadcast %cst_98 : f32 to vector<32x128xf32>
    %260 = arith.select %258, %256, %259 : vector<32x128xi1>, vector<32x128xf32>
    %c1_99 = arith.constant 1 : index
    %c0_100 = arith.constant 0 : index
    %c0_101 = arith.constant 0 : index
    %261 = vector.load %arg5[%c1_99, %c0_100, %c0_101] : memref<5x128x128xf32, #tpu.memory_space<vmem>>, vector<1x128x128xf32>
    %262 = vector.shape_cast %261 : vector<1x128x128xf32> to vector<128x128xf32>
    %cst_102 = arith.constant dense<0.000000e+00> : vector<32x128xf32>
    %263 = tpu.matmul %260, %262, %cst_102 {dimension_numbers = #tpu.dot_dimension_numbers<[1], [0], [0], [1], [0, 0, 1, 1], [], []>} : vector<32x128xf32>, vector<128x128xf32>, vector<32x128xf32> -> vector<32x128xf32>
    %264 = arith.addf %246, %263 : vector<32x128xf32>
    %c0_i32_103 = arith.constant 0 : i32
    %265 = vector.broadcast %c0_i32_103 : i32 to vector<32x1xi32>
    %266 = arith.addi %16, %265 : vector<32x1xi32>
    %c0_i32_104 = arith.constant 0 : i32
    %267 = vector.broadcast %c0_i32_104 : i32 to vector<32x1xi32>
    %268 = arith.cmpi sge, %266, %267 : vector<32x1xi32>
    %c0_i32_105 = arith.constant 0 : i32
    %269 = vector.broadcast %c0_i32_105 : i32 to vector<32x1xi32>
    %270 = arith.addi %16, %269 : vector<32x1xi32>
    %c16_i32_106 = arith.constant 16 : i32
    %271 = vector.broadcast %c16_i32_106 : i32 to vector<32x1xi32>
    %272 = arith.cmpi slt, %270, %271 : vector<32x1xi32>
    %273 = arith.andi %268, %272 : vector<32x1xi1>
    %274 = vector.extract_strided_slice %227 {offsets = [2, 0], sizes = [32, 128], strides = [1, 1]} : vector<36x128xf32> to vector<32x128xf32>
    %cst_107 = arith.constant 0.000000e+00 : f32
    %275 = vector.shape_cast %273 : vector<32x1xi1> to vector<32x1xi1>
    %276 = vector.broadcast %275 : vector<32x1xi1> to vector<32x128xi1>
    %277 = vector.broadcast %cst_107 : f32 to vector<32x128xf32>
    %278 = arith.select %276, %274, %277 : vector<32x128xi1>, vector<32x128xf32>
    %c2_108 = arith.constant 2 : index
    %c0_109 = arith.constant 0 : index
    %c0_110 = arith.constant 0 : index
    %279 = vector.load %arg5[%c2_108, %c0_109, %c0_110] : memref<5x128x128xf32, #tpu.memory_space<vmem>>, vector<1x128x128xf32>
    %280 = vector.shape_cast %279 : vector<1x128x128xf32> to vector<128x128xf32>
    %cst_111 = arith.constant dense<0.000000e+00> : vector<32x128xf32>
    %281 = tpu.matmul %278, %280, %cst_111 {dimension_numbers = #tpu.dot_dimension_numbers<[1], [0], [0], [1], [0, 0, 1, 1], [], []>} : vector<32x128xf32>, vector<128x128xf32>, vector<32x128xf32> -> vector<32x128xf32>
    %282 = arith.addf %264, %281 : vector<32x128xf32>
    %c1_i32_112 = arith.constant 1 : i32
    %283 = vector.broadcast %c1_i32_112 : i32 to vector<32x1xi32>
    %284 = arith.addi %16, %283 : vector<32x1xi32>
    %c0_i32_113 = arith.constant 0 : i32
    %285 = vector.broadcast %c0_i32_113 : i32 to vector<32x1xi32>
    %286 = arith.cmpi sge, %284, %285 : vector<32x1xi32>
    %c1_i32_114 = arith.constant 1 : i32
    %287 = vector.broadcast %c1_i32_114 : i32 to vector<32x1xi32>
    %288 = arith.addi %16, %287 : vector<32x1xi32>
    %c16_i32_115 = arith.constant 16 : i32
    %289 = vector.broadcast %c16_i32_115 : i32 to vector<32x1xi32>
    %290 = arith.cmpi slt, %288, %289 : vector<32x1xi32>
    %291 = arith.andi %286, %290 : vector<32x1xi1>
    %292 = vector.extract_strided_slice %227 {offsets = [3, 0], sizes = [32, 128], strides = [1, 1]} : vector<36x128xf32> to vector<32x128xf32>
    %cst_116 = arith.constant 0.000000e+00 : f32
    %293 = vector.shape_cast %291 : vector<32x1xi1> to vector<32x1xi1>
    %294 = vector.broadcast %293 : vector<32x1xi1> to vector<32x128xi1>
    %295 = vector.broadcast %cst_116 : f32 to vector<32x128xf32>
    %296 = arith.select %294, %292, %295 : vector<32x128xi1>, vector<32x128xf32>
    %c3_117 = arith.constant 3 : index
    %c0_118 = arith.constant 0 : index
    %c0_119 = arith.constant 0 : index
    %297 = vector.load %arg5[%c3_117, %c0_118, %c0_119] : memref<5x128x128xf32, #tpu.memory_space<vmem>>, vector<1x128x128xf32>
    %298 = vector.shape_cast %297 : vector<1x128x128xf32> to vector<128x128xf32>
    %cst_120 = arith.constant dense<0.000000e+00> : vector<32x128xf32>
    %299 = tpu.matmul %296, %298, %cst_120 {dimension_numbers = #tpu.dot_dimension_numbers<[1], [0], [0], [1], [0, 0, 1, 1], [], []>} : vector<32x128xf32>, vector<128x128xf32>, vector<32x128xf32> -> vector<32x128xf32>
    %300 = arith.addf %282, %299 : vector<32x128xf32>
    %c2_i32_121 = arith.constant 2 : i32
    %301 = vector.broadcast %c2_i32_121 : i32 to vector<32x1xi32>
    %302 = arith.addi %16, %301 : vector<32x1xi32>
    %c0_i32_122 = arith.constant 0 : i32
    %303 = vector.broadcast %c0_i32_122 : i32 to vector<32x1xi32>
    %304 = arith.cmpi sge, %302, %303 : vector<32x1xi32>
    %c2_i32_123 = arith.constant 2 : i32
    %305 = vector.broadcast %c2_i32_123 : i32 to vector<32x1xi32>
    %306 = arith.addi %16, %305 : vector<32x1xi32>
    %c16_i32_124 = arith.constant 16 : i32
    %307 = vector.broadcast %c16_i32_124 : i32 to vector<32x1xi32>
    %308 = arith.cmpi slt, %306, %307 : vector<32x1xi32>
    %309 = arith.andi %304, %308 : vector<32x1xi1>
    %310 = vector.extract_strided_slice %227 {offsets = [4, 0], sizes = [32, 128], strides = [1, 1]} : vector<36x128xf32> to vector<32x128xf32>
    %cst_125 = arith.constant 0.000000e+00 : f32
    %311 = vector.shape_cast %309 : vector<32x1xi1> to vector<32x1xi1>
    %312 = vector.broadcast %311 : vector<32x1xi1> to vector<32x128xi1>
    %313 = vector.broadcast %cst_125 : f32 to vector<32x128xf32>
    %314 = arith.select %312, %310, %313 : vector<32x128xi1>, vector<32x128xf32>
    %c4_126 = arith.constant 4 : index
    %c0_127 = arith.constant 0 : index
    %c0_128 = arith.constant 0 : index
    %315 = vector.load %arg5[%c4_126, %c0_127, %c0_128] : memref<5x128x128xf32, #tpu.memory_space<vmem>>, vector<1x128x128xf32>
    %316 = vector.shape_cast %315 : vector<1x128x128xf32> to vector<128x128xf32>
    %cst_129 = arith.constant dense<0.000000e+00> : vector<32x128xf32>
    %317 = tpu.matmul %314, %316, %cst_129 {dimension_numbers = #tpu.dot_dimension_numbers<[1], [0], [0], [1], [0, 0, 1, 1], [], []>} : vector<32x128xf32>, vector<128x128xf32>, vector<32x128xf32> -> vector<32x128xf32>
    %318 = arith.addf %300, %317 : vector<32x128xf32>
    %c0_130 = arith.constant 0 : index
    %c0_131 = arith.constant 0 : index
    %319 = vector.load %arg6[%c0_130, %c0_131] : memref<1x128xf32, #tpu.memory_space<vmem>>, vector<1x128xf32>
    %320 = vector.broadcast %319 : vector<1x128xf32> to vector<32x128xf32>
    %321 = arith.addf %318, %320 : vector<32x128xf32>
    %cst_132 = arith.constant dense<0.000000e+00> : vector<128xf32>
    %322 = vector.multi_reduction <add>, %321, %cst_132 [0] : vector<32x128xf32> to vector<128xf32>
    %323 = vector.shape_cast %322 : vector<128xf32> to vector<1x128xf32>
    %cst_133 = arith.constant dense<0.000000e+00> : vector<1x8xf32>
    %324 = tpu.matmul %323, %37, %cst_133 {dimension_numbers = #tpu.dot_dimension_numbers<[1], [0], [0], [1], [0, 0, 1, 1], [], []>} : vector<1x128xf32>, vector<128x8xf32>, vector<1x8xf32> -> vector<1x8xf32>
    %cst_134 = arith.constant 0.001953125 : f32
    %325 = vector.broadcast %cst_134 : f32 to vector<1x8xf32>
    %326 = arith.mulf %324, %325 : vector<1x8xf32>
    %cst_135 = arith.constant dense<0.000000e+00> : vector<1x128xf32>
    %327 = tpu.matmul %326, %58, %cst_135 {dimension_numbers = #tpu.dot_dimension_numbers<[1], [0], [0], [1], [0, 0, 1, 1], [], []>} : vector<1x8xf32>, vector<8x128xf32>, vector<1x128xf32> -> vector<1x128xf32>
    %328 = vector.broadcast %327 : vector<1x128xf32> to vector<32x128xf32>
    %329 = arith.subf %321, %328 : vector<32x128xf32>
    %330 = arith.mulf %329, %329 : vector<32x128xf32>
    %cst_136 = arith.constant dense<0.000000e+00> : vector<128xf32>
    %331 = vector.multi_reduction <add>, %330, %cst_136 [0] : vector<32x128xf32> to vector<128xf32>
    %332 = vector.shape_cast %331 : vector<128xf32> to vector<1x128xf32>
    %cst_137 = arith.constant dense<0.000000e+00> : vector<1x8xf32>
    %333 = tpu.matmul %332, %37, %cst_137 {dimension_numbers = #tpu.dot_dimension_numbers<[1], [0], [0], [1], [0, 0, 1, 1], [], []>} : vector<1x128xf32>, vector<128x8xf32>, vector<1x8xf32> -> vector<1x8xf32>
    %cst_138 = arith.constant 0.001953125 : f32
    %334 = vector.broadcast %cst_138 : f32 to vector<1x8xf32>
    %335 = arith.mulf %333, %334 : vector<1x8xf32>
    %c0_139 = arith.constant 0 : index
    %c0_140 = arith.constant 0 : index
    %336 = vector.load %arg7[%c0_139, %c0_140] : memref<1x8xf32, #tpu.memory_space<vmem>>, vector<1x8xf32>
    %cst_141 = arith.constant 9.99999974E-6 : f32
    %337 = vector.broadcast %cst_141 : f32 to vector<1x8xf32>
    %338 = arith.addf %335, %337 : vector<1x8xf32>
    %339 = math.rsqrt %338 : vector<1x8xf32>
    %340 = arith.mulf %336, %339 : vector<1x8xf32>
    %cst_142 = arith.constant dense<0.000000e+00> : vector<1x128xf32>
    %341 = tpu.matmul %340, %58, %cst_142 {dimension_numbers = #tpu.dot_dimension_numbers<[1], [0], [0], [1], [0, 0, 1, 1], [], []>} : vector<1x8xf32>, vector<8x128xf32>, vector<1x128xf32> -> vector<1x128xf32>
    %342 = vector.broadcast %341 : vector<1x128xf32> to vector<32x128xf32>
    %343 = arith.mulf %329, %342 : vector<32x128xf32>
    %c0_143 = arith.constant 0 : index
    %c0_144 = arith.constant 0 : index
    %344 = vector.load %arg8[%c0_143, %c0_144] : memref<1x8xf32, #tpu.memory_space<vmem>>, vector<1x8xf32>
    %cst_145 = arith.constant dense<0.000000e+00> : vector<1x128xf32>
    %345 = tpu.matmul %344, %58, %cst_145 {dimension_numbers = #tpu.dot_dimension_numbers<[1], [0], [0], [1], [0, 0, 1, 1], [], []>} : vector<1x8xf32>, vector<8x128xf32>, vector<1x128xf32> -> vector<1x128xf32>
    %346 = vector.broadcast %345 : vector<1x128xf32> to vector<32x128xf32>
    %347 = arith.addf %343, %346 : vector<32x128xf32>
    %cst_146 = arith.constant 0.000000e+00 : f32
    %348 = vector.broadcast %cst_146 : f32 to vector<32x128xf32>
    %349 = arith.maximumf %347, %348 : vector<32x128xf32>
    %cst_147 = arith.constant 0.000000e+00 : f32
    %350 = vector.broadcast %cst_147 : f32 to vector<1x128xf32>
    %351 = tpu.concatenate %350, %349, %350 in 0 : vector<1x128xf32>, vector<32x128xf32>, vector<1x128xf32> -> vector<34x128xf32>
    %cst_148 = arith.constant 0.000000e+00 : f32
    %352 = vector.broadcast %cst_148 : f32 to vector<32x128xf32>
    %c-1_i32_149 = arith.constant -1 : i32
    %353 = vector.broadcast %c-1_i32_149 : i32 to vector<32x1xi32>
    %354 = arith.addi %16, %353 : vector<32x1xi32>
    %c0_i32_150 = arith.constant 0 : i32
    %355 = vector.broadcast %c0_i32_150 : i32 to vector<32x1xi32>
    %356 = arith.cmpi sge, %354, %355 : vector<32x1xi32>
    %c-1_i32_151 = arith.constant -1 : i32
    %357 = vector.broadcast %c-1_i32_151 : i32 to vector<32x1xi32>
    %358 = arith.addi %16, %357 : vector<32x1xi32>
    %c16_i32_152 = arith.constant 16 : i32
    %359 = vector.broadcast %c16_i32_152 : i32 to vector<32x1xi32>
    %360 = arith.cmpi slt, %358, %359 : vector<32x1xi32>
    %361 = arith.andi %356, %360 : vector<32x1xi1>
    %362 = vector.extract_strided_slice %351 {offsets = [0, 0], sizes = [32, 128], strides = [1, 1]} : vector<34x128xf32> to vector<32x128xf32>
    %cst_153 = arith.constant 0.000000e+00 : f32
    %363 = vector.shape_cast %361 : vector<32x1xi1> to vector<32x1xi1>
    %364 = vector.broadcast %363 : vector<32x1xi1> to vector<32x128xi1>
    %365 = vector.broadcast %cst_153 : f32 to vector<32x128xf32>
    %366 = arith.select %364, %362, %365 : vector<32x128xi1>, vector<32x128xf32>
    %c0_154 = arith.constant 0 : index
    %c0_155 = arith.constant 0 : index
    %c0_156 = arith.constant 0 : index
    %367 = vector.load %arg9[%c0_154, %c0_155, %c0_156] : memref<3x128x128xf32, #tpu.memory_space<vmem>>, vector<1x128x128xf32>
    %368 = vector.shape_cast %367 : vector<1x128x128xf32> to vector<128x128xf32>
    %cst_157 = arith.constant dense<0.000000e+00> : vector<32x128xf32>
    %369 = tpu.matmul %366, %368, %cst_157 {dimension_numbers = #tpu.dot_dimension_numbers<[1], [0], [0], [1], [0, 0, 1, 1], [], []>} : vector<32x128xf32>, vector<128x128xf32>, vector<32x128xf32> -> vector<32x128xf32>
    %370 = arith.addf %352, %369 : vector<32x128xf32>
    %c0_i32_158 = arith.constant 0 : i32
    %371 = vector.broadcast %c0_i32_158 : i32 to vector<32x1xi32>
    %372 = arith.addi %16, %371 : vector<32x1xi32>
    %c0_i32_159 = arith.constant 0 : i32
    %373 = vector.broadcast %c0_i32_159 : i32 to vector<32x1xi32>
    %374 = arith.cmpi sge, %372, %373 : vector<32x1xi32>
    %c0_i32_160 = arith.constant 0 : i32
    %375 = vector.broadcast %c0_i32_160 : i32 to vector<32x1xi32>
    %376 = arith.addi %16, %375 : vector<32x1xi32>
    %c16_i32_161 = arith.constant 16 : i32
    %377 = vector.broadcast %c16_i32_161 : i32 to vector<32x1xi32>
    %378 = arith.cmpi slt, %376, %377 : vector<32x1xi32>
    %379 = arith.andi %374, %378 : vector<32x1xi1>
    %380 = vector.extract_strided_slice %351 {offsets = [1, 0], sizes = [32, 128], strides = [1, 1]} : vector<34x128xf32> to vector<32x128xf32>
    %cst_162 = arith.constant 0.000000e+00 : f32
    %381 = vector.shape_cast %379 : vector<32x1xi1> to vector<32x1xi1>
    %382 = vector.broadcast %381 : vector<32x1xi1> to vector<32x128xi1>
    %383 = vector.broadcast %cst_162 : f32 to vector<32x128xf32>
    %384 = arith.select %382, %380, %383 : vector<32x128xi1>, vector<32x128xf32>
    %c1_163 = arith.constant 1 : index
    %c0_164 = arith.constant 0 : index
    %c0_165 = arith.constant 0 : index
    %385 = vector.load %arg9[%c1_163, %c0_164, %c0_165] : memref<3x128x128xf32, #tpu.memory_space<vmem>>, vector<1x128x128xf32>
    %386 = vector.shape_cast %385 : vector<1x128x128xf32> to vector<128x128xf32>
    %cst_166 = arith.constant dense<0.000000e+00> : vector<32x128xf32>
    %387 = tpu.matmul %384, %386, %cst_166 {dimension_numbers = #tpu.dot_dimension_numbers<[1], [0], [0], [1], [0, 0, 1, 1], [], []>} : vector<32x128xf32>, vector<128x128xf32>, vector<32x128xf32> -> vector<32x128xf32>
    %388 = arith.addf %370, %387 : vector<32x128xf32>
    %c1_i32_167 = arith.constant 1 : i32
    %389 = vector.broadcast %c1_i32_167 : i32 to vector<32x1xi32>
    %390 = arith.addi %16, %389 : vector<32x1xi32>
    %c0_i32_168 = arith.constant 0 : i32
    %391 = vector.broadcast %c0_i32_168 : i32 to vector<32x1xi32>
    %392 = arith.cmpi sge, %390, %391 : vector<32x1xi32>
    %c1_i32_169 = arith.constant 1 : i32
    %393 = vector.broadcast %c1_i32_169 : i32 to vector<32x1xi32>
    %394 = arith.addi %16, %393 : vector<32x1xi32>
    %c16_i32_170 = arith.constant 16 : i32
    %395 = vector.broadcast %c16_i32_170 : i32 to vector<32x1xi32>
    %396 = arith.cmpi slt, %394, %395 : vector<32x1xi32>
    %397 = arith.andi %392, %396 : vector<32x1xi1>
    %398 = vector.extract_strided_slice %351 {offsets = [2, 0], sizes = [32, 128], strides = [1, 1]} : vector<34x128xf32> to vector<32x128xf32>
    %cst_171 = arith.constant 0.000000e+00 : f32
    %399 = vector.shape_cast %397 : vector<32x1xi1> to vector<32x1xi1>
    %400 = vector.broadcast %399 : vector<32x1xi1> to vector<32x128xi1>
    %401 = vector.broadcast %cst_171 : f32 to vector<32x128xf32>
    %402 = arith.select %400, %398, %401 : vector<32x128xi1>, vector<32x128xf32>
    %c2_172 = arith.constant 2 : index
    %c0_173 = arith.constant 0 : index
    %c0_174 = arith.constant 0 : index
    %403 = vector.load %arg9[%c2_172, %c0_173, %c0_174] : memref<3x128x128xf32, #tpu.memory_space<vmem>>, vector<1x128x128xf32>
    %404 = vector.shape_cast %403 : vector<1x128x128xf32> to vector<128x128xf32>
    %cst_175 = arith.constant dense<0.000000e+00> : vector<32x128xf32>
    %405 = tpu.matmul %402, %404, %cst_175 {dimension_numbers = #tpu.dot_dimension_numbers<[1], [0], [0], [1], [0, 0, 1, 1], [], []>} : vector<32x128xf32>, vector<128x128xf32>, vector<32x128xf32> -> vector<32x128xf32>
    %406 = arith.addf %388, %405 : vector<32x128xf32>
    %c0_176 = arith.constant 0 : index
    %c0_177 = arith.constant 0 : index
    %407 = vector.load %arg10[%c0_176, %c0_177] : memref<1x128xf32, #tpu.memory_space<vmem>>, vector<1x128xf32>
    %408 = vector.broadcast %407 : vector<1x128xf32> to vector<32x128xf32>
    %409 = arith.addf %406, %408 : vector<32x128xf32>
    %cst_178 = arith.constant dense<0.000000e+00> : vector<128xf32>
    %410 = vector.multi_reduction <add>, %409, %cst_178 [0] : vector<32x128xf32> to vector<128xf32>
    %411 = vector.shape_cast %410 : vector<128xf32> to vector<1x128xf32>
    %cst_179 = arith.constant dense<0.000000e+00> : vector<1x8xf32>
    %412 = tpu.matmul %411, %37, %cst_179 {dimension_numbers = #tpu.dot_dimension_numbers<[1], [0], [0], [1], [0, 0, 1, 1], [], []>} : vector<1x128xf32>, vector<128x8xf32>, vector<1x8xf32> -> vector<1x8xf32>
    %cst_180 = arith.constant 0.001953125 : f32
    %413 = vector.broadcast %cst_180 : f32 to vector<1x8xf32>
    %414 = arith.mulf %412, %413 : vector<1x8xf32>
    %cst_181 = arith.constant dense<0.000000e+00> : vector<1x128xf32>
    %415 = tpu.matmul %414, %58, %cst_181 {dimension_numbers = #tpu.dot_dimension_numbers<[1], [0], [0], [1], [0, 0, 1, 1], [], []>} : vector<1x8xf32>, vector<8x128xf32>, vector<1x128xf32> -> vector<1x128xf32>
    %416 = vector.broadcast %415 : vector<1x128xf32> to vector<32x128xf32>
    %417 = arith.subf %409, %416 : vector<32x128xf32>
    %418 = arith.mulf %417, %417 : vector<32x128xf32>
    %cst_182 = arith.constant dense<0.000000e+00> : vector<128xf32>
    %419 = vector.multi_reduction <add>, %418, %cst_182 [0] : vector<32x128xf32> to vector<128xf32>
    %420 = vector.shape_cast %419 : vector<128xf32> to vector<1x128xf32>
    %cst_183 = arith.constant dense<0.000000e+00> : vector<1x8xf32>
    %421 = tpu.matmul %420, %37, %cst_183 {dimension_numbers = #tpu.dot_dimension_numbers<[1], [0], [0], [1], [0, 0, 1, 1], [], []>} : vector<1x128xf32>, vector<128x8xf32>, vector<1x8xf32> -> vector<1x8xf32>
    %cst_184 = arith.constant 0.001953125 : f32
    %422 = vector.broadcast %cst_184 : f32 to vector<1x8xf32>
    %423 = arith.mulf %421, %422 : vector<1x8xf32>
    %c0_185 = arith.constant 0 : index
    %c0_186 = arith.constant 0 : index
    %424 = vector.load %arg11[%c0_185, %c0_186] : memref<1x8xf32, #tpu.memory_space<vmem>>, vector<1x8xf32>
    %cst_187 = arith.constant 9.99999974E-6 : f32
    %425 = vector.broadcast %cst_187 : f32 to vector<1x8xf32>
    %426 = arith.addf %423, %425 : vector<1x8xf32>
    %427 = math.rsqrt %426 : vector<1x8xf32>
    %428 = arith.mulf %424, %427 : vector<1x8xf32>
    %cst_188 = arith.constant dense<0.000000e+00> : vector<1x128xf32>
    %429 = tpu.matmul %428, %58, %cst_188 {dimension_numbers = #tpu.dot_dimension_numbers<[1], [0], [0], [1], [0, 0, 1, 1], [], []>} : vector<1x8xf32>, vector<8x128xf32>, vector<1x128xf32> -> vector<1x128xf32>
    %430 = vector.broadcast %429 : vector<1x128xf32> to vector<32x128xf32>
    %431 = arith.mulf %417, %430 : vector<32x128xf32>
    %c0_189 = arith.constant 0 : index
    %c0_190 = arith.constant 0 : index
    %432 = vector.load %arg12[%c0_189, %c0_190] : memref<1x8xf32, #tpu.memory_space<vmem>>, vector<1x8xf32>
    %cst_191 = arith.constant dense<0.000000e+00> : vector<1x128xf32>
    %433 = tpu.matmul %432, %58, %cst_191 {dimension_numbers = #tpu.dot_dimension_numbers<[1], [0], [0], [1], [0, 0, 1, 1], [], []>} : vector<1x8xf32>, vector<8x128xf32>, vector<1x128xf32> -> vector<1x128xf32>
    %434 = vector.broadcast %433 : vector<1x128xf32> to vector<32x128xf32>
    %435 = arith.addf %431, %434 : vector<32x128xf32>
    %cst_192 = arith.constant 0.000000e+00 : f32
    %436 = vector.broadcast %cst_192 : f32 to vector<32x128xf32>
    %437 = arith.maximumf %435, %436 : vector<32x128xf32>
    %cst_193 = arith.constant 0.000000e+00 : f32
    %438 = vector.broadcast %cst_193 : f32 to vector<1x128xf32>
    %439 = tpu.concatenate %438, %437, %438 in 0 : vector<1x128xf32>, vector<32x128xf32>, vector<1x128xf32> -> vector<34x128xf32>
    %cst_194 = arith.constant 0.000000e+00 : f32
    %440 = vector.broadcast %cst_194 : f32 to vector<32x128xf32>
    %c-1_i32_195 = arith.constant -1 : i32
    %441 = vector.broadcast %c-1_i32_195 : i32 to vector<32x1xi32>
    %442 = arith.addi %16, %441 : vector<32x1xi32>
    %c0_i32_196 = arith.constant 0 : i32
    %443 = vector.broadcast %c0_i32_196 : i32 to vector<32x1xi32>
    %444 = arith.cmpi sge, %442, %443 : vector<32x1xi32>
    %c-1_i32_197 = arith.constant -1 : i32
    %445 = vector.broadcast %c-1_i32_197 : i32 to vector<32x1xi32>
    %446 = arith.addi %16, %445 : vector<32x1xi32>
    %c16_i32_198 = arith.constant 16 : i32
    %447 = vector.broadcast %c16_i32_198 : i32 to vector<32x1xi32>
    %448 = arith.cmpi slt, %446, %447 : vector<32x1xi32>
    %449 = arith.andi %444, %448 : vector<32x1xi1>
    %450 = vector.extract_strided_slice %439 {offsets = [0, 0], sizes = [32, 128], strides = [1, 1]} : vector<34x128xf32> to vector<32x128xf32>
    %cst_199 = arith.constant 0.000000e+00 : f32
    %451 = vector.shape_cast %449 : vector<32x1xi1> to vector<32x1xi1>
    %452 = vector.broadcast %451 : vector<32x1xi1> to vector<32x128xi1>
    %453 = vector.broadcast %cst_199 : f32 to vector<32x128xf32>
    %454 = arith.select %452, %450, %453 : vector<32x128xi1>, vector<32x128xf32>
    %c0_200 = arith.constant 0 : index
    %c0_201 = arith.constant 0 : index
    %c0_202 = arith.constant 0 : index
    %455 = vector.load %arg13[%c0_200, %c0_201, %c0_202] : memref<3x128x128xf32, #tpu.memory_space<vmem>>, vector<1x128x128xf32>
    %456 = vector.shape_cast %455 : vector<1x128x128xf32> to vector<128x128xf32>
    %cst_203 = arith.constant dense<0.000000e+00> : vector<32x128xf32>
    %457 = tpu.matmul %454, %456, %cst_203 {dimension_numbers = #tpu.dot_dimension_numbers<[1], [0], [0], [1], [0, 0, 1, 1], [], []>} : vector<32x128xf32>, vector<128x128xf32>, vector<32x128xf32> -> vector<32x128xf32>
    %458 = arith.addf %440, %457 : vector<32x128xf32>
    %c0_i32_204 = arith.constant 0 : i32
    %459 = vector.broadcast %c0_i32_204 : i32 to vector<32x1xi32>
    %460 = arith.addi %16, %459 : vector<32x1xi32>
    %c0_i32_205 = arith.constant 0 : i32
    %461 = vector.broadcast %c0_i32_205 : i32 to vector<32x1xi32>
    %462 = arith.cmpi sge, %460, %461 : vector<32x1xi32>
    %c0_i32_206 = arith.constant 0 : i32
    %463 = vector.broadcast %c0_i32_206 : i32 to vector<32x1xi32>
    %464 = arith.addi %16, %463 : vector<32x1xi32>
    %c16_i32_207 = arith.constant 16 : i32
    %465 = vector.broadcast %c16_i32_207 : i32 to vector<32x1xi32>
    %466 = arith.cmpi slt, %464, %465 : vector<32x1xi32>
    %467 = arith.andi %462, %466 : vector<32x1xi1>
    %468 = vector.extract_strided_slice %439 {offsets = [1, 0], sizes = [32, 128], strides = [1, 1]} : vector<34x128xf32> to vector<32x128xf32>
    %cst_208 = arith.constant 0.000000e+00 : f32
    %469 = vector.shape_cast %467 : vector<32x1xi1> to vector<32x1xi1>
    %470 = vector.broadcast %469 : vector<32x1xi1> to vector<32x128xi1>
    %471 = vector.broadcast %cst_208 : f32 to vector<32x128xf32>
    %472 = arith.select %470, %468, %471 : vector<32x128xi1>, vector<32x128xf32>
    %c1_209 = arith.constant 1 : index
    %c0_210 = arith.constant 0 : index
    %c0_211 = arith.constant 0 : index
    %473 = vector.load %arg13[%c1_209, %c0_210, %c0_211] : memref<3x128x128xf32, #tpu.memory_space<vmem>>, vector<1x128x128xf32>
    %474 = vector.shape_cast %473 : vector<1x128x128xf32> to vector<128x128xf32>
    %cst_212 = arith.constant dense<0.000000e+00> : vector<32x128xf32>
    %475 = tpu.matmul %472, %474, %cst_212 {dimension_numbers = #tpu.dot_dimension_numbers<[1], [0], [0], [1], [0, 0, 1, 1], [], []>} : vector<32x128xf32>, vector<128x128xf32>, vector<32x128xf32> -> vector<32x128xf32>
    %476 = arith.addf %458, %475 : vector<32x128xf32>
    %c1_i32_213 = arith.constant 1 : i32
    %477 = vector.broadcast %c1_i32_213 : i32 to vector<32x1xi32>
    %478 = arith.addi %16, %477 : vector<32x1xi32>
    %c0_i32_214 = arith.constant 0 : i32
    %479 = vector.broadcast %c0_i32_214 : i32 to vector<32x1xi32>
    %480 = arith.cmpi sge, %478, %479 : vector<32x1xi32>
    %c1_i32_215 = arith.constant 1 : i32
    %481 = vector.broadcast %c1_i32_215 : i32 to vector<32x1xi32>
    %482 = arith.addi %16, %481 : vector<32x1xi32>
    %c16_i32_216 = arith.constant 16 : i32
    %483 = vector.broadcast %c16_i32_216 : i32 to vector<32x1xi32>
    %484 = arith.cmpi slt, %482, %483 : vector<32x1xi32>
    %485 = arith.andi %480, %484 : vector<32x1xi1>
    %486 = vector.extract_strided_slice %439 {offsets = [2, 0], sizes = [32, 128], strides = [1, 1]} : vector<34x128xf32> to vector<32x128xf32>
    %cst_217 = arith.constant 0.000000e+00 : f32
    %487 = vector.shape_cast %485 : vector<32x1xi1> to vector<32x1xi1>
    %488 = vector.broadcast %487 : vector<32x1xi1> to vector<32x128xi1>
    %489 = vector.broadcast %cst_217 : f32 to vector<32x128xf32>
    %490 = arith.select %488, %486, %489 : vector<32x128xi1>, vector<32x128xf32>
    %c2_218 = arith.constant 2 : index
    %c0_219 = arith.constant 0 : index
    %c0_220 = arith.constant 0 : index
    %491 = vector.load %arg13[%c2_218, %c0_219, %c0_220] : memref<3x128x128xf32, #tpu.memory_space<vmem>>, vector<1x128x128xf32>
    %492 = vector.shape_cast %491 : vector<1x128x128xf32> to vector<128x128xf32>
    %cst_221 = arith.constant dense<0.000000e+00> : vector<32x128xf32>
    %493 = tpu.matmul %490, %492, %cst_221 {dimension_numbers = #tpu.dot_dimension_numbers<[1], [0], [0], [1], [0, 0, 1, 1], [], []>} : vector<32x128xf32>, vector<128x128xf32>, vector<32x128xf32> -> vector<32x128xf32>
    %494 = arith.addf %476, %493 : vector<32x128xf32>
    %c0_222 = arith.constant 0 : index
    %c0_223 = arith.constant 0 : index
    %495 = vector.load %arg14[%c0_222, %c0_223] : memref<1x128xf32, #tpu.memory_space<vmem>>, vector<1x128xf32>
    %496 = vector.broadcast %495 : vector<1x128xf32> to vector<32x128xf32>
    %497 = arith.addf %494, %496 : vector<32x128xf32>
    %cst_224 = arith.constant dense<0.000000e+00> : vector<128xf32>
    %498 = vector.multi_reduction <add>, %497, %cst_224 [0] : vector<32x128xf32> to vector<128xf32>
    %499 = vector.shape_cast %498 : vector<128xf32> to vector<1x128xf32>
    %cst_225 = arith.constant dense<0.000000e+00> : vector<1x8xf32>
    %500 = tpu.matmul %499, %37, %cst_225 {dimension_numbers = #tpu.dot_dimension_numbers<[1], [0], [0], [1], [0, 0, 1, 1], [], []>} : vector<1x128xf32>, vector<128x8xf32>, vector<1x8xf32> -> vector<1x8xf32>
    %cst_226 = arith.constant 0.001953125 : f32
    %501 = vector.broadcast %cst_226 : f32 to vector<1x8xf32>
    %502 = arith.mulf %500, %501 : vector<1x8xf32>
    %cst_227 = arith.constant dense<0.000000e+00> : vector<1x128xf32>
    %503 = tpu.matmul %502, %58, %cst_227 {dimension_numbers = #tpu.dot_dimension_numbers<[1], [0], [0], [1], [0, 0, 1, 1], [], []>} : vector<1x8xf32>, vector<8x128xf32>, vector<1x128xf32> -> vector<1x128xf32>
    %504 = vector.broadcast %503 : vector<1x128xf32> to vector<32x128xf32>
    %505 = arith.subf %497, %504 : vector<32x128xf32>
    %506 = arith.mulf %505, %505 : vector<32x128xf32>
    %cst_228 = arith.constant dense<0.000000e+00> : vector<128xf32>
    %507 = vector.multi_reduction <add>, %506, %cst_228 [0] : vector<32x128xf32> to vector<128xf32>
    %508 = vector.shape_cast %507 : vector<128xf32> to vector<1x128xf32>
    %cst_229 = arith.constant dense<0.000000e+00> : vector<1x8xf32>
    %509 = tpu.matmul %508, %37, %cst_229 {dimension_numbers = #tpu.dot_dimension_numbers<[1], [0], [0], [1], [0, 0, 1, 1], [], []>} : vector<1x128xf32>, vector<128x8xf32>, vector<1x8xf32> -> vector<1x8xf32>
    %cst_230 = arith.constant 0.001953125 : f32
    %510 = vector.broadcast %cst_230 : f32 to vector<1x8xf32>
    %511 = arith.mulf %509, %510 : vector<1x8xf32>
    %c0_231 = arith.constant 0 : index
    %c0_232 = arith.constant 0 : index
    %512 = vector.load %arg15[%c0_231, %c0_232] : memref<1x8xf32, #tpu.memory_space<vmem>>, vector<1x8xf32>
    %cst_233 = arith.constant 9.99999974E-6 : f32
    %513 = vector.broadcast %cst_233 : f32 to vector<1x8xf32>
    %514 = arith.addf %511, %513 : vector<1x8xf32>
    %515 = math.rsqrt %514 : vector<1x8xf32>
    %516 = arith.mulf %512, %515 : vector<1x8xf32>
    %cst_234 = arith.constant dense<0.000000e+00> : vector<1x128xf32>
    %517 = tpu.matmul %516, %58, %cst_234 {dimension_numbers = #tpu.dot_dimension_numbers<[1], [0], [0], [1], [0, 0, 1, 1], [], []>} : vector<1x8xf32>, vector<8x128xf32>, vector<1x128xf32> -> vector<1x128xf32>
    %518 = vector.broadcast %517 : vector<1x128xf32> to vector<32x128xf32>
    %519 = arith.mulf %505, %518 : vector<32x128xf32>
    %c0_235 = arith.constant 0 : index
    %c0_236 = arith.constant 0 : index
    %520 = vector.load %arg16[%c0_235, %c0_236] : memref<1x8xf32, #tpu.memory_space<vmem>>, vector<1x8xf32>
    %cst_237 = arith.constant dense<0.000000e+00> : vector<1x128xf32>
    %521 = tpu.matmul %520, %58, %cst_237 {dimension_numbers = #tpu.dot_dimension_numbers<[1], [0], [0], [1], [0, 0, 1, 1], [], []>} : vector<1x8xf32>, vector<8x128xf32>, vector<1x128xf32> -> vector<1x128xf32>
    %522 = vector.broadcast %521 : vector<1x128xf32> to vector<32x128xf32>
    %523 = arith.addf %519, %522 : vector<32x128xf32>
    %cst_238 = arith.constant 0.000000e+00 : f32
    %524 = vector.broadcast %cst_238 : f32 to vector<32x128xf32>
    %525 = arith.maximumf %523, %524 : vector<32x128xf32>
    %cst_239 = arith.constant 0.000000e+00 : f32
    %526 = vector.broadcast %cst_239 : f32 to vector<1x128xf32>
    %527 = tpu.concatenate %526, %525, %526 in 0 : vector<1x128xf32>, vector<32x128xf32>, vector<1x128xf32> -> vector<34x128xf32>
    %cst_240 = arith.constant 0.000000e+00 : f32
    %528 = vector.broadcast %cst_240 : f32 to vector<32x128xf32>
    %c-1_i32_241 = arith.constant -1 : i32
    %529 = vector.broadcast %c-1_i32_241 : i32 to vector<32x1xi32>
    %530 = arith.addi %16, %529 : vector<32x1xi32>
    %c0_i32_242 = arith.constant 0 : i32
    %531 = vector.broadcast %c0_i32_242 : i32 to vector<32x1xi32>
    %532 = arith.cmpi sge, %530, %531 : vector<32x1xi32>
    %c-1_i32_243 = arith.constant -1 : i32
    %533 = vector.broadcast %c-1_i32_243 : i32 to vector<32x1xi32>
    %534 = arith.addi %16, %533 : vector<32x1xi32>
    %c16_i32_244 = arith.constant 16 : i32
    %535 = vector.broadcast %c16_i32_244 : i32 to vector<32x1xi32>
    %536 = arith.cmpi slt, %534, %535 : vector<32x1xi32>
    %537 = arith.andi %532, %536 : vector<32x1xi1>
    %538 = vector.extract_strided_slice %527 {offsets = [0, 0], sizes = [32, 128], strides = [1, 1]} : vector<34x128xf32> to vector<32x128xf32>
    %cst_245 = arith.constant 0.000000e+00 : f32
    %539 = vector.shape_cast %537 : vector<32x1xi1> to vector<32x1xi1>
    %540 = vector.broadcast %539 : vector<32x1xi1> to vector<32x128xi1>
    %541 = vector.broadcast %cst_245 : f32 to vector<32x128xf32>
    %542 = arith.select %540, %538, %541 : vector<32x128xi1>, vector<32x128xf32>
    %c0_246 = arith.constant 0 : index
    %c0_247 = arith.constant 0 : index
    %c0_248 = arith.constant 0 : index
    %543 = vector.load %arg17[%c0_246, %c0_247, %c0_248] : memref<3x128x128xf32, #tpu.memory_space<vmem>>, vector<1x128x128xf32>
    %544 = vector.shape_cast %543 : vector<1x128x128xf32> to vector<128x128xf32>
    %cst_249 = arith.constant dense<0.000000e+00> : vector<32x128xf32>
    %545 = tpu.matmul %542, %544, %cst_249 {dimension_numbers = #tpu.dot_dimension_numbers<[1], [0], [0], [1], [0, 0, 1, 1], [], []>} : vector<32x128xf32>, vector<128x128xf32>, vector<32x128xf32> -> vector<32x128xf32>
    %546 = arith.addf %528, %545 : vector<32x128xf32>
    %c0_i32_250 = arith.constant 0 : i32
    %547 = vector.broadcast %c0_i32_250 : i32 to vector<32x1xi32>
    %548 = arith.addi %16, %547 : vector<32x1xi32>
    %c0_i32_251 = arith.constant 0 : i32
    %549 = vector.broadcast %c0_i32_251 : i32 to vector<32x1xi32>
    %550 = arith.cmpi sge, %548, %549 : vector<32x1xi32>
    %c0_i32_252 = arith.constant 0 : i32
    %551 = vector.broadcast %c0_i32_252 : i32 to vector<32x1xi32>
    %552 = arith.addi %16, %551 : vector<32x1xi32>
    %c16_i32_253 = arith.constant 16 : i32
    %553 = vector.broadcast %c16_i32_253 : i32 to vector<32x1xi32>
    %554 = arith.cmpi slt, %552, %553 : vector<32x1xi32>
    %555 = arith.andi %550, %554 : vector<32x1xi1>
    %556 = vector.extract_strided_slice %527 {offsets = [1, 0], sizes = [32, 128], strides = [1, 1]} : vector<34x128xf32> to vector<32x128xf32>
    %cst_254 = arith.constant 0.000000e+00 : f32
    %557 = vector.shape_cast %555 : vector<32x1xi1> to vector<32x1xi1>
    %558 = vector.broadcast %557 : vector<32x1xi1> to vector<32x128xi1>
    %559 = vector.broadcast %cst_254 : f32 to vector<32x128xf32>
    %560 = arith.select %558, %556, %559 : vector<32x128xi1>, vector<32x128xf32>
    %c1_255 = arith.constant 1 : index
    %c0_256 = arith.constant 0 : index
    %c0_257 = arith.constant 0 : index
    %561 = vector.load %arg17[%c1_255, %c0_256, %c0_257] : memref<3x128x128xf32, #tpu.memory_space<vmem>>, vector<1x128x128xf32>
    %562 = vector.shape_cast %561 : vector<1x128x128xf32> to vector<128x128xf32>
    %cst_258 = arith.constant dense<0.000000e+00> : vector<32x128xf32>
    %563 = tpu.matmul %560, %562, %cst_258 {dimension_numbers = #tpu.dot_dimension_numbers<[1], [0], [0], [1], [0, 0, 1, 1], [], []>} : vector<32x128xf32>, vector<128x128xf32>, vector<32x128xf32> -> vector<32x128xf32>
    %564 = arith.addf %546, %563 : vector<32x128xf32>
    %c1_i32_259 = arith.constant 1 : i32
    %565 = vector.broadcast %c1_i32_259 : i32 to vector<32x1xi32>
    %566 = arith.addi %16, %565 : vector<32x1xi32>
    %c0_i32_260 = arith.constant 0 : i32
    %567 = vector.broadcast %c0_i32_260 : i32 to vector<32x1xi32>
    %568 = arith.cmpi sge, %566, %567 : vector<32x1xi32>
    %c1_i32_261 = arith.constant 1 : i32
    %569 = vector.broadcast %c1_i32_261 : i32 to vector<32x1xi32>
    %570 = arith.addi %16, %569 : vector<32x1xi32>
    %c16_i32_262 = arith.constant 16 : i32
    %571 = vector.broadcast %c16_i32_262 : i32 to vector<32x1xi32>
    %572 = arith.cmpi slt, %570, %571 : vector<32x1xi32>
    %573 = arith.andi %568, %572 : vector<32x1xi1>
    %574 = vector.extract_strided_slice %527 {offsets = [2, 0], sizes = [32, 128], strides = [1, 1]} : vector<34x128xf32> to vector<32x128xf32>
    %cst_263 = arith.constant 0.000000e+00 : f32
    %575 = vector.shape_cast %573 : vector<32x1xi1> to vector<32x1xi1>
    %576 = vector.broadcast %575 : vector<32x1xi1> to vector<32x128xi1>
    %577 = vector.broadcast %cst_263 : f32 to vector<32x128xf32>
    %578 = arith.select %576, %574, %577 : vector<32x128xi1>, vector<32x128xf32>
    %c2_264 = arith.constant 2 : index
    %c0_265 = arith.constant 0 : index
    %c0_266 = arith.constant 0 : index
    %579 = vector.load %arg17[%c2_264, %c0_265, %c0_266] : memref<3x128x128xf32, #tpu.memory_space<vmem>>, vector<1x128x128xf32>
    %580 = vector.shape_cast %579 : vector<1x128x128xf32> to vector<128x128xf32>
    %cst_267 = arith.constant dense<0.000000e+00> : vector<32x128xf32>
    %581 = tpu.matmul %578, %580, %cst_267 {dimension_numbers = #tpu.dot_dimension_numbers<[1], [0], [0], [1], [0, 0, 1, 1], [], []>} : vector<32x128xf32>, vector<128x128xf32>, vector<32x128xf32> -> vector<32x128xf32>
    %582 = arith.addf %564, %581 : vector<32x128xf32>
    %c0_268 = arith.constant 0 : index
    %c0_269 = arith.constant 0 : index
    %583 = vector.load %arg18[%c0_268, %c0_269] : memref<1x128xf32, #tpu.memory_space<vmem>>, vector<1x128xf32>
    %584 = vector.broadcast %583 : vector<1x128xf32> to vector<32x128xf32>
    %585 = arith.addf %582, %584 : vector<32x128xf32>
    %cst_270 = arith.constant dense<0.000000e+00> : vector<128xf32>
    %586 = vector.multi_reduction <add>, %585, %cst_270 [0] : vector<32x128xf32> to vector<128xf32>
    %587 = vector.shape_cast %586 : vector<128xf32> to vector<1x128xf32>
    %cst_271 = arith.constant dense<0.000000e+00> : vector<1x8xf32>
    %588 = tpu.matmul %587, %37, %cst_271 {dimension_numbers = #tpu.dot_dimension_numbers<[1], [0], [0], [1], [0, 0, 1, 1], [], []>} : vector<1x128xf32>, vector<128x8xf32>, vector<1x8xf32> -> vector<1x8xf32>
    %cst_272 = arith.constant 0.001953125 : f32
    %589 = vector.broadcast %cst_272 : f32 to vector<1x8xf32>
    %590 = arith.mulf %588, %589 : vector<1x8xf32>
    %cst_273 = arith.constant dense<0.000000e+00> : vector<1x128xf32>
    %591 = tpu.matmul %590, %58, %cst_273 {dimension_numbers = #tpu.dot_dimension_numbers<[1], [0], [0], [1], [0, 0, 1, 1], [], []>} : vector<1x8xf32>, vector<8x128xf32>, vector<1x128xf32> -> vector<1x128xf32>
    %592 = vector.broadcast %591 : vector<1x128xf32> to vector<32x128xf32>
    %593 = arith.subf %585, %592 : vector<32x128xf32>
    %594 = arith.mulf %593, %593 : vector<32x128xf32>
    %cst_274 = arith.constant dense<0.000000e+00> : vector<128xf32>
    %595 = vector.multi_reduction <add>, %594, %cst_274 [0] : vector<32x128xf32> to vector<128xf32>
    %596 = vector.shape_cast %595 : vector<128xf32> to vector<1x128xf32>
    %cst_275 = arith.constant dense<0.000000e+00> : vector<1x8xf32>
    %597 = tpu.matmul %596, %37, %cst_275 {dimension_numbers = #tpu.dot_dimension_numbers<[1], [0], [0], [1], [0, 0, 1, 1], [], []>} : vector<1x128xf32>, vector<128x8xf32>, vector<1x8xf32> -> vector<1x8xf32>
    %cst_276 = arith.constant 0.001953125 : f32
    %598 = vector.broadcast %cst_276 : f32 to vector<1x8xf32>
    %599 = arith.mulf %597, %598 : vector<1x8xf32>
    %c0_277 = arith.constant 0 : index
    %c0_278 = arith.constant 0 : index
    %600 = vector.load %arg19[%c0_277, %c0_278] : memref<1x8xf32, #tpu.memory_space<vmem>>, vector<1x8xf32>
    %cst_279 = arith.constant 9.99999974E-6 : f32
    %601 = vector.broadcast %cst_279 : f32 to vector<1x8xf32>
    %602 = arith.addf %599, %601 : vector<1x8xf32>
    %603 = math.rsqrt %602 : vector<1x8xf32>
    %604 = arith.mulf %600, %603 : vector<1x8xf32>
    %cst_280 = arith.constant dense<0.000000e+00> : vector<1x128xf32>
    %605 = tpu.matmul %604, %58, %cst_280 {dimension_numbers = #tpu.dot_dimension_numbers<[1], [0], [0], [1], [0, 0, 1, 1], [], []>} : vector<1x8xf32>, vector<8x128xf32>, vector<1x128xf32> -> vector<1x128xf32>
    %606 = vector.broadcast %605 : vector<1x128xf32> to vector<32x128xf32>
    %607 = arith.mulf %593, %606 : vector<32x128xf32>
    %c0_281 = arith.constant 0 : index
    %c0_282 = arith.constant 0 : index
    %608 = vector.load %arg20[%c0_281, %c0_282] : memref<1x8xf32, #tpu.memory_space<vmem>>, vector<1x8xf32>
    %cst_283 = arith.constant dense<0.000000e+00> : vector<1x128xf32>
    %609 = tpu.matmul %608, %58, %cst_283 {dimension_numbers = #tpu.dot_dimension_numbers<[1], [0], [0], [1], [0, 0, 1, 1], [], []>} : vector<1x8xf32>, vector<8x128xf32>, vector<1x128xf32> -> vector<1x128xf32>
    %610 = vector.broadcast %609 : vector<1x128xf32> to vector<32x128xf32>
    %611 = arith.addf %607, %610 : vector<32x128xf32>
    %cst_284 = arith.constant 0.000000e+00 : f32
    %612 = vector.broadcast %cst_284 : f32 to vector<32x128xf32>
    %613 = arith.maximumf %611, %612 : vector<32x128xf32>
    %c0_285 = arith.constant 0 : index
    %c0_286 = arith.constant 0 : index
    %614 = vector.load %arg21[%c0_285, %c0_286] : memref<128x512xf32, #tpu.memory_space<vmem>>, vector<128x512xf32>
    %cst_287 = arith.constant dense<0.000000e+00> : vector<32x512xf32>
    %615 = tpu.matmul %613, %614, %cst_287 {dimension_numbers = #tpu.dot_dimension_numbers<[1], [0], [0], [1], [0, 0, 1, 1], [], []>} : vector<32x128xf32>, vector<128x512xf32>, vector<32x512xf32> -> vector<32x512xf32>
    %c0_288 = arith.constant 0 : index
    %c0_289 = arith.constant 0 : index
    %616 = vector.load %arg22[%c0_288, %c0_289] : memref<1x512xf32, #tpu.memory_space<vmem>>, vector<1x512xf32>
    %617 = vector.broadcast %616 : vector<1x512xf32> to vector<32x512xf32>
    %618 = arith.addf %615, %617 : vector<32x512xf32>
    %cst_290 = arith.constant dense<0.000000e+00> : vector<512xf32>
    %619 = vector.multi_reduction <add>, %618, %cst_290 [0] : vector<32x512xf32> to vector<512xf32>
    %620 = vector.shape_cast %619 : vector<512xf32> to vector<1x512xf32>
    %cst_291 = arith.constant dense<0.000000e+00> : vector<1x8xf32>
    %621 = tpu.matmul %620, %79, %cst_291 {dimension_numbers = #tpu.dot_dimension_numbers<[1], [0], [0], [1], [0, 0, 1, 1], [], []>} : vector<1x512xf32>, vector<512x8xf32>, vector<1x8xf32> -> vector<1x8xf32>
    %cst_292 = arith.constant 4.8828125E-4 : f32
    %622 = vector.broadcast %cst_292 : f32 to vector<1x8xf32>
    %623 = arith.mulf %621, %622 : vector<1x8xf32>
    %cst_293 = arith.constant dense<0.000000e+00> : vector<1x512xf32>
    %624 = tpu.matmul %623, %100, %cst_293 {dimension_numbers = #tpu.dot_dimension_numbers<[1], [0], [0], [1], [0, 0, 1, 1], [], []>} : vector<1x8xf32>, vector<8x512xf32>, vector<1x512xf32> -> vector<1x512xf32>
    %625 = vector.broadcast %624 : vector<1x512xf32> to vector<32x512xf32>
    %626 = arith.subf %618, %625 : vector<32x512xf32>
    %627 = arith.mulf %626, %626 : vector<32x512xf32>
    %cst_294 = arith.constant dense<0.000000e+00> : vector<512xf32>
    %628 = vector.multi_reduction <add>, %627, %cst_294 [0] : vector<32x512xf32> to vector<512xf32>
    %629 = vector.shape_cast %628 : vector<512xf32> to vector<1x512xf32>
    %cst_295 = arith.constant dense<0.000000e+00> : vector<1x8xf32>
    %630 = tpu.matmul %629, %79, %cst_295 {dimension_numbers = #tpu.dot_dimension_numbers<[1], [0], [0], [1], [0, 0, 1, 1], [], []>} : vector<1x512xf32>, vector<512x8xf32>, vector<1x8xf32> -> vector<1x8xf32>
    %cst_296 = arith.constant 4.8828125E-4 : f32
    %631 = vector.broadcast %cst_296 : f32 to vector<1x8xf32>
    %632 = arith.mulf %630, %631 : vector<1x8xf32>
    %c0_297 = arith.constant 0 : index
    %c0_298 = arith.constant 0 : index
    %633 = vector.load %arg23[%c0_297, %c0_298] : memref<1x8xf32, #tpu.memory_space<vmem>>, vector<1x8xf32>
    %cst_299 = arith.constant 9.99999974E-6 : f32
    %634 = vector.broadcast %cst_299 : f32 to vector<1x8xf32>
    %635 = arith.addf %632, %634 : vector<1x8xf32>
    %636 = math.rsqrt %635 : vector<1x8xf32>
    %637 = arith.mulf %633, %636 : vector<1x8xf32>
    %cst_300 = arith.constant dense<0.000000e+00> : vector<1x512xf32>
    %638 = tpu.matmul %637, %100, %cst_300 {dimension_numbers = #tpu.dot_dimension_numbers<[1], [0], [0], [1], [0, 0, 1, 1], [], []>} : vector<1x8xf32>, vector<8x512xf32>, vector<1x512xf32> -> vector<1x512xf32>
    %639 = vector.broadcast %638 : vector<1x512xf32> to vector<32x512xf32>
    %640 = arith.mulf %626, %639 : vector<32x512xf32>
    %c0_301 = arith.constant 0 : index
    %c0_302 = arith.constant 0 : index
    %641 = vector.load %arg24[%c0_301, %c0_302] : memref<1x8xf32, #tpu.memory_space<vmem>>, vector<1x8xf32>
    %cst_303 = arith.constant dense<0.000000e+00> : vector<1x512xf32>
    %642 = tpu.matmul %641, %100, %cst_303 {dimension_numbers = #tpu.dot_dimension_numbers<[1], [0], [0], [1], [0, 0, 1, 1], [], []>} : vector<1x8xf32>, vector<8x512xf32>, vector<1x512xf32> -> vector<1x512xf32>
    %643 = vector.broadcast %642 : vector<1x512xf32> to vector<32x512xf32>
    %644 = arith.addf %640, %643 : vector<32x512xf32>
    %cst_304 = arith.constant 0.000000e+00 : f32
    %645 = vector.broadcast %cst_304 : f32 to vector<32x512xf32>
    %646 = arith.subf %645, %644 : vector<32x512xf32>
    %647 = math.exp %646 : vector<32x512xf32>
    %cst_305 = arith.constant 1.000000e+00 : f32
    %648 = vector.broadcast %cst_305 : f32 to vector<32x512xf32>
    %649 = arith.addf %648, %647 : vector<32x512xf32>
    %cst_306 = arith.constant 1.000000e+00 : f32
    %650 = vector.broadcast %cst_306 : f32 to vector<32x512xf32>
    %651 = arith.divf %650, %649 : vector<32x512xf32>
    %c0_307 = arith.constant 0 : index
    %c0_308 = arith.constant 0 : index
    %652 = vector.load %arg25[%c0_307, %c0_308] : memref<32x512xf32, #tpu.memory_space<vmem>>, vector<32x512xf32>
    tpu.vector_store %arg25[%c0_307, %c0_308], %651 {strides = array<i32>} : memref<32x512xf32, #tpu.memory_space<vmem>>, vector<32x512xf32>,
    return
  }
}

</mosaic_0001>

<bundles_post_ra>
// kernel: tile.33
= control target key start
LH: loop header
LB: loop body
LE: loop exit
PB: predicated region body
PF: predicated region fallthrough
CT: control target
= control target key end

     0   :  { %s28_s0 = inlined_call_operand.vmem [shape: f32[8], index: 0, kind: input, shape index: {}]   ;;  %s29_s1 = inlined_call_operand.vmem [shape: f32[16,8], index: 1, kind: output, shape index: {}]  }
   0x1   :  { %v4_v0 = vld [vmem:[%s28_s0] ss:$0 sm:$0xff] }
   0x2   :  { %5 = vst [vmem:[%s29_s1] sm:$0xff] %v4_v0  ;;  %8 = vst [vmem:[%s29_s1 + $0x8] sm:$0xff] %v4_v0 }

// kernel: tile.34
= control target key start
LH: loop header
LB: loop body
LE: loop exit
PB: predicated region body
PF: predicated region fallthrough
CT: control target
= control target key end

     0   :  { %s131_s10 = smov 120   ;;  %s132_s11 = smov 104   ;;  %vm3_vm0 = vcmask 64512   ;;  %vm9_vm1 = vcmask 1048512   ;;  %vm15_vm2 = vcmask 982912   ;;  %vm21_vm3 = vcmask 917312   ;;  %s207_s0 = inlined_call_operand.vmem [shape: f32[16,8], index: 0, kind: input, shape index: {}]   ;;  %s208_s1 = inlined_call_operand.vmem [shape: f32[1,128], index: 1, kind: output, shape index: {}]  }
   0x1   :  { %v101_v0 = vld [vmem:[%s207_s0 + $0xf] sm:$0x1]   ;;  %v103_v1 = vld [vmem:[%s207_s0 + $0xd] sm:$0x1]   ;;  %v102_v2 = vld [vmem:[%s207_s0 + $0xe] sm:$0x1]  }
   0x2   :  { %7 = vrot.lane.b32.xlu0 %v101_v0, %s131_s10  ;;  %19 = vrot.lane.b32.xlu1 %v103_v1, %s132_s11  ;;  %v104_v3 = vld [vmem:[%s207_s0 + $0xc] sm:$0x1]   ;;  %s133_s16 = smov 112   ;;  %s134_s17 = smov 96   ;;  %v105_v4 = vld [vmem:[%s207_s0 + $0xb] sm:$0x1]  }
   0x3   :  { %v106_v5 = vld [vmem:[%s207_s0 + $0xa] sm:$0x1]   ;;  %v2_v6 = vld [vmem:[%s207_s0] sm:$0x1]   ;;  %s135_s24 = smov 88   ;;  %s136_s25 = smov 80  }
   0x4   :  { %4 = vst.msk [vmem:[#allocation0] sm:$0x1] %vm3_vm0, %v2_v6   ;;  %v107_v7 = vld [vmem:[%s207_s0 + $0x9] sm:$0x1]   ;;  %v108_v8 = vld [vmem:[%s207_s0 + $0x8] sm:$0x1]  }
   0x5   :  { %s137_s30 = smov 72   ;;  %s138_s2 = smov 64   ;;  %v109_v9 = vld [vmem:[%s207_s0 + $0x7] sm:$0x1]   ;;  %v110_v10 = vld [vmem:[%s207_s0 + $0x6] sm:$0x1]  }
   0x6   :  { %13 = vrot.lane.b32.xlu0 %v102_v2, %s133_s16  ;;  %25 = vrot.lane.b32.xlu1 %v104_v3, %s134_s17  ;;  %s139_s7 = smov 56   ;;  %s140_s8 = smov 48   ;;  %v111_v11 = vld [vmem:[%s207_s0 + $0x5] sm:$0x1]   ;;  %v112_v12 = vld [vmem:[%s207_s0 + $0x4] sm:$0x1]  }
   0x7   :  { %s141_s13 = smov 40   ;;  %s142_s14 = smov 32   ;;  %v113_v13 = vld [vmem:[%s207_s0 + $0x3] sm:$0x1]   ;;  %v114_v14 = vld [vmem:[%s207_s0 + $0x2] sm:$0x1]  }
   0x8   :  { %s143_s19 = smov 24   ;;  %s144_s20 = smov 16   ;;  %v115_v15 = vld [vmem:[%s207_s0 + $0x1] sm:$0x1]   ;;  %vm27_vm4 = vcmask 851712   ;;  %vm33_vm5 = vcmask 786112  }
   0x9   :  { %s145_s0 = smov 8   ;;  %vm39_vm6 = vcmask 720512   ;;  %vm45_vm7 = vcmask 654912   ;;  %vm51_vm8 = vcmask 589312   ;;  %vm57_vm9 = vcmask 523712  }
   0xa   :  { %31 = vrot.lane.b32.xlu0 %v105_v4, %s135_s24  ;;  %37 = vrot.lane.b32.xlu1 %v106_v5, %s136_s25  ;;  %vm63_vm10 = vcmask 458112   ;;  %vm69_vm11 = vcmask 392512   ;;  %vm75_vm12 = vcmask 326912   ;;  %vm81_vm13 = vcmask 261312  }
   0xb   :  { %vm87_vm14 = vcmask 195712   ;;  %vm93_vm15 = vcmask 130112  }
   0xe   :  { %43 = vrot.lane.b32.xlu0 %v107_v7, %s137_s30  ;;  %49 = vrot.lane.b32.xlu1 %v108_v8, %s138_s2 }
  0x12   :  { %55 = vrot.lane.b32.xlu0 %v109_v9, %s139_s7  ;;  %61 = vrot.lane.b32.xlu1 %v110_v10, %s140_s8 }
  0x16   :  { %67 = vrot.lane.b32.xlu0 %v111_v11, %s141_s13  ;;  %73 = vrot.lane.b32.xlu1 %v112_v12, %s142_s14 }
  0x1a   :  { %79 = vrot.lane.b32.xlu0 %v113_v13, %s143_s19  ;;  %85 = vrot.lane.b32.xlu1 %v114_v14, %s144_s20 }
  0x1e   :  { %91 = vrot.lane.b32.xlu0 %v115_v15, %s145_s0 }
  0x74   :  { %v8_v16 = vpop.permute.xlu0 %7   ;;  %v20_v17 = vpop.permute.xlu1 %19  }
  0x75   :  { %10 = vst.msk [vmem:[#allocation0] sm:$0x1] %vm9_vm1, %v8_v16  }
  0x78   :  { %v14_v18 = vpop.permute.xlu0 %13   ;;  %v26_v19 = vpop.permute.xlu1 %25  }
  0x79   :  { %16 = vst.msk [vmem:[#allocation0] sm:$0x1] %vm15_vm2, %v14_v18  }
  0x7a   :  { %22 = vst.msk [vmem:[#allocation0] sm:$0x1] %vm21_vm3, %v20_v17  }
  0x7b   :  { %28 = vst.msk [vmem:[#allocation0] sm:$0x1] %vm27_vm4, %v26_v19  }
  0x7c   :  { %v32_v20 = vpop.permute.xlu0 %31   ;;  %v38_v21 = vpop.permute.xlu1 %37  }
  0x7d   :  { %34 = vst.msk [vmem:[#allocation0] sm:$0x1] %vm33_vm5, %v32_v20  }
  0x7e   :  { %40 = vst.msk [vmem:[#allocation0] sm:$0x1] %vm39_vm6, %v38_v21  }
  0x80   :  { %v44_v22 = vpop.permute.xlu0 %43   ;;  %v50_v23 = vpop.permute.xlu1 %49  }
  0x81   :  { %46 = vst.msk [vmem:[#allocation0] sm:$0x1] %vm45_vm7, %v44_v22  }
  0x82   :  { %52 = vst.msk [vmem:[#allocation0] sm:$0x1] %vm51_vm8, %v50_v23  }
  0x84   :  { %v56_v24 = vpop.permute.xlu0 %55   ;;  %v62_v25 = vpop.permute.xlu1 %61  }
  0x85   :  { %58 = vst.msk [vmem:[#allocation0] sm:$0x1] %vm57_vm9, %v56_v24  }
  0x86   :  { %64 = vst.msk [vmem:[#allocation0] sm:$0x1] %vm63_vm10, %v62_v25  }
  0x88   :  { %v68_v26 = vpop.permute.xlu0 %67   ;;  %v74_v27 = vpop.permute.xlu1 %73  }
  0x89   :  { %70 = vst.msk [vmem:[#allocation0] sm:$0x1] %vm69_vm11, %v68_v26  }
  0x8a   :  { %76 = vst.msk [vmem:[#allocation0] sm:$0x1] %vm75_vm12, %v74_v27  }
  0x8c   :  { %v80_v28 = vpop.permute.xlu0 %79   ;;  %v86_v29 = vpop.permute.xlu1 %85  }
  0x8d   :  { %82 = vst.msk [vmem:[#allocation0] sm:$0x1] %vm81_vm13, %v80_v28  }
  0x8e   :  { %88 = vst.msk [vmem:[#allocation0] sm:$0x1] %vm87_vm14, %v86_v29  }
  0x90   :  { %v92_v30 = vpop.permute.xlu0 %91  }
  0x91   :  { %94 = vst.msk [vmem:[#allocation0] sm:$0x1] %vm93_vm15, %v92_v30  }
  0x98   :  { %v98_v31 = vld [vmem:[#allocation0] sm:$0x1] }
  0x99   :  { %100 = vst [vmem:[%s208_s1] sm:$0x1] %v98_v31 }

// kernel: tile.58
= control target key start
LH: loop header
LB: loop body
LE: loop exit
PB: predicated region body
PF: predicated region fallthrough
CT: control target
= control target key end

     0   :  { %s64_s0 = inlined_call_operand.vmem [shape: f32[8], index: 0, kind: input, shape index: {}]   ;;  %s65_s1 = inlined_call_operand.vmem [shape: f32[64,8], index: 1, kind: output, shape index: {}]  }
   0x1   :  { %v4_v0 = vld [vmem:[%s64_s0] ss:$0 sm:$0xff] }
   0x2   :  { %5 = vst [vmem:[%s65_s1] sm:$0xff] %v4_v0  ;;  %20 = vst [vmem:[%s65_s1 + $0x8] sm:$0xff] %v4_v0 }
   0x3   :  { %21 = vst [vmem:[%s65_s1 + $0x10] sm:$0xff] %v4_v0  ;;  %22 = vst [vmem:[%s65_s1 + $0x18] sm:$0xff] %v4_v0 }
   0x4   :  { %23 = vst [vmem:[%s65_s1 + $0x20] sm:$0xff] %v4_v0  ;;  %24 = vst [vmem:[%s65_s1 + $0x28] sm:$0xff] %v4_v0 }
   0x5   :  { %25 = vst [vmem:[%s65_s1 + $0x30] sm:$0xff] %v4_v0  ;;  %26 = vst [vmem:[%s65_s1 + $0x38] sm:$0xff] %v4_v0 }

// kernel: tile.59
= control target key start
LH: loop header
LB: loop body
LE: loop exit
PB: predicated region body
PF: predicated region fallthrough
CT: control target
= control target key end

     0   :  { %vm6_vm0 = vcmask 1043458   ;;  %s11_s6 = smov 3  ;;  %s14_s7 = smov 12  ;;  %vm8_vm1 = vcmask 64512   ;;  %vm20_vm2 = vcmask 1048512   ;;  %vm32_vm3 = vcmask 982912   ;;  %s412_s0 = inlined_call_operand.vmem [shape: f32[64,8], index: 0, kind: input, shape index: {}]   ;;  %s413_s1 = inlined_call_operand.vmem [shape: f32[1,512], index: 1, kind: output, shape index: {}]  }
   0x1   :  { %v215_v0 = vld [vmem:[%s412_s0 + $0xf] ss:$16 sm:%s11_s6]   ;;  %s35_s12 = smov 3  ;;  %s38_s15 = smov 12  ;;  %vm44_vm4 = vcmask 917312   ;;  %vm56_vm5 = vcmask 851712  }
   0x2   :  { %v216_v1 = vld [vmem:[%s412_s0 + $0xf] ss:$16 sm:%s14_s7]   ;;  %v219_v3 = vld [vmem:[%s412_s0 + $0xd] ss:$16 sm:%s35_s12]   ;;  %s263_s16 = smov 120   ;;  %s23_s19 = smov 3 }
   0x3   :  { %v17_v2 = vsel %vm6_vm0, %v216_v1, %v215_v0  ;;  %v220_v4 = vld [vmem:[%s412_s0 + $0xd] ss:$16 sm:%s38_s15]   ;;  %s26_s20 = smov 12  ;;  %v217_v6 = vld [vmem:[%s412_s0 + $0xe] ss:$16 sm:%s23_s19]   ;;  %s47_s25 = smov 3 }
   0x4   :  { %18 = vrot.lane.b32.xlu0 %v17_v2, %s263_s16  ;;  %v41_v5 = vsel %vm6_vm0, %v220_v4, %v219_v3  ;;  %v218_v7 = vld [vmem:[%s412_s0 + $0xe] ss:$16 sm:%s26_s20]   ;;  %s264_s26 = smov 104   ;;  %s50_s29 = smov 12  ;;  %vm68_vm6 = vcmask 786112   ;;  %vm80_vm7 = vcmask 720512  }
   0x5   :  { %42 = vrot.lane.b32.xlu1 %v41_v5, %s264_s26  ;;  %v29_v8 = vsel %vm6_vm0, %v218_v7, %v217_v6  ;;  %v221_v9 = vld [vmem:[%s412_s0 + $0xc] ss:$16 sm:%s47_s25]   ;;  %s59_s3 = smov 3  ;;  %s62_s4 = smov 12  ;;  %vm92_vm8 = vcmask 654912   ;;  %vm104_vm9 = vcmask 589312  }
   0x6   :  { %v222_v10 = vld [vmem:[%s412_s0 + $0xc] ss:$16 sm:%s50_s29]   ;;  %s265_s5 = smov 112   ;;  %v223_v12 = vld [vmem:[%s412_s0 + $0xb] ss:$16 sm:%s59_s3]   ;;  %s71_s8 = smov 3 }
   0x7   :  { %v53_v11 = vsel %vm6_vm0, %v222_v10, %v221_v9  ;;  %v224_v13 = vld [vmem:[%s412_s0 + $0xb] ss:$16 sm:%s62_s4]   ;;  %v225_v14 = vld [vmem:[%s412_s0 + $0xa] ss:$16 sm:%s71_s8]   ;;  %s74_s13 = smov 12  ;;  %s266_s14 = smov 96  }
   0x8   :  { %30 = vrot.lane.b32.xlu0 %v29_v8, %s265_s5  ;;  %v65_v15 = vsel %vm6_vm0, %v224_v13, %v223_v12  ;;  %v226_v16 = vld [vmem:[%s412_s0 + $0xa] ss:$16 sm:%s74_s13]   ;;  %s83_s17 = smov 3  ;;  %s86_s18 = smov 12  ;;  %vm116_vm10 = vcmask 523712   ;;  %vm128_vm11 = vcmask 458112  }
   0x9   :  { %54 = vrot.lane.b32.xlu1 %v53_v11, %s266_s14  ;;  %v77_v17 = vsel %vm6_vm0, %v226_v16, %v225_v14  ;;  %v227_v18 = vld [vmem:[%s412_s0 + $0x9] ss:$16 sm:%s83_s17]   ;;  %s95_s23 = smov 3  ;;  %s267_s24 = smov 88   ;;  %vm140_vm12 = vcmask 392512   ;;  %vm152_vm13 = vcmask 326912  }
   0xa   :  { %v228_v19 = vld [vmem:[%s412_s0 + $0x9] ss:$16 sm:%s86_s18]   ;;  %v229_v20 = vld [vmem:[%s412_s0 + $0x8] ss:$16 sm:%s95_s23]   ;;  %s98_s27 = smov 12  ;;  %s107_s30 = smov 3 }
   0xb   :  { %v89_v21 = vsel %vm6_vm0, %v228_v19, %v227_v18  ;;  %v230_v22 = vld [vmem:[%s412_s0 + $0x8] ss:$16 sm:%s98_s27]   ;;  %s110_s2 = smov 12  ;;  %s268_s3 = smov 80   ;;  %v231_v23 = vld [vmem:[%s412_s0 + $0x7] ss:$16 sm:%s107_s30]  }
   0xc   :  { %66 = vrot.lane.b32.xlu0 %v65_v15, %s267_s24  ;;  %s119_s6 = smov 3  ;;  %v101_v24 = vsel %vm6_vm0, %v230_v22, %v229_v20  ;;  %v232_v25 = vld [vmem:[%s412_s0 + $0x7] ss:$16 sm:%s110_s2]   ;;  %s122_s11 = smov 12  ;;  %vm164_vm14 = vcmask 261312   ;;  %vm176_vm15 = vcmask 195712  }
   0xd   :  { %78 = vrot.lane.b32.xlu1 %v77_v17, %s268_s3  ;;  %v233_v26 = vld [vmem:[%s412_s0 + $0x6] ss:$16 sm:%s119_s6]   ;;  %s269_s12 = smov 72   ;;  %s131_s15 = smov 3  ;;  %v113_v28 = vsel %vm6_vm0, %v232_v25, %v231_v23 }
   0xe   :  { %v234_v27 = vld [vmem:[%s412_s0 + $0x6] ss:$16 sm:%s122_s11]   ;;  %s134_s16 = smov 12  ;;  %v235_v29 = vld [vmem:[%s412_s0 + $0x5] ss:$16 sm:%s131_s15]   ;;  %s143_s19 = smov 3 }
   0xf   :  { %s270_s20 = smov 64   ;;  %v236_v30 = vld [vmem:[%s412_s0 + $0x5] ss:$16 sm:%s134_s16]   ;;  %s146_s23 = smov 12  ;;  %v125_v31 = vsel %vm6_vm0, %v234_v27, %v233_v26  ;;  %v237_v32 = vld [vmem:[%s412_s0 + $0x4] ss:$16 sm:%s143_s19]  }
  0x10   :  { %90 = vrot.lane.b32.xlu0 %v89_v21, %s269_s12  ;;  %s155_s26 = smov 3  ;;  %s158_s27 = smov 12  ;;  %v238_v33 = vld [vmem:[%s412_s0 + $0x4] ss:$16 sm:%s146_s23]   ;;  %v137_v34 = vsel %vm6_vm0, %v236_v30, %v235_v29 }
  0x11   :  { %102 = vrot.lane.b32.xlu1 %v101_v24, %s270_s20  ;;  %s271_s28 = smov 56   ;;  %s167_s2 = smov 3  ;;  %v239_v35 = vld [vmem:[%s412_s0 + $0x3] ss:$16 sm:%s155_s26]   ;;  %v149_v37 = vsel %vm6_vm0, %v238_v33, %v237_v32 }
  0x12   :  { %s170_s5 = smov 12  ;;  %s272_s6 = smov 48   ;;  %v240_v36 = vld [vmem:[%s412_s0 + $0x3] ss:$16 sm:%s158_s27]   ;;  %v241_v38 = vld [vmem:[%s412_s0 + $0x2] ss:$16 sm:%s167_s2]  }
  0x13   :  { %s179_s9 = smov 3  ;;  %v242_v39 = vld [vmem:[%s412_s0 + $0x2] ss:$16 sm:%s170_s5]   ;;  %s182_s14 = smov 12  ;;  %v161_v41 = vsel %vm6_vm0, %v240_v36, %v239_v35 }
  0x14   :  { %114 = vrot.lane.b32.xlu0 %v113_v28, %s271_s28  ;;  %s2_s15 = smov 3  ;;  %s273_s16 = smov 40   ;;  %v243_v42 = vld [vmem:[%s412_s0 + $0x1] ss:$16 sm:%s179_s9]   ;;  %v173_v46 = vsel %vm6_vm0, %v242_v39, %v241_v38 }
  0x15   :  { %126 = vrot.lane.b32.xlu1 %v125_v31, %s272_s6  ;;  %v3_v40 = vld [vmem:[%s412_s0] ss:$16 sm:%s2_s15]   ;;  %s4_s19 = smov 12  ;;  %s274_s24 = smov 32  }
  0x16   :  { %v5_v43 = vld [vmem:[%s412_s0] ss:$16 sm:%s4_s19]   ;;  %v244_v44 = vld [vmem:[%s412_s0 + $0x1] ss:$16 sm:%s182_s14]   ;;  %s275_s0 = smov 24   ;;  %s276_s27 = smov 16  }
  0x17   :  { %v7_v45 = vsel %vm6_vm0, %v5_v43, %v3_v40  ;;  %v185_v47 = vsel %vm6_vm0, %v244_v44, %v243_v42  ;;  %s277_s28 = smov 8   ;;  %vm188_vm0 = vcmask 130112  }
  0x18   :  { %138 = vrot.lane.b32.xlu0 %v137_v34, %s273_s16  ;;  %9 = vst.msk [vmem:[#allocation0] ss:$8 sm:$0xf] %vm8_vm1, %v7_v45  }
  0x19   :  { %150 = vrot.lane.b32.xlu1 %v149_v37, %s274_s24 }
  0x1c   :  { %162 = vrot.lane.b32.xlu0 %v161_v41, %s275_s0 }
  0x1d   :  { %174 = vrot.lane.b32.xlu1 %v173_v46, %s276_s27 }
  0x20   :  { %186 = vrot.lane.b32.xlu0 %v185_v47, %s277_s28 }
  0x76   :  { %v19_v48 = vpop.permute.xlu0 %18  }
  0x77   :  { %21 = vst.msk [vmem:[#allocation0] ss:$8 sm:$0xf] %vm20_vm2, %v19_v48   ;;  %v43_v49 = vpop.permute.xlu1 %42  }
  0x7a   :  { %v31_v50 = vpop.permute.xlu0 %30  }
  0x7b   :  { %33 = vst.msk [vmem:[#allocation0] ss:$8 sm:$0xf] %vm32_vm3, %v31_v50   ;;  %v55_v51 = vpop.permute.xlu1 %54  }
  0x7c   :  { %45 = vst.msk [vmem:[#allocation0] ss:$8 sm:$0xf] %vm44_vm4, %v43_v49  }
  0x7d   :  { %57 = vst.msk [vmem:[#allocation0] ss:$8 sm:$0xf] %vm56_vm5, %v55_v51  }
  0x7e   :  { %v67_v52 = vpop.permute.xlu0 %66  }
  0x7f   :  { %69 = vst.msk [vmem:[#allocation0] ss:$8 sm:$0xf] %vm68_vm6, %v67_v52   ;;  %v79_v53 = vpop.permute.xlu1 %78  }
  0x80   :  { %81 = vst.msk [vmem:[#allocation0] ss:$8 sm:$0xf] %vm80_vm7, %v79_v53  }
  0x82   :  { %v91_v54 = vpop.permute.xlu0 %90  }
  0x83   :  { %93 = vst.msk [vmem:[#allocation0] ss:$8 sm:$0xf] %vm92_vm8, %v91_v54   ;;  %v103_v55 = vpop.permute.xlu1 %102  }
  0x84   :  { %105 = vst.msk [vmem:[#allocation0] ss:$8 sm:$0xf] %vm104_vm9, %v103_v55  }
  0x86   :  { %v115_v56 = vpop.permute.xlu0 %114  }
  0x87   :  { %117 = vst.msk [vmem:[#allocation0] ss:$8 sm:$0xf] %vm116_vm10, %v115_v56   ;;  %v127_v57 = vpop.permute.xlu1 %126  }
  0x88   :  { %129 = vst.msk [vmem:[#allocation0] ss:$8 sm:$0xf] %vm128_vm11, %v127_v57  }
  0x8a   :  { %v139_v58 = vpop.permute.xlu0 %138  }
  0x8b   :  { %141 = vst.msk [vmem:[#allocation0] ss:$8 sm:$0xf] %vm140_vm12, %v139_v58   ;;  %v151_v59 = vpop.permute.xlu1 %150  }
  0x8c   :  { %153 = vst.msk [vmem:[#allocation0] ss:$8 sm:$0xf] %vm152_vm13, %v151_v59  }
  0x8e   :  { %v163_v60 = vpop.permute.xlu0 %162  }
  0x8f   :  { %165 = vst.msk [vmem:[#allocation0] ss:$8 sm:$0xf] %vm164_vm14, %v163_v60   ;;  %v175_v61 = vpop.permute.xlu1 %174  }
  0x90   :  { %177 = vst.msk [vmem:[#allocation0] ss:$8 sm:$0xf] %vm176_vm15, %v175_v61  }
  0x92   :  { %v187_v62 = vpop.permute.xlu0 %186  }
  0x93   :  { %189 = vst.msk [vmem:[#allocation0] ss:$8 sm:$0xf] %vm188_vm0, %v187_v62  }
  0x9a   :  { %v193_v63 = vld [vmem:[#allocation0] sm:$0x1]  ;;  %v197_v0 = vld [vmem:[#allocation0 + $0x8] sm:$0x1]  ;;  %v202_v1 = vld [vmem:[#allocation0 + $0x10] sm:$0x1] }
  0x9b   :  { %195 = vst [vmem:[%s413_s1] sm:$0x1] %v193_v63  ;;  %245 = vst [vmem:[%s413_s1 + $0x1] sm:$0x1] %v197_v0  ;;  %v208_v2 = vld [vmem:[#allocation0 + $0x18] sm:$0x1] }
  0x9c   :  { %246 = vst [vmem:[%s413_s1 + $0x2] sm:$0x1] %v202_v1  ;;  %247 = vst [vmem:[%s413_s1 + $0x3] sm:$0x1] %v208_v2 }

// kernel: decoder_block_forward.1
= control target key start
LH: loop header
LB: loop body
LE: loop exit
PB: predicated region body
PF: predicated region fallthrough
CT: control target
= control target key end

     0   :  { %v80_v0 = vlaneseq  ;;  %vm1226_vm0 = vcmask 1041408   ;;  %v10599_v11 = vmov 0.0|0.0   ;;  %vm13825_vm1 = vcmask 1046528   ;;  %s13784_s1 = inlined_call_operand.vmem [shape: f32[5,64,128], index: 1, kind: input, shape index: {}]   ;;  %s13785_s0 = inlined_call_operand.vmem [shape: f32[32,64], index: 0, kind: input, shape index: {}]   ;;  %s13786_s2 = inlined_call_operand.vmem [shape: f32[1,128], index: 2, kind: input, shape index: {}]   ;;  %s13787_s3 = inlined_call_operand.vmem [shape: f32[1,8], index: 3, kind: input, shape index: {}]   ;;  %s13788_s5 = inlined_call_operand.vmem [shape: f32[5,128,128], index: 5, kind: input, shape index: {}]   ;;  %s13789_s4 = inlined_call_operand.vmem [shape: f32[1,8], index: 4, kind: input, shape index: {}]   ;;  %s13790_s6 = inlined_call_operand.vmem [shape: f32[1,128], index: 6, kind: input, shape index: {}]   ;;  %s13791_s7 = inlined_call_operand.vmem [shape: f32[1,8], index: 7, kind: input, shape index: {}]   ;;  %s13792_s9 = inlined_call_operand.vmem [shape: f32[3,128,128], index: 9, kind: input, shape index: {}]   ;;  %s13793_s8 = inlined_call_operand.vmem [shape: f32[1,8], index: 8, kind: input, shape index: {}]   ;;  %s13794_s10 = inlined_call_operand.vmem [shape: f32[1,128], index: 10, kind: input, shape index: {}]   ;;  %s13795_s11 = inlined_call_operand.vmem [shape: f32[1,8], index: 11, kind: input, shape index: {}]   ;;  %s13796_s13 = inlined_call_operand.vmem [shape: f32[3,128,128], index: 13, kind: input, shape index: {}]   ;;  %s13797_s12 = inlined_call_operand.vmem [shape: f32[1,8], index: 12, kind: input, shape index: {}]   ;;  %s13798_s14 = inlined_call_operand.vmem [shape: f32[1,128], index: 14, kind: input, shape index: {}]   ;;  %s13799_s15 = inlined_call_operand.vmem [shape: f32[1,8], index: 15, kind: input, shape index: {}]   ;;  %s13800_s17 = inlined_call_operand.vmem [shape: f32[3,128,128], index: 17, kind: input, shape index: {}]   ;;  %s13801_s16 = inlined_call_operand.vmem [shape: f32[1,8], index: 16, kind: input, shape index: {}]   ;;  %s13802_s18 = inlined_call_operand.vmem [shape: f32[1,128], index: 18, kind: input, shape index: {}]   ;;  %s13803_s21 = inlined_call_operand.vmem [shape: f32[128,512], index: 21, kind: input, shape index: {}]   ;;  %s13804_s19 = inlined_call_operand.vmem [shape: f32[1,8], index: 19, kind: input, shape index: {}]   ;;  %s13805_s20 = inlined_call_operand.vmem [shape: f32[1,8], index: 20, kind: input, shape index: {}]   ;;  %s13806_s22 = inlined_call_operand.vmem [shape: f32[1,512], index: 22, kind: input, shape index: {}]   ;;  %s13807_s24 = inlined_call_operand.vmem [shape: f32[1,8], index: 24, kind: input, shape index: {}]   ;;  %s13808_s23 = inlined_call_operand.vmem [shape: f32[1,8], index: 23, kind: input, shape index: {}]   ;;  %s13809_s25 = inlined_call_operand.vmem [shape: f32[32,512], index: 25, kind: output, shape index: {}]  }
   0x1   :  { %13946 = sst [smem:[#allocation40_spill]] %s13784_s1  ;;  %9582 = vmatprep.subr.bf16.mxu1 %v10599_v11  ;;  %vm1330_vm3 = vcmask 523264   ;;  %v13958_v60 = vmov 0  ;;  %vm13824_vm13 = vcmask 1045504   ;;  %vm13821_vm14 = vcmask 1044480  }
   0x2   :  { %13947 = sst [smem:[#allocation41_spill]] %s13785_s0  ;;  %v10746_v6 = vshrl.u32 %v80_v0, 7  ;;  %v10824_v46 = vand.u32 127, %v80_v0  ;;  %v13906_v0 = vmov 1.0|1.0  }
   0x3   :  { %13948 = sst [smem:[#allocation42_spill]] %s13786_s2  ;;  %s13957_s29 = sld [smem:[#allocation41_spill]] }
   0x4   :  { %13949 = sst [smem:[#allocation43_spill]] %s13787_s3  ;;  %v89_v12 = vand.u32 15, %v10746_v6  ;;  %v10763_v15 = vadd.s32 16, %v10746_v6  ;;  %v151_v47 = vand.u32 7, %v10746_v6  ;;  %v10830_v50 = vadd.s32 8, %v10746_v6  ;;  %s13981_s0 = sld [smem:[#allocation42_spill]] }
   0x5   :  { %13950 = sst [smem:[#allocation44_spill]] %s13788_s5  ;;  %v10856_v61 = vadd.s32 24, %v10746_v6  ;;  %s13985_s5 = sld [smem:[#allocation43_spill]] }
   0x6   :  { %13951 = sst [smem:[#allocation45_spill]] %s13789_s4  ;;  %v10771_v20 = vadd.s32 4294967295, %v89_v12  ;;  %v103_v27 = vand.u32 15, %v10763_v15  ;;  %v10822_v45 = vadd.s32 4294967294, %v89_v12  ;;  %v158_v55 = vand.u32 7, %v10830_v50  ;;  %s13986_s4 = sld [smem:[#allocation44_spill]] }
   0x7   :  { %13952 = sst [smem:[#allocation46_spill]] %s13790_s6  ;;  %s13956_s6 = sld [smem:[#allocation40_spill]]  ;;  %v165_v56 = vand.u32 7, %v10763_v15  ;;  %vm339_vm6 = vcmp.eq.s32.totalorder %v151_v47, %v10824_v46 }
   0x8   :  { %13953 = sst [smem:[#allocation47_spill]] %s13791_s7  ;;  %vm13823_vm2 = vcmp.ge.s32.totalorder %v10771_v20, 0  ;;  %v10806_v37 = vadd.s32 4294967295, %v103_v27  ;;  %vm13819_vm5 = vcmp.ge.s32.totalorder %v10822_v45, 0  ;;  %vm340_vm7 = vcmp.eq.s32.totalorder %v158_v55, %v10824_v46 }
   0x9   :  { %13954 = sst [smem:[#allocation48_spill]] %s13792_s9  ;;  %v1218_v10 = vld [vmem:[%s13957_s29] sm:$0xff]  ;;  %v1219_v13 = vld [vmem:[%s13957_s29 + $0x8] sm:$0xff]  ;;  %v1220_v17 = vld [vmem:[%s13957_s29 + $0x10] sm:$0xff]  ;;  %vm341_vm9 = vcmp.eq.s32.totalorder %v165_v56, %v10824_v46 }
   0xa   :  { %13955 = sst [smem:[#allocation49_spill]] %s13793_s8  ;;  %v1227_v14 = vrot.slane %v1218_v10, 6  ;;  %v1228_v16 = vrot.slane %v1219_v13, 6  ;;  %v1230_v21 = vrot.slane %v1220_v17, 6  ;;  %v1221_v22 = vld [vmem:[%s13957_s29 + $0x18] sm:$0xff]  ;;  %vm13822_vm4 = vcmp.ge.s32.totalorder %v10806_v37, 0  ;;  %vm10851_vm8 = vmpackc.low %vm340_vm7, %vm339_vm6 }
   0xb   :  { %v1232_v29 = vrot.slane %v1221_v22, 6  ;;  %v13959_v60 = vsel %vm10851_vm8, 4294967295, %v13958_v60  ;;  %9584 = vmatpush3.bf16.msk.msra.mxu1 %vm10851_vm8, %v13906_v0  ;;  %vm13820_vm7 = vcmask 1043456   ;;  %s14005_s1 = sld [smem:[#allocation48_spill]] }
   0xc   :  { %v10769_v19 = vsel %vm1226_vm0, 0.0, %v1227_v14  ;;  %v10783_v25 = vsel %vm1226_vm0, %v1227_v14, %v1228_v16  ;;  %v10791_v32 = vsel %vm1226_vm0, %v1228_v16, %v1230_v21  ;;  %9585 = vmatprep.subr.bf16.mxu1 %v10599_v11 }
   0xd   :  { %v7182_v1 = vld [vmem:[%s13956_s6 + $0x40] sm:$0xff]  ;;  %v7183_v2 = vld [vmem:[%s13956_s6 + $0x48] sm:$0xff]  ;;  %v7184_v3 = vld [vmem:[%s13956_s6 + $0x50] sm:$0xff]  ;;  %v1304_v26 = vrot.slane %v10769_v19, 1  ;;  %v1305_v28 = vrot.slane %v10783_v25, 1  ;;  %v10802_v36 = vsel %vm1226_vm0, %v1230_v21, %v1232_v29  ;;  %v1307_v39 = vrot.slane %v10791_v32, 1 }
   0xe   :  { %v9502_v4 = vpack.c.bf16 %v7183_v2, %v7182_v1  ;;  %v7185_v5 = vld [vmem:[%s13956_s6 + $0x58] sm:$0xff]  ;;  %v7186_v8 = vld [vmem:[%s13956_s6 + $0x60] sm:$0xff]  ;;  %v7187_v9 = vld [vmem:[%s13956_s6 + $0x68] sm:$0xff]  ;;  %v1309_v38 = vrot.slane %v10802_v36, 1  ;;  %v10812_v41 = vsel %vm1226_vm0, %v1232_v29, 0.0  ;;  %v1265_v59 = vsel %vm13819_vm5, %v10769_v19, 0.0 }
   0xf   :  { %v9506_v7 = vpack.c.bf16 %v7185_v5, %v7184_v3  ;;  %v9510_v18 = vpack.c.bf16 %v7187_v9, %v7186_v8  ;;  %v7188_v23 = vld [vmem:[%s13956_s6 + $0x70] sm:$0xff]  ;;  %v7189_v24 = vld [vmem:[%s13956_s6 + $0x78] sm:$0xff]  ;;  %v1306_v31 = vsel %vm13825_vm1, %v1304_v26, %v1305_v28  ;;  %v1269_v34 = vld [vmem:[%s13956_s6] sm:$0xff]  ;;  %v1308_v48 = vsel %vm13825_vm1, %v1305_v28, %v1307_v39 }
  0x10   :  { %9503 = vmatprep.subr.bf16.mxu0 %v9502_v4  ;;  %v9514_v30 = vpack.c.bf16 %v7189_v24, %v7188_v23  ;;  %v1317_v33 = vsel %vm13823_vm2, %v1306_v31, 0.0  ;;  %v1270_v35 = vld [vmem:[%s13956_s6 + $0x8] sm:$0xff]  ;;  %v1271_v42 = vld [vmem:[%s13956_s6 + $0x10] sm:$0xff]  ;;  %v1272_v43 = vld [vmem:[%s13956_s6 + $0x18] sm:$0xff]  ;;  %v1310_v44 = vsel %vm13825_vm1, %v1307_v39, %v1309_v38  ;;  %v1311_v49 = vrot.slane %v10812_v41, 1 }
  0x11   :  { %9505 = vmatpush3.bf16.msra.mxu0 %v9502_v4  ;;  %8451 = vmatprep.mubr.msk.f32.mxu0 %vm1330_vm3, %v1317_v33  ;;  %v9518_v40 = vpack.c.bf16 %v1270_v35, %v1269_v34  ;;  %v9522_v51 = vpack.c.bf16 %v1272_v43, %v1271_v42  ;;  %v1319_v52 = vsel %vm13822_vm4, %v1310_v44, 0.0  ;;  %v1273_v53 = vld [vmem:[%s13956_s6 + $0x20] sm:$0xff]  ;;  %v1274_v54 = vld [vmem:[%s13956_s6 + $0x28] sm:$0xff]  ;;  %v1275_v62 = vld [vmem:[%s13956_s6 + $0x30] sm:$0xff]  ;;  %v172_v1 = vand.u32 7, %v10856_v61 }
  0x12   :  { %9507 = vmatprep.subr.bf16.mxu0 %v9506_v7  ;;  %v1312_v57 = vsel %vm13825_vm1, %v1309_v38, %v1311_v49  ;;  %v9526_v58 = vpack.c.bf16 %v1274_v54, %v1273_v53  ;;  %v1276_v63 = vld [vmem:[%s13956_s6 + $0x38] sm:$0xff]  ;;  %v7198_v3 = vld [vmem:[%s13956_s6 + $0x80] sm:$0xff]  ;;  %v7199_v4 = vld [vmem:[%s13956_s6 + $0x88] sm:$0xff]  ;;  %v10881_v5 = vadd.s32 4294967294, %v103_v27  ;;  %v1546_v14 = vrot.slane %v10769_v19, 2 }
  0x13   :  { %v9530_v2 = vpack.c.bf16 %v1276_v63, %v1275_v62  ;;  %vm342_vm10 = vcmp.eq.s32.totalorder %v172_v1, %v10824_v46  ;;  %v9534_v8 = vpack.c.bf16 %v7199_v4, %v7198_v3  ;;  %v7200_v9 = vld [vmem:[%s13956_s6 + $0x90] sm:$0xff]  ;;  %v7201_v10 = vld [vmem:[%s13956_s6 + $0x98] sm:$0xff]  ;;  %v1547_v15 = vrot.slane %v10783_v25, 2  ;;  %v7202_v16 = vld [vmem:[%s13956_s6 + $0xa0] sm:$0xff] }
  0x14   :  { %vm10883_vm11 = vmpackc.low %vm342_vm10, %vm341_vm9  ;;  %vm13818_vm12 = vcmp.ge.s32.totalorder %v10881_v5, 0  ;;  %v9538_v12 = vpack.c.bf16 %v7201_v10, %v7200_v9  ;;  %v7203_v17 = vld [vmem:[%s13956_s6 + $0xa8] sm:$0xff]  ;;  %v7204_v22 = vld [vmem:[%s13956_s6 + $0xb0] sm:$0xff]  ;;  %v1549_v28 = vrot.slane %v10791_v32, 2  ;;  %v1553_v35 = vrot.slane %v10812_v41, 2 }
  0x15   :  { %9509 = vmatpush3.bf16.msra.mxu0 %v9506_v7  ;;  %v13960_v7 = vmov 0  ;;  %9587 = vmatpush3.bf16.msk.msra.mxu1 %vm10883_vm11, %v13906_v0  ;;  %v1267_v13 = vsel %vm13818_vm12, %v10791_v32, 0.0  ;;  %v1548_v21 = vsel %vm13824_vm13, %v1546_v14, %v1547_v15  ;;  %v7205_v23 = vld [vmem:[%s13956_s6 + $0xb8] sm:$0xff]  ;;  %v7210_v26 = vld [vmem:[%s13956_s6 + $0xc0] sm:$0xff]  ;;  %v7211_v27 = vld [vmem:[%s13956_s6 + $0xc8] sm:$0xff]  ;;  %v1699_v42 = vrot.slane %v10783_v25, 3 }
  0x16   :  { %9511 = vmatprep.subr.bf16.mxu0 %v9510_v18  ;;  %v13961_v7 = vsel %vm10883_vm11, 4294967295, %v13960_v7  ;;  %9588 = vmatprep.subr.bf16.mxu1 %v10599_v11  ;;  %v9546_v24 = vpack.c.bf16 %v7205_v23, %v7204_v22  ;;  %v9550_v29 = vpack.c.bf16 %v7211_v27, %v7210_v26  ;;  %v7212_v31 = vld [vmem:[%s13956_s6 + $0xd0] sm:$0xff]  ;;  %v7213_v33 = vld [vmem:[%s13956_s6 + $0xd8] sm:$0xff]  ;;  %v1550_v34 = vsel %vm13824_vm13, %v1547_v15, %v1549_v28  ;;  %v7214_v43 = vld [vmem:[%s13956_s6 + $0xe0] sm:$0xff] }
  0x17   :  { %13962 = vst [vmem:[#allocation2_spill] sm:$0xff] %v13961_v7  ;;  %v9554_v38 = vpack.c.bf16 %v7213_v33, %v7212_v31  ;;  %v7215_v44 = vld [vmem:[%s13956_s6 + $0xe8] sm:$0xff]  ;;  %v7217_v53 = vld [vmem:[%s13956_s6 + $0xf8] sm:$0xff]  ;;  %v7222_v55 = vld [vmem:[%s13956_s6 + $0x100] sm:$0xff]  ;;  %v1703_v62 = vrot.slane %v10802_v36, 3  ;;  %v1853_v23 = vrot.slane %v10791_v32, 4 }
  0x18   :  { %v7224_v1 = vld [vmem:[%s13956_s6 + $0x110] sm:$0xff]  ;;  %v7226_v14 = vld [vmem:[%s13956_s6 + $0x120] sm:$0xff]  ;;  %v7227_v15 = vld [vmem:[%s13956_s6 + $0x128] sm:$0xff]  ;;  %v134_v31 = vadd.s32 40, %v10746_v6  ;;  %vm10601_vm5 = vmmov 0  }
  0x19   :  { %9513 = vmatpush3.bf16.msra.mxu0 %v9510_v18  ;;  %v9542_v18 = vpack.c.bf16 %v7203_v17, %v7202_v16  ;;  %v7228_v17 = vld [vmem:[%s13956_s6 + $0x130] sm:$0xff] }
  0x1a   :  { %9515 = vmatprep.subr.bf16.mxu0 %v9514_v30 }
  0x1d   :  { %9517 = vmatpush3.bf16.msra.mxu0 %v9514_v30  ;;  %v1551_v30 = vrot.slane %v10802_v36, 2 }
  0x1e   :  { %9519 = vmatprep.subr.bf16.mxu0 %v9518_v40 }
  0x1f   :  { %v1552_v39 = vsel %vm13824_vm13, %v1549_v28, %v1551_v30  ;;  %v1554_v47 = vsel %vm13824_vm13, %v1551_v30, %v1553_v35  ;;  %v1857_v28 = vrot.slane %v10812_v41, 4  ;;  %v135_v35 = vadd.s32 48, %v10746_v6 }
  0x20   :  { %8452 = vmatmul.mubr.msk.f32.vlgmr.msra.gmra.mrb[0].mxu0 %vm1330_vm3, %v1308_v48  ;;  %v9558_v48 = vpack.c.bf16 %v7215_v44, %v7214_v43  ;;  %v137_v43 = vadd.s32 64, %v10746_v6  ;;  %v138_v44 = vadd.s32 72, %v10746_v6 }
  0x21   :  { %9521 = vmatpush3.bf16.msra.mxu0 %v9518_v40  ;;  %8454 = vmatprep.mubr.msk.f32.mxu0 %vm1330_vm3, %v1319_v52  ;;  %v1698_v40 = vrot.slane %v10769_v19, 3  ;;  %v7216_v52 = vld [vmem:[%s13956_s6 + $0xf0] sm:$0xff] }
  0x22   :  { %9523 = vmatprep.subr.bf16.mxu0 %v9522_v51  ;;  %v9562_v54 = vpack.c.bf16 %v7217_v53, %v7216_v52  ;;  %v140_v52 = vadd.s32 88, %v10746_v6  ;;  %v13969_v53 = vmov 0 }
  0x23   :  { %v1700_v49 = vsel %vm13821_vm14, %v1698_v40, %v1699_v42  ;;  %v193_v40 = vand.u32 7, %v135_v35 }
  0x24   :  { %8455 = vmatmul.mubr.msk.f32.gmra.mrb[2].mxu0 %vm1330_vm3, %v1312_v57  ;;  %v1701_v57 = vrot.slane %v10791_v32, 3 }
  0x25   :  { %9525 = vmatpush3.bf16.msra.mxu0 %v9522_v51  ;;  %8473 = vmatprep.mubr.msk.f32.mxu0 %vm1330_vm3, %v1265_v59  ;;  %v96_v51 = vand.u32 15, %v10830_v50  ;;  %v7223_v50 = vld [vmem:[%s13956_s6 + $0x108] sm:$0xff] }
  0x26   :  { %9527 = vmatprep.subr.bf16.mxu0 %v9526_v58  ;;  %v9566_v59 = vpack.c.bf16 %v7223_v50, %v7222_v55  ;;  %v1702_v63 = vsel %vm13821_vm14, %v1699_v42, %v1701_v57  ;;  %v1704_v9 = vsel %vm13821_vm14, %v1701_v57, %v1703_v62  ;;  %v228_v55 = vand.u32 7, %v140_v52 }
  0x27   :  { %v10966_v56 = vadd.s32 1, %v96_v51  ;;  %v11008_v22 = vadd.s32 2, %v96_v51  ;;  %v139_v51 = vadd.s32 80, %v10746_v6  ;;  %v141_v50 = vadd.s32 96, %v10746_v6 }
  0x28   :  { %v142_v57 = vadd.s32 104, %v10746_v6 }
  0x29   :  { %9529 = vmatpush3.bf16.msra.mxu0 %v9526_v58  ;;  %v110_v58 = vand.u32 15, %v10856_v61  ;;  %vm13817_vm15 = vcmp.lt.s32.totalorder %v10966_v56, 16  ;;  %v1705_v61 = vrot.slane %v10812_v41, 3  ;;  %vm13815_vm9 = vcmp.lt.s32.totalorder %v11008_v22, 16 }
  0x2a   :  { %9531 = vmatprep.subr.bf16.mxu0 %v9530_v2  ;;  %v1712_v4 = vsel %vm13817_vm15, %v1702_v63, 0.0  ;;  %v133_v41 = vadd.s32 32, %v10746_v6  ;;  %v143_v63 = vadd.s32 112, %v10746_v6 }
  0x2b   :  { %v10979_v3 = vadd.s32 1, %v110_v58  ;;  %v1706_v10 = vsel %vm13821_vm14, %v1703_v62, %v1705_v61  ;;  %v11014_v27 = vadd.s32 2, %v110_v58  ;;  %v13972_v58 = vmov 0 }
  0x2c   :  { %v179_v33 = vand.u32 7, %v133_v41  ;;  %v242_v62 = vand.u32 7, %v142_v57  ;;  %v13975_v61 = vmov 0  ;;  %v13982_v41 = vmov 0 }
  0x2d   :  { %9533 = vmatpush3.bf16.msra.mxu0 %v9530_v2  ;;  %v7225_v2 = vld [vmem:[%s13956_s6 + $0x118] sm:$0xff]  ;;  %vm13816_vm6 = vcmp.lt.s32.totalorder %v10979_v3, 16  ;;  %vm13814_vm10 = vcmp.lt.s32.totalorder %v11014_v27, 16 }
  0x2e   :  { %9535 = vmatprep.subr.bf16.mxu0 %v9534_v8  ;;  %v1714_v16 = vsel %vm13816_vm6, %v1706_v10, 0.0  ;;  %vm345_vm6 = vcmp.eq.s32.totalorder %v193_v40, %v10824_v46  ;;  %v7234_v10 = vld [vmem:[%s13981_s0] ss:$0 sm:$0xff]  ;;  %s13987_s0 = sld [smem:[#allocation45_spill]] }
  0x30   :  { %8474 = vmatmul.mubr.msk.f32.vlgmr.msra.gmra.mrb[0].mxu0 %vm1330_vm3, %v10783_v25 }
  0x31   :  { %9537 = vmatpush3.bf16.msra.mxu0 %v9534_v8  ;;  %8476 = vmatprep.mubr.msk.f32.mxu0 %vm1330_vm3, %v1267_v13  ;;  %v9570_v8 = vpack.c.bf16 %v7225_v2, %v7224_v1  ;;  %v1851_v13 = vrot.slane %v10783_v25, 4  ;;  %v144_v1 = vadd.s32 120, %v10746_v6  ;;  %v13885_v2 = vmov 0.0  }
  0x32   :  { %9539 = vmatprep.subr.bf16.mxu0 %v9538_v12  ;;  %8577 = vmatprep.mubr.msk.f32.mxu1 %vm10601_vm5, %v13885_v2 }
  0x33   :  { %v1854_v26 = vsel %vm13820_vm7, %v1851_v13, %v1853_v23 }
  0x34   :  { %8477 = vmatmul.mubr.msk.f32.gmra.mrb[2].mxu0 %vm1330_vm3, %v10802_v36 }
  0x35   :  { %9541 = vmatpush3.bf16.msra.mxu0 %v9538_v12  ;;  %8495 = vmatprep.mubr.msk.f32.mxu0 %vm1330_vm3, %v1548_v21  ;;  %v1850_v12 = vrot.slane %v10769_v19, 4  ;;  %v9574_v19 = vpack.c.bf16 %v7227_v15, %v7226_v14 }
  0x36   :  { %9543 = vmatprep.subr.bf16.mxu0 %v9542_v18 }
  0x37   :  { %v1852_v25 = vsel %vm13820_vm7, %v1850_v12, %v1851_v13 }
  0x39   :  { %9545 = vmatpush3.bf16.msra.mxu0 %v9542_v18  ;;  %v7229_v18 = vld [vmem:[%s13956_s6 + $0x138] sm:$0xff] }
  0x3a   :  { %9547 = vmatprep.subr.bf16.mxu0 %v9546_v24  ;;  %v9578_v21 = vpack.c.bf16 %v7229_v18, %v7228_v17 }
  0x3d   :  { %9549 = vmatpush3.bf16.msra.mxu0 %v9546_v24  ;;  %v1855_v24 = vrot.slane %v10802_v36, 4 }
  0x3e   :  { %9551 = vmatprep.subr.bf16.mxu0 %v9550_v29 }
  0x3f   :  { %v1856_v30 = vsel %vm13820_vm7, %v1853_v23, %v1855_v24  ;;  %v1858_v32 = vsel %vm13820_vm7, %v1855_v24, %v1857_v28 }
  0x40   :  { %8496 = vmatmul.mubr.msk.f32.vlgmr.msra.gmra.mrb[0].mxu0 %vm1330_vm3, %v1550_v34  ;;  %v1866_v36 = vsel %vm13814_vm10, %v1858_v32, 0.0  ;;  %v186_v34 = vand.u32 7, %v134_v31  ;;  %vm343_vm10 = vcmp.eq.s32.totalorder %v179_v33, %v10824_v46  ;;  %v13883_v31 = vmov 1.0  }
  0x41   :  { %9553 = vmatpush3.bf16.msra.mxu0 %v9550_v29  ;;  %8498 = vmatprep.mubr.msk.f32.mxu0 %vm1330_vm3, %v1552_v39  ;;  %v1864_v29 = vsel %vm13815_vm9, %v1854_v26, 0.0  ;;  %v13963_v39 = vmov 0 }
  0x42   :  { %9555 = vmatprep.subr.bf16.mxu0 %v9554_v38  ;;  %vm344_vm9 = vcmp.eq.s32.totalorder %v186_v34, %v10824_v46 }
  0x44   :  { %8499 = vmatmul.mubr.msk.f32.gmra.mrb[2].mxu0 %vm1330_vm3, %v1554_v47  ;;  %v13966_v47 = vmov 0 }
  0x45   :  { %9557 = vmatpush3.bf16.msra.mxu0 %v9554_v38  ;;  %8517 = vmatprep.mubr.msk.f32.mxu0 %vm1330_vm3, %v1700_v49  ;;  %v136_v38 = vadd.s32 56, %v10746_v6  ;;  %v214_v49 = vand.u32 7, %v138_v44 }
  0x46   :  { %9559 = vmatprep.subr.bf16.mxu0 %v9558_v48 }
  0x47   :  { %v200_v42 = vand.u32 7, %v136_v38  ;;  %v11187_v38 = vsub.s32 0, %v10746_v6 }
  0x49   :  { %9561 = vmatpush3.bf16.msra.mxu0 %v9558_v48  ;;  %v207_v48 = vand.u32 7, %v137_v43  ;;  %13984 = vst [vmem:[#allocation9_spill] sm:$0xff] %v11187_v38 }
  0x4a   :  { %9563 = vmatprep.subr.bf16.mxu0 %v9562_v54 }
  0x4b   :  { %vm347_vm15 = vcmp.eq.s32.totalorder %v207_v48, %v10824_v46 }
  0x4d   :  { %9565 = vmatpush3.bf16.msra.mxu0 %v9562_v54  ;;  %v221_v54 = vand.u32 7, %v139_v51 }
  0x4e   :  { %9567 = vmatprep.subr.bf16.mxu0 %v9566_v59 }
  0x4f   :  { %vm349_vm12 = vcmp.eq.s32.totalorder %v221_v54, %v10824_v46 }
  0x50   :  { %8518 = vmatmul.mubr.msk.f32.vlgmr.msra.gmra.mrb[0].mxu0 %vm1330_vm3, %v1712_v4  ;;  %v249_v4 = vand.u32 7, %v143_v63 }
  0x51   :  { %9569 = vmatpush3.bf16.msra.mxu0 %v9566_v59  ;;  %8520 = vmatprep.mubr.msk.f32.mxu0 %vm1330_vm3, %v1704_v9  ;;  %v235_v59 = vand.u32 7, %v141_v50  ;;  %v13978_v9 = vmov 0 }
  0x52   :  { %9571 = vmatprep.subr.bf16.mxu0 %v9570_v8  ;;  %vm353_vm14 = vcmp.eq.s32.totalorder %v249_v4, %v10824_v46 }
  0x54   :  { %8521 = vmatmul.mubr.msk.f32.gmra.mrb[2].mxu0 %vm1330_vm3, %v1714_v16 }
  0x55   :  { %9573 = vmatpush3.bf16.msra.mxu0 %v9570_v8  ;;  %8539 = vmatprep.mubr.msk.f32.mxu0 %vm1330_vm3, %v1852_v25  ;;  %v256_v8 = vand.u32 7, %v144_v1 }
  0x56   :  { %9575 = vmatprep.subr.bf16.mxu0 %v9574_v19 }
  0x57   :  { %vm354_vm4 = vcmp.eq.s32.totalorder %v256_v8, %v10824_v46 }
  0x59   :  { %9577 = vmatpush3.bf16.msra.mxu0 %v9574_v19 }
  0x5a   :  { %9579 = vmatprep.subr.bf16.mxu0 %v9578_v21 }
  0x5d   :  { %9581 = vmatpush3.bf16.msra.mxu0 %v9578_v21 }
  0x5e   :  { %9790 = vmatprep.subr.bf16.mxu0 %v10599_v11 }
  0x60   :  { %8540 = vmatmul.mubr.msk.f32.vlgmr.msra.gmra.mrb[0].mxu0 %vm1330_vm3, %v1864_v29 }
  0x61   :  { %8542 = vmatprep.mubr.msk.f32.mxu0 %vm1330_vm3, %v1856_v30  ;;  %9792 = vmatpush3.bf16.msk.msra.mxu0 %vm10851_vm8, %v13906_v0  ;;  %v391_v30 = vand.u32 7, %v10824_v46 }
  0x62   :  { %9793 = vmatprep.subr.bf16.mxu0 %v10599_v11 }
  0x64   :  { %8543 = vmatmul.mubr.msk.f32.gmra.mrb[2].mxu0 %vm1330_vm3, %v1866_v36  ;;  %vm11042_vm3 = vmpackc.low %vm344_vm9, %vm343_vm10  ;;  %vm346_vm9 = vcmp.eq.s32.totalorder %v200_v42, %v10824_v46 }
  0x65   :  { %9795 = vmatpush3.bf16.msk.msra.mxu0 %vm10883_vm11, %v13906_v0  ;;  %v13964_v39 = vsel %vm11042_vm3, 4294967295, %v13963_v39  ;;  %9590 = vmatpush3.bf16.msk.msra.mxu1 %vm11042_vm3, %v13906_v0  ;;  %vm11058_vm10 = vmpackc.low %vm346_vm9, %vm345_vm6  ;;  %vm348_vm6 = vcmp.eq.s32.totalorder %v214_v49, %v10824_v46 }
  0x66   :  { %9796 = vmatprep.subr.bf16.mxu0 %v10599_v11  ;;  %13965 = vst [vmem:[#allocation3_spill] sm:$0xff] %v13964_v39  ;;  %9591 = vmatprep.subr.bf16.mxu1 %v10599_v11  ;;  %v13967_v47 = vsel %vm11058_vm10, 4294967295, %v13966_v47  ;;  %vm11074_vm9 = vmpackc.low %vm348_vm6, %vm347_vm15  ;;  %vm350_vm15 = vcmp.eq.s32.totalorder %v228_v55, %v10824_v46 }
  0x67   :  { %13968 = vst [vmem:[#allocation4_spill] sm:$0xff] %v13967_v47  ;;  %v13970_v53 = vsel %vm11074_vm9, 4294967295, %v13969_v53  ;;  %vm11090_vm6 = vmpackc.low %vm350_vm15, %vm349_vm12  ;;  %vm351_vm12 = vcmp.eq.s32.totalorder %v235_v59, %v10824_v46  ;;  %vm352_vm15 = vcmp.eq.s32.totalorder %v242_v62, %v10824_v46  ;;  %8852 = vmatprep.mubr.msk.f32.mxu0 %vm10601_vm5, %v13885_v2 }
  0x68   :  { %13971 = vst [vmem:[#allocation5_spill] sm:$0xff] %v13970_v53  ;;  %v13973_v58 = vsel %vm11090_vm6, 4294967295, %v13972_v58  ;;  %vm11110_vm7 = vmpackc.low %vm352_vm15, %vm351_vm12  ;;  %vm13989_vm15 = vcmask 1044480  }
  0x69   :  { %9798 = vmatpush3.bf16.msk.msra.mxu0 %vm11042_vm3, %v13906_v0  ;;  %9593 = vmatpush3.bf16.msk.msra.mxu1 %vm11058_vm10, %v13906_v0  ;;  %13974 = vst [vmem:[#allocation6_spill] sm:$0xff] %v13973_v58  ;;  %v13976_v61 = vsel %vm11110_vm7, 4294967295, %v13975_v61  ;;  %vm11124_vm12 = vmpackc.low %vm354_vm4, %vm353_vm14  ;;  %vm11141_vm4 = vcmp.eq.s32.totalorder %v391_v30, %v10746_v6  ;;  %vm13828_vm14 = vcmask 64512   ;;  %v7277_v30 = vld [vmem:[%s13986_s4 + $0xa0] sm:$0xff] }
  0x6a   :  { %9799 = vmatprep.subr.bf16.mxu0 %v10599_v11  ;;  %9594 = vmatprep.subr.bf16.mxu1 %v10599_v11  ;;  %13977 = vst [vmem:[#allocation7_spill] sm:$0xff] %v13976_v61  ;;  %v13979_v9 = vsel %vm11124_vm12, 4294967295, %v13978_v9  ;;  %v13983_v41 = vsel %vm11141_vm4, 4294967295, %v13982_v41 }
  0x6b   :  { %13980 = vst [vmem:[#allocation8_spill] sm:$0xff] %v13979_v9  ;;  %v5892_v9 = vld [vmem:[%s13806_s22] sm:$0xf] }
  0x6d   :  { %9801 = vmatpush3.bf16.msk.msra.mxu0 %vm11058_vm10, %v13906_v0  ;;  %9596 = vmatpush3.bf16.msk.msra.mxu1 %vm11074_vm9, %v13906_v0 }
  0x6e   :  { %9802 = vmatprep.subr.bf16.mxu0 %v10599_v11  ;;  %9597 = vmatprep.subr.bf16.mxu1 %v10599_v11 }
  0x71   :  { %9804 = vmatpush3.bf16.msk.msra.mxu0 %vm11074_vm9, %v13906_v0  ;;  %9599 = vmatpush3.bf16.msk.msra.mxu1 %vm11090_vm6, %v13906_v0 }
  0x72   :  { %9805 = vmatprep.subr.bf16.mxu0 %v10599_v11  ;;  %9600 = vmatprep.subr.bf16.mxu1 %v10599_v11 }
  0x75   :  { %9807 = vmatpush3.bf16.msk.msra.mxu0 %vm11090_vm6, %v13906_v0  ;;  %9602 = vmatpush3.bf16.msk.msra.mxu1 %vm11110_vm7, %v13906_v0 }
  0x76   :  { %9808 = vmatprep.subr.bf16.mxu0 %v10599_v11  ;;  %9603 = vmatprep.subr.bf16.mxu1 %v10599_v11 }
  0x79   :  { %9810 = vmatpush3.bf16.msk.msra.mxu0 %vm11110_vm7, %v13906_v0  ;;  %9605 = vmatpush3.bf16.msk.msra.mxu1 %vm11124_vm12, %v13906_v0 }
  0x7a   :  { %9811 = vmatprep.subr.bf16.mxu0 %v10599_v11  ;;  %8580 = vmatprep.subr.mxu1 %v13885_v2 }
  0x7d   :  { %9813 = vmatpush3.bf16.msk.msra.mxu0 %vm11124_vm12, %v13906_v0 }
  0x7e   :  { %8855 = vmatprep.subr.mxu0 %v13885_v2 }
 0x133   :  { %v8541_v12 = vpop.f32.mrb[0].mxu0 }
 0x134   :  { %v1954_v13 = vpop.f32.mrb[1].mxu0  ;;  %v1985_v14 = vadd.f32 %v8541_v12, %v7234_v10 }
 0x135   :  { %v1984_v15 = vadd.f32 %v7234_v10, %v1954_v13 }
 0x137   :  { %v8544_v16 = vpop.f32.mrb[2].mxu0  ;;  %v1988_v25 = vadd.f32 %v1985_v14, %v1984_v15 }
 0x138   :  { %v1964_v19 = vpop.f32.mrb[3].mxu0  ;;  %v1987_v18 = vadd.f32 %v8544_v16, %v7234_v10 }
 0x139   :  { %v1986_v17 = vadd.f32 %v7234_v10, %v1964_v19  ;;  %v2234_v19 = vld [vmem:[%s13985_s5] sm:$0x1]  ;;  %s14004_s5 = sld [smem:[#allocation47_spill]] }
 0x13b   :  { %v1989_v21 = vadd.f32 %v1988_v25, %v1986_v17  ;;  %v7273_v25 = vld [vmem:[%s13986_s4 + $0x80] sm:$0xff] }
 0x13d   :  { %v1990_v23 = vadd.f32 %v1989_v21, %v1987_v18 }
 0x13f   :  { %v1991_v24 = vrot.slane %v1990_v23, 4 }
 0x141   :  { %v1992_v26 = vadd.f32 %v1991_v24, %v1990_v23  ;;  %v7275_v24 = vld [vmem:[%s13986_s4 + $0x90] sm:$0xff] }
 0x143   :  { %v1993_v28 = vrot.slane %v1992_v26, 2 }
 0x145   :  { %v1994_v29 = vadd.f32 %v1993_v28, %v1992_v26  ;;  %v7276_v26 = vld [vmem:[%s13986_s4 + $0x98] sm:$0xff]  ;;  %v2319_v28 = vld [vmem:[%s13987_s0] sm:$0x1]  ;;  %s14003_s0 = sld [smem:[#allocation46_spill]] }
 0x147   :  { %v1995_v32 = vrot.slane %v1994_v29, 1 }
 0x149   :  { %v1996_v36 = vadd.f32 %v1995_v32, %v1994_v29  ;;  %v9634_v29 = vpack.c.bf16 %v7276_v26, %v7275_v24  ;;  %v7278_v32 = vld [vmem:[%s13986_s4 + $0xa8] sm:$0xff] }
 0x14b   :  { %8578 = vmatmul.mubr.f32.vlgmr.msra.gmra.mrb[0].mxu1 %v1996_v36  ;;  %v9638_v36 = vpack.c.bf16 %v7278_v32, %v7277_v30 }
 0x14c   :  { %8581 = vmatpush3.msk.msra.mxu1 %vm11141_vm4, %v13883_v31  ;;  %8582 = vmatprep.mubr.msk.f32.mxu1 %vm10601_vm5, %v13885_v2 }
 0x14d   :  { %9606 = vmatprep.subr.bf16.mxu1 %v10599_v11 }
 0x21e   :  { %v2063_v33 = vpop.f32.mrb[0].mxu1 }
 0x21f   :  { %v2067_v34 = vmul.f32 0.001953125, %v2063_v33  ;;  %v8579_v35 = vpop.f32.mrb[1].mxu1  ;;  %v7279_v33 = vld [vmem:[%s13986_s4 + $0xb0] sm:$0xff] }
 0x221   :  { %8583 = vmatmul.mubr.msk.f32.vlgmr.msra.gmra.mrb[2].mxu1 %vm13828_vm14, %v2067_v34  ;;  %v7280_v34 = vld [vmem:[%s13986_s4 + $0xb8] sm:$0xff] }
 0x222   :  { %9608 = vmatpush3.bf16.msk.msra.mxu1 %vm10851_vm8, %v13906_v0  ;;  %8617 = vmatprep.mubr.msk.f32.mxu1 %vm10601_vm5, %v13885_v2  ;;  %v9642_v35 = vpack.c.bf16 %v7280_v34, %v7279_v33 }
 0x223   :  { %9609 = vmatprep.subr.bf16.mxu1 %v10599_v11 }
 0x226   :  { %9611 = vmatpush3.bf16.msk.msra.mxu1 %vm10883_vm11, %v13906_v0 }
 0x227   :  { %9612 = vmatprep.subr.bf16.mxu1 %v10599_v11 }
 0x22a   :  { %9614 = vmatpush3.bf16.msk.msra.mxu1 %vm11042_vm3, %v13906_v0 }
 0x22b   :  { %9615 = vmatprep.subr.bf16.mxu1 %v10599_v11 }
 0x22e   :  { %9617 = vmatpush3.bf16.msk.msra.mxu1 %vm11058_vm10, %v13906_v0 }
 0x22f   :  { %9618 = vmatprep.subr.bf16.mxu1 %v10599_v11 }
 0x232   :  { %9620 = vmatpush3.bf16.msk.msra.mxu1 %vm11074_vm9, %v13906_v0 }
 0x233   :  { %9621 = vmatprep.subr.bf16.mxu1 %v10599_v11 }
 0x236   :  { %9623 = vmatpush3.bf16.msk.msra.mxu1 %vm11090_vm6, %v13906_v0 }
 0x237   :  { %9624 = vmatprep.subr.bf16.mxu1 %v10599_v11 }
 0x23a   :  { %9626 = vmatpush3.bf16.msk.msra.mxu1 %vm11110_vm7, %v13906_v0 }
 0x23b   :  { %9627 = vmatprep.subr.bf16.mxu1 %v10599_v11 }
 0x23e   :  { %9629 = vmatpush3.bf16.msk.msra.mxu1 %vm11124_vm12, %v13906_v0 }
 0x23f   :  { %8620 = vmatprep.subr.mxu1 %v13885_v2 }
 0x2f4   :  { %v2138_v40 = vpop.f32.mrb[2].mxu1 }
 0x2f5   :  { %v2145_v42 = vrot.slane %v2138_v40, %v11187_v38  ;;  %v8584_v43 = vpop.f32.mrb[3].mxu1  ;;  %v7281_v40 = vld [vmem:[%s13986_s4 + $0xc0] sm:$0xff] }
 0x2f7   :  { %v11190_v44 = vsub.f32 %v1984_v15, %v2145_v42  ;;  %v11192_v48 = vsub.f32 %v1985_v14, %v2145_v42  ;;  %v11194_v49 = vsub.f32 %v1986_v17, %v2145_v42  ;;  %v11196_v51 = vsub.f32 %v1987_v18, %v2145_v42  ;;  %v7274_v17 = vld [vmem:[%s13986_s4 + $0x88] sm:$0xff] }
 0x2f8   :  { %v9630_v23 = vpack.c.bf16 %v7274_v17, %v7273_v25  ;;  %v7282_v42 = vld [vmem:[%s13986_s4 + $0xc8] sm:$0xff] }
 0x2f9   :  { %v2150_v52 = vmul.f32 %v11190_v44, %v11190_v44  ;;  %v2151_v54 = vmul.f32 %v11192_v48, %v11192_v48  ;;  %v2152_v55 = vmul.f32 %v11194_v49, %v11194_v49  ;;  %v2153_v57 = vmul.f32 %v11196_v51, %v11196_v51 }
 0x2fa   :  { %v9646_v43 = vpack.c.bf16 %v7282_v42, %v7281_v40 }
 0x2fb   :  { %v2154_v50 = vadd.f32 %v2151_v54, %v2150_v52  ;;  %v7283_v52 = vld [vmem:[%s13986_s4 + $0xd0] sm:$0xff]  ;;  %v7284_v54 = vld [vmem:[%s13986_s4 + $0xd8] sm:$0xff] }
 0x2fd   :  { %v2155_v59 = vadd.f32 %v2154_v50, %v2152_v55  ;;  %v9650_v55 = vpack.c.bf16 %v7284_v54, %v7283_v52  ;;  %v7285_v50 = vld [vmem:[%s13986_s4 + $0xe0] sm:$0xff] }
 0x2ff   :  { %v2156_v62 = vadd.f32 %v2155_v59, %v2153_v57  ;;  %v7286_v57 = vld [vmem:[%s13986_s4 + $0xe8] sm:$0xff] }
 0x300   :  { %v9654_v59 = vpack.c.bf16 %v7286_v57, %v7285_v50 }
 0x301   :  { %v2157_v63 = vrot.slane %v2156_v62, 4 }
 0x303   :  { %v2158_v1 = vadd.f32 %v2157_v63, %v2156_v62  ;;  %v7287_v62 = vld [vmem:[%s13986_s4 + $0xf0] sm:$0xff]  ;;  %v7288_v63 = vld [vmem:[%s13986_s4 + $0xf8] sm:$0xff] }
 0x305   :  { %v2159_v4 = vrot.slane %v2158_v1, 2 }
 0x307   :  { %v2160_v8 = vadd.f32 %v2159_v4, %v2158_v1  ;;  %v9658_v1 = vpack.c.bf16 %v7288_v63, %v7287_v62  ;;  %v2427_v4 = vld [vmem:[%s13986_s4] sm:$0xff] }
 0x309   :  { %v2161_v10 = vrot.slane %v2160_v8, 1 }
 0x30b   :  { %v2162_v12 = vadd.f32 %v2161_v10, %v2160_v8  ;;  %v2428_v8 = vld [vmem:[%s13986_s4 + $0x8] sm:$0xff] }
 0x30c   :  { %v9662_v10 = vpack.c.bf16 %v2428_v8, %v2427_v4 }
 0x30d   :  { %8618 = vmatmul.mubr.f32.vlgmr.msra.gmra.mrb[4].mxu1 %v2162_v12 }
 0x30e   :  { %8621 = vmatpush3.msk.msra.mxu1 %vm11141_vm4, %v13883_v31  ;;  %8622 = vmatprep.mubr.msk.f32.mxu1 %vm10601_vm5, %v13885_v2 }
 0x30f   :  { %8625 = vmatprep.subr.mxu1 %v13885_v2 }
 0x3e0   :  { %v2229_v13 = vpop.f32.mrb[4].mxu1 }
 0x3e1   :  { %v2233_v14 = vmul.f32 0.001953125, %v2229_v13  ;;  %v8619_v15 = vpop.f32.mrb[5].mxu1 }
 0x3e3   :  { %v2235_v16 = vadd.f32 1e-05, %v2233_v14 }
 0x3e5   :  { %10523 = vrsqrt.f32 %v2235_v16 }
 0x3ef   :  { %v10524_v18 = vpop.eup %10523 }
 0x3f0   :  { %v2237_v21 = vmul.f32 %v10524_v18, %v2234_v19 }
 0x3f2   :  { %8623 = vmatmul.mubr.msk.f32.vlgmr.msra.gmra.mrb[6].mxu1 %vm13828_vm14, %v2237_v21 }
 0x3f3   :  { %8626 = vmatpush3.msk.msra.mxu1 %vm11141_vm4, %v13883_v31  ;;  %8627 = vmatprep.mubr.msk.f32.mxu1 %vm10601_vm5, %v13885_v2 }
 0x3f4   :  { %9631 = vmatprep.subr.bf16.mxu1 %v9630_v23 }
 0x3f6   :  { %8628 = vmatmul.mubr.msk.f32.vlgmr.msra.gmra.mrb[8].mxu1 %vm13828_vm14, %v2319_v28 }
 0x3f7   :  { %9633 = vmatpush3.bf16.msra.mxu1 %v9630_v23 }
 0x3f8   :  { %9635 = vmatprep.subr.bf16.mxu1 %v9634_v29 }
 0x3fb   :  { %9637 = vmatpush3.bf16.msra.mxu1 %v9634_v29  ;;  %v2429_v29 = vld [vmem:[%s13986_s4 + $0x10] sm:$0xff] }
 0x3fc   :  { %9639 = vmatprep.subr.bf16.mxu1 %v9638_v36 }
 0x3ff   :  { %9641 = vmatpush3.bf16.msra.mxu1 %v9638_v36  ;;  %v2432_v36 = vld [vmem:[%s13986_s4 + $0x28] sm:$0xff] }
 0x400   :  { %9643 = vmatprep.subr.bf16.mxu1 %v9642_v35 }
 0x403   :  { %9645 = vmatpush3.bf16.msra.mxu1 %v9642_v35 }
 0x404   :  { %9647 = vmatprep.subr.bf16.mxu1 %v9646_v43 }
 0x407   :  { %9649 = vmatpush3.bf16.msra.mxu1 %v9646_v43 }
 0x408   :  { %9651 = vmatprep.subr.bf16.mxu1 %v9650_v55 }
 0x40b   :  { %9653 = vmatpush3.bf16.msra.mxu1 %v9650_v55 }
 0x40c   :  { %9655 = vmatprep.subr.bf16.mxu1 %v9654_v59 }
 0x40f   :  { %9657 = vmatpush3.bf16.msra.mxu1 %v9654_v59 }
 0x410   :  { %9659 = vmatprep.subr.bf16.mxu1 %v9658_v1 }
 0x413   :  { %9661 = vmatpush3.bf16.msra.mxu1 %v9658_v1 }
 0x414   :  { %9663 = vmatprep.subr.bf16.mxu1 %v9662_v10 }
 0x4c5   :  { %v2307_v12 = vpop.f32.mrb[6].mxu1 }
 0x4c6   :  { %v2314_v13 = vrot.slane %v2307_v12, %v11187_v38  ;;  %v8624_v14 = vpop.f32.mrb[7].mxu1 }
 0x4c8   :  { %v2315_v15 = vmul.f32 %v2314_v13, %v11190_v44  ;;  %v2316_v19 = vmul.f32 %v2314_v13, %v11192_v48  ;;  %v2317_v25 = vmul.f32 %v2314_v13, %v11194_v49  ;;  %v2318_v17 = vmul.f32 %v2314_v13, %v11196_v51  ;;  %v2430_v44 = vld [vmem:[%s13986_s4 + $0x18] sm:$0xff]  ;;  %v2431_v51 = vld [vmem:[%s13986_s4 + $0x20] sm:$0xff] }
 0x4c9   :  { %v2389_v16 = vpop.f32.mrb[8].mxu1  ;;  %v9666_v42 = vpack.c.bf16 %v2430_v44, %v2429_v29  ;;  %v9670_v43 = vpack.c.bf16 %v2432_v36, %v2431_v51  ;;  %v2433_v51 = vld [vmem:[%s13986_s4 + $0x30] sm:$0xff]  ;;  %v2434_v36 = vld [vmem:[%s13986_s4 + $0x38] sm:$0xff] }
 0x4ca   :  { %v2396_v18 = vrot.slane %v2389_v16, %v11187_v38  ;;  %v8629_v21 = vpop.f32.mrb[9].mxu1 }
 0x4cc   :  { %v2397_v23 = vadd.f32 %v2396_v18, %v2315_v15  ;;  %v2398_v24 = vadd.f32 %v2396_v18, %v2316_v19  ;;  %v2399_v26 = vadd.f32 %v2396_v18, %v2317_v25  ;;  %v2400_v28 = vadd.f32 %v2396_v18, %v2318_v17 }
 0x4ce   :  { %v2401_v48 = vmax.f32 %v2397_v23, 0.0  ;;  %v2402_v30 = vmax.f32 %v2398_v24, 0.0  ;;  %v2403_v49 = vmax.f32 %v2399_v26, 0.0  ;;  %v2404_v32 = vmax.f32 %v2400_v28, 0.0 }
 0x4d0   :  { %v2409_v33 = vrot.slane %v2401_v48, 6  ;;  %v2410_v34 = vrot.slane %v2402_v30, 6  ;;  %v2412_v35 = vrot.slane %v2403_v49, 6  ;;  %v2414_v40 = vrot.slane %v2404_v32, 6 }
 0x4d2   :  { %v11298_v52 = vsel %vm1226_vm0, %v2409_v33, %v2410_v34  ;;  %v11301_v54 = vsel %vm1226_vm0, %v2410_v34, %v2412_v35  ;;  %v11304_v55 = vsel %vm1226_vm0, %v2412_v35, %v2414_v40  ;;  %v2421_v50 = vsel %vm1226_vm0, 0.0, %v2409_v33 }
 0x4d3   :  { %v2445_v57 = vrot.slane %v2421_v50, 1  ;;  %v2446_v59 = vrot.slane %v11298_v52, 1  ;;  %v2448_v62 = vrot.slane %v11301_v54, 1  ;;  %v2450_v63 = vrot.slane %v11304_v55, 1 }
 0x4d4   :  { %v2422_v1 = vsel %vm1226_vm0, %v2414_v40, 0.0  ;;  %v2649_v4 = vrot.slane %v2421_v50, 2  ;;  %v2650_v8 = vrot.slane %v11298_v52, 2  ;;  %v2652_v12 = vrot.slane %v11301_v54, 2 }
 0x4d5   :  { %v2447_v13 = vsel %vm13825_vm1, %v2445_v57, %v2446_v59  ;;  %v2449_v14 = vsel %vm13825_vm1, %v2446_v59, %v2448_v62  ;;  %v2451_v15 = vsel %vm13825_vm1, %v2448_v62, %v2450_v63  ;;  %v2452_v16 = vrot.slane %v2422_v1, 1 }
 0x4d6   :  { %8662 = vmatprep.mubr.msk.f32.mxu1 %vm13823_vm2, %v2447_v13  ;;  %v11319_v19 = vsel %vm13824_vm13, %v2649_v4, %v2650_v8  ;;  %v11322_v25 = vsel %vm13824_vm13, %v2650_v8, %v2652_v12  ;;  %v2654_v17 = vrot.slane %v11304_v55, 2  ;;  %v2656_v18 = vrot.slane %v2422_v1, 2  ;;  %vm13990_vm2 = vmmov %vm13989_vm15 }
 0x4d7   :  { %8663 = vmatmul.mubr.f32.vlgmr.msra.gmra.mrb[10].mxu1 %v2449_v14  ;;  %v2453_v21 = vsel %vm13825_vm1, %v2450_v63, %v2452_v16  ;;  %v2772_v23 = vrot.slane %v2421_v50, 3  ;;  %v2773_v24 = vrot.slane %v11298_v52, 3  ;;  %v2775_v26 = vrot.slane %v11301_v54, 3  ;;  %v2439_v14 = vld [vmem:[%s13986_s4 + $0x60] sm:$0xff]  ;;  %v2441_v16 = vld [vmem:[%s13986_s4 + $0x70] sm:$0xff] }
 0x4d8   :  { %9665 = vmatpush3.bf16.msra.mxu1 %v9662_v10  ;;  %vm13988_vm0 = vcmp.ge.s32.totalorder %v10806_v37, 0  ;;  %v11331_v28 = vsel %vm13824_vm13, %v2652_v12, %v2654_v17  ;;  %v11334_v29 = vsel %vm13824_vm13, %v2654_v17, %v2656_v18  ;;  %v2777_v44 = vrot.slane %v11304_v55, 3  ;;  %v2435_v12 = vld [vmem:[%s13986_s4 + $0x40] sm:$0xff]  ;;  %v2442_v17 = vld [vmem:[%s13986_s4 + $0x78] sm:$0xff] }
 0x4d9   :  { %8665 = vmatprep.mubr.msk.f32.mxu1 %vm13988_vm0, %v2451_v15  ;;  %v2779_v48 = vrot.slane %v2422_v1, 3  ;;  %9667 = vmatprep.subr.bf16.mxu1 %v9666_v42  ;;  %v11338_v30 = vsel %vm13989_vm15, %v2772_v23, %v2773_v24  ;;  %v11341_v49 = vsel %vm13990_vm2, %v2773_v24, %v2775_v26  ;;  %v2895_v10 = vrot.slane %v2421_v50, 4  ;;  %vm13991_vm0 = vmmov %vm13990_vm2  ;;  %v7294_v23 = vld [vmem:[%s13986_s4 + $0x108] sm:$0xff] }
 0x4da   :  { %v2896_v32 = vrot.slane %v11298_v52, 4  ;;  %v11351_v33 = vsel %vm13991_vm0, %v2775_v26, %v2777_v44  ;;  %vm13992_vm13 = vmmov %vm13991_vm0  ;;  %v2898_v35 = vrot.slane %v11301_v54, 4  ;;  %v2900_v40 = vrot.slane %v11304_v55, 4  ;;  %v7295_v26 = vld [vmem:[%s13986_s4 + $0x110] sm:$0xff] }
 0x4db   :  { %v11354_v34 = vsel %vm13992_vm13, %v2777_v44, %v2779_v48  ;;  %8666 = vmatmul.mubr.f32.gmra.mrb[12].mxu1 %v2453_v21  ;;  %vm13993_vm2 = vcmask 1043456   ;;  %v2902_v59 = vrot.slane %v2422_v1, 4  ;;  %vm13994_vm15 = vcmp.ge.s32.totalorder %v10822_v45, 0  ;;  %v2436_v45 = vld [vmem:[%s13986_s4 + $0x48] sm:$0xff]  ;;  %v2438_v1 = vld [vmem:[%s13986_s4 + $0x58] sm:$0xff]  ;;  %v7293_v21 = vld [vmem:[%s13986_s4 + $0x100] sm:$0xff] }
 0x4dc   :  { %v11359_v57 = vsel %vm13993_vm2, %v2895_v10, %v2896_v32  ;;  %9669 = vmatpush3.bf16.msra.mxu1 %v9666_v42  ;;  %8700 = vmatprep.mubr.msk.f32.mxu1 %vm13994_vm15, %v2421_v50  ;;  %vm13995_vm1 = vmmov %vm13993_vm2  ;;  %v9674_v4 = vpack.c.bf16 %v2434_v36, %v2433_v51  ;;  %v9678_v42 = vpack.c.bf16 %v2436_v45, %v2435_v12  ;;  %v2437_v50 = vld [vmem:[%s13986_s4 + $0x50] sm:$0xff]  ;;  %v7296_v44 = vld [vmem:[%s13986_s4 + $0x118] sm:$0xff]  ;;  %vm13999_vm2 = vcmp.lt.s32.totalorder %v10966_v56, 16 }
 0x4dd   :  { %v11364_v62 = vsel %vm13995_vm1, %v2896_v32, %v2898_v35  ;;  %vm13996_vm0 = vmmov %vm13995_vm1  ;;  %9671 = vmatprep.subr.bf16.mxu1 %v9670_v43  ;;  %v9682_v13 = vpack.c.bf16 %v2438_v1, %v2437_v50  ;;  %v9690_v18 = vpack.c.bf16 %v2442_v17, %v2441_v16  ;;  %v9694_v24 = vpack.c.bf16 %v7294_v23, %v7293_v21  ;;  %v7297_v10 = vld [vmem:[%s13986_s4 + $0x120] sm:$0xff]  ;;  %v7298_v32 = vld [vmem:[%s13986_s4 + $0x128] sm:$0xff] }
 0x4de   :  { %v11367_v63 = vsel %vm13996_vm0, %v2898_v35, %v2900_v40  ;;  %vm13997_vm13 = vmmov %vm13996_vm0  ;;  %v9698_v48 = vpack.c.bf16 %v7296_v44, %v7295_v26  ;;  %vm13998_vm1 = vcmp.ge.s32.totalorder %v10881_v5, 0  ;;  %v9702_v51 = vpack.c.bf16 %v7298_v32, %v7297_v10  ;;  %v7299_v36 = vld [vmem:[%s13986_s4 + $0x130] sm:$0xff]  ;;  %v7300_v35 = vld [vmem:[%s13986_s4 + $0x138] sm:$0xff] }
 0x4df   :  { %v11370_v8 = vsel %vm13997_vm13, %v2900_v40, %v2902_v59  ;;  %v7301_v5 = vld [vmem:[%s13986_s4 + $0x140] sm:$0xff]  ;;  %v7306_v12 = vld [vmem:[%s13986_s4 + $0x168] sm:$0xff]  ;;  %v7308_v50 = vld [vmem:[%s13986_s4 + $0x178] sm:$0xff]  ;;  %vm14000_vm15 = vcmp.lt.s32.totalorder %v10979_v3, 16  ;;  %vm14001_vm0 = vcmp.lt.s32.totalorder %v11008_v22, 16  ;;  %vm14002_vm13 = vcmp.lt.s32.totalorder %v11014_v27, 16 }
 0x4e0   :  { %9673 = vmatpush3.bf16.msra.mxu1 %v9670_v43  ;;  %v2440_v43 = vld [vmem:[%s13986_s4 + $0x68] sm:$0xff]  ;;  %v7312_v16 = vld [vmem:[%s13986_s4 + $0x198] sm:$0xff]  ;;  %v7321_v32 = vld [vmem:[%s13986_s4 + $0x1e0] sm:$0xff] }
 0x4e1   :  { %9675 = vmatprep.subr.bf16.mxu1 %v9674_v4  ;;  %v9686_v15 = vpack.c.bf16 %v2440_v43, %v2439_v14  ;;  %v7310_v14 = vld [vmem:[%s13986_s4 + $0x188] sm:$0xff]  ;;  %v7316_v26 = vld [vmem:[%s13986_s4 + $0x1b8] sm:$0xff]  ;;  %v7345_v22 = vld [vmem:[%s14003_s0] ss:$0 sm:$0xff]  ;;  %s14006_s0 = sld [smem:[#allocation49_spill]] }
 0x4e2   :  { %v7314_v21 = vld [vmem:[%s13986_s4 + $0x1a8] sm:$0xff] }
 0x4e3   :  { %v7318_v44 = vld [vmem:[%s13986_s4 + $0x1c8] sm:$0xff] }
 0x4e4   :  { %9677 = vmatpush3.bf16.msra.mxu1 %v9674_v4  ;;  %v7305_v4 = vld [vmem:[%s13986_s4 + $0x160] sm:$0xff] }
 0x4e5   :  { %9679 = vmatprep.subr.bf16.mxu1 %v9678_v42  ;;  %v9718_v45 = vpack.c.bf16 %v7306_v12, %v7305_v4  ;;  %v7331_v12 = vld [vmem:[%s13986_s4 + $0x220] sm:$0xff] }
 0x4e8   :  { %9681 = vmatpush3.bf16.msra.mxu1 %v9678_v42  ;;  %v7307_v42 = vld [vmem:[%s13986_s4 + $0x170] sm:$0xff] }
 0x4e9   :  { %9683 = vmatprep.subr.bf16.mxu1 %v9682_v13  ;;  %v9722_v1 = vpack.c.bf16 %v7308_v50, %v7307_v42  ;;  %v7333_v50 = vld [vmem:[%s13986_s4 + $0x230] sm:$0xff] }
 0x4ec   :  { %9685 = vmatpush3.bf16.msra.mxu1 %v9682_v13  ;;  %v7309_v13 = vld [vmem:[%s13986_s4 + $0x180] sm:$0xff] }
 0x4ed   :  { %9687 = vmatprep.subr.bf16.mxu1 %v9686_v15  ;;  %v9726_v43 = vpack.c.bf16 %v7310_v14, %v7309_v13  ;;  %v7336_v13 = vld [vmem:[%s13986_s4 + $0x248] sm:$0xff] }
 0x4f0   :  { %9689 = vmatpush3.bf16.msra.mxu1 %v9686_v15  ;;  %v7311_v15 = vld [vmem:[%s13986_s4 + $0x190] sm:$0xff] }
 0x4f1   :  { %9691 = vmatprep.subr.bf16.mxu1 %v9690_v18  ;;  %v9730_v17 = vpack.c.bf16 %v7312_v16, %v7311_v15  ;;  %v7339_v15 = vld [vmem:[%s13986_s4 + $0x260] sm:$0xff]  ;;  %v7340_v16 = vld [vmem:[%s13986_s4 + $0x268] sm:$0xff] }
 0x4f4   :  { %9693 = vmatpush3.bf16.msra.mxu1 %v9690_v18  ;;  %v7313_v18 = vld [vmem:[%s13986_s4 + $0x1a0] sm:$0xff] }
 0x4f5   :  { %9695 = vmatprep.subr.bf16.mxu1 %v9694_v24  ;;  %v9734_v23 = vpack.c.bf16 %v7314_v21, %v7313_v18  ;;  %v7341_v18 = vld [vmem:[%s13986_s4 + $0x270] sm:$0xff]  ;;  %v7342_v21 = vld [vmem:[%s13986_s4 + $0x278] sm:$0xff] }
 0x4f7   :  { %8701 = vmatmul.mubr.f32.vlgmr.msra.gmra.mrb[10].mxu1 %v11298_v52  ;;  %v9706_v52 = vpack.c.bf16 %v7300_v35, %v7299_v36  ;;  %v7323_v35 = vld [vmem:[%s13986_s4 + $0x1f0] sm:$0xff] }
 0x4f8   :  { %8703 = vmatprep.mubr.msk.f32.mxu1 %vm13998_vm1, %v11301_v54  ;;  %9697 = vmatpush3.bf16.msra.mxu1 %v9694_v24  ;;  %v7302_v54 = vld [vmem:[%s13986_s4 + $0x148] sm:$0xff]  ;;  %v7315_v24 = vld [vmem:[%s13986_s4 + $0x1b0] sm:$0xff]  ;;  %vm13826_vm1 = vcmask 1040384  }
 0x4f9   :  { %9699 = vmatprep.subr.bf16.mxu1 %v9698_v48  ;;  %v9710_v40 = vpack.c.bf16 %v7302_v54, %v7301_v5  ;;  %v7327_v54 = vld [vmem:[%s13986_s4 + $0x200] sm:$0xff] }
 0x4fb   :  { %8704 = vmatmul.mubr.f32.gmra.mrb[12].mxu1 %v11304_v55  ;;  %v7303_v55 = vld [vmem:[%s13986_s4 + $0x150] sm:$0xff] }
 0x4fc   :  { %9701 = vmatpush3.bf16.msra.mxu1 %v9698_v48  ;;  %8738 = vmatprep.mubr.f32.mxu1 %v11319_v19  ;;  %v7304_v19 = vld [vmem:[%s13986_s4 + $0x158] sm:$0xff] }
 0x4fd   :  { %9703 = vmatprep.subr.bf16.mxu1 %v9702_v51  ;;  %v9714_v59 = vpack.c.bf16 %v7304_v19, %v7303_v55  ;;  %v7329_v19 = vld [vmem:[%s13986_s4 + $0x210] sm:$0xff] }
 0x500   :  { %9705 = vmatpush3.bf16.msra.mxu1 %v9702_v51  ;;  %v7322_v51 = vld [vmem:[%s13986_s4 + $0x1e8] sm:$0xff] }
 0x501   :  { %9707 = vmatprep.subr.bf16.mxu1 %v9706_v52  ;;  %v9750_v36 = vpack.c.bf16 %v7322_v51, %v7321_v32 }
 0x504   :  { %9709 = vmatpush3.bf16.msra.mxu1 %v9706_v52  ;;  %v7324_v52 = vld [vmem:[%s13986_s4 + $0x1f8] sm:$0xff] }
 0x505   :  { %9711 = vmatprep.subr.bf16.mxu1 %v9710_v40  ;;  %v9754_v5 = vpack.c.bf16 %v7324_v52, %v7323_v35 }
 0x508   :  { %9713 = vmatpush3.bf16.msra.mxu1 %v9710_v40  ;;  %v7328_v40 = vld [vmem:[%s13986_s4 + $0x208] sm:$0xff] }
 0x509   :  { %9715 = vmatprep.subr.bf16.mxu1 %v9714_v59  ;;  %v9758_v55 = vpack.c.bf16 %v7328_v40, %v7327_v54 }
 0x50c   :  { %9717 = vmatpush3.bf16.msra.mxu1 %v9714_v59  ;;  %v7330_v59 = vld [vmem:[%s13986_s4 + $0x218] sm:$0xff] }
 0x50d   :  { %9719 = vmatprep.subr.bf16.mxu1 %v9718_v45  ;;  %v9762_v4 = vpack.c.bf16 %v7330_v59, %v7329_v19 }
 0x510   :  { %9721 = vmatpush3.bf16.msra.mxu1 %v9718_v45  ;;  %v7332_v45 = vld [vmem:[%s13986_s4 + $0x228] sm:$0xff] }
 0x511   :  { %9723 = vmatprep.subr.bf16.mxu1 %v9722_v1  ;;  %v9766_v42 = vpack.c.bf16 %v7332_v45, %v7331_v12 }
 0x514   :  { %9725 = vmatpush3.bf16.msra.mxu1 %v9722_v1  ;;  %v7334_v1 = vld [vmem:[%s13986_s4 + $0x238] sm:$0xff] }
 0x515   :  { %9727 = vmatprep.subr.bf16.mxu1 %v9726_v43 }
 0x517   :  { %8739 = vmatmul.mubr.f32.vlgmr.msra.gmra.mrb[10].mxu1 %v11322_v25  ;;  %v9738_v25 = vpack.c.bf16 %v7316_v26, %v7315_v24 }
 0x518   :  { %8741 = vmatprep.mubr.f32.mxu1 %v11331_v28  ;;  %9729 = vmatpush3.bf16.msra.mxu1 %v9726_v43  ;;  %v7317_v28 = vld [vmem:[%s13986_s4 + $0x1c0] sm:$0xff] }
 0x519   :  { %9731 = vmatprep.subr.bf16.mxu1 %v9730_v17  ;;  %v9742_v48 = vpack.c.bf16 %v7318_v44, %v7317_v28 }
 0x51b   :  { %8742 = vmatmul.mubr.f32.gmra.mrb[12].mxu1 %v11334_v29  ;;  %v7319_v29 = vld [vmem:[%s13986_s4 + $0x1d0] sm:$0xff] }
 0x51c   :  { %9733 = vmatpush3.bf16.msra.mxu1 %v9730_v17  ;;  %8776 = vmatprep.mubr.f32.mxu1 %v11338_v30  ;;  %v7320_v30 = vld [vmem:[%s13986_s4 + $0x1d8] sm:$0xff]  ;;  %v9782_v17 = vpack.c.bf16 %v7340_v16, %v7339_v15 }
 0x51d   :  { %9735 = vmatprep.subr.bf16.mxu1 %v9734_v23  ;;  %v9746_v10 = vpack.c.bf16 %v7320_v30, %v7319_v29 }
 0x520   :  { %9737 = vmatpush3.bf16.msra.mxu1 %v9734_v23  ;;  %v9786_v23 = vpack.c.bf16 %v7342_v21, %v7341_v18 }
 0x521   :  { %9739 = vmatprep.subr.bf16.mxu1 %v9738_v25 }
 0x524   :  { %9741 = vmatpush3.bf16.msra.mxu1 %v9738_v25 }
 0x525   :  { %9743 = vmatprep.subr.bf16.mxu1 %v9742_v48 }
 0x528   :  { %9745 = vmatpush3.bf16.msra.mxu1 %v9742_v48 }
 0x529   :  { %9747 = vmatprep.subr.bf16.mxu1 %v9746_v10 }
 0x52c   :  { %9749 = vmatpush3.bf16.msra.mxu1 %v9746_v10 }
 0x52d   :  { %9751 = vmatprep.subr.bf16.mxu1 %v9750_v36 }
 0x530   :  { %9753 = vmatpush3.bf16.msra.mxu1 %v9750_v36 }
 0x531   :  { %9755 = vmatprep.subr.bf16.mxu1 %v9754_v5 }
 0x534   :  { %9757 = vmatpush3.bf16.msra.mxu1 %v9754_v5 }
 0x535   :  { %9759 = vmatprep.subr.bf16.mxu1 %v9758_v55 }
 0x537   :  { %8777 = vmatmul.mubr.msk.f32.vlgmr.msra.gmra.mrb[10].mxu1 %vm13999_vm2, %v11341_v49  ;;  %v9770_v49 = vpack.c.bf16 %v7334_v1, %v7333_v50  ;;  %vm14007_vm2 = vcmask 1046528  }
 0x538   :  { %8779 = vmatprep.mubr.f32.mxu1 %v11351_v33  ;;  %9761 = vmatpush3.bf16.msra.mxu1 %v9758_v55  ;;  %v7335_v33 = vld [vmem:[%s13986_s4 + $0x240] sm:$0xff] }
 0x539   :  { %9763 = vmatprep.subr.bf16.mxu1 %v9762_v4  ;;  %v9774_v14 = vpack.c.bf16 %v7336_v13, %v7335_v33 }
 0x53b   :  { %8780 = vmatmul.mubr.msk.f32.gmra.mrb[12].mxu1 %vm14000_vm15, %v11354_v34  ;;  %v7337_v34 = vld [vmem:[%s13986_s4 + $0x250] sm:$0xff]  ;;  %vm14008_vm15 = vmmov %vm14007_vm2 }
 0x53c   :  { %9765 = vmatpush3.bf16.msra.mxu1 %v9762_v4  ;;  %8814 = vmatprep.mubr.f32.mxu1 %v11359_v57  ;;  %v7338_v57 = vld [vmem:[%s13986_s4 + $0x258] sm:$0xff] }
 0x53d   :  { %9767 = vmatprep.subr.bf16.mxu1 %v9766_v42  ;;  %v9778_v43 = vpack.c.bf16 %v7338_v57, %v7337_v34 }
 0x540   :  { %9769 = vmatpush3.bf16.msra.mxu1 %v9766_v42 }
 0x541   :  { %9771 = vmatprep.subr.bf16.mxu1 %v9770_v49 }
 0x544   :  { %9773 = vmatpush3.bf16.msra.mxu1 %v9770_v49 }
 0x545   :  { %9775 = vmatprep.subr.bf16.mxu1 %v9774_v14 }
 0x548   :  { %9777 = vmatpush3.bf16.msra.mxu1 %v9774_v14 }
 0x549   :  { %9779 = vmatprep.subr.bf16.mxu1 %v9778_v43 }
 0x54c   :  { %9781 = vmatpush3.bf16.msra.mxu1 %v9778_v43 }
 0x54d   :  { %9783 = vmatprep.subr.bf16.mxu1 %v9782_v17 }
 0x550   :  { %9785 = vmatpush3.bf16.msra.mxu1 %v9782_v17 }
 0x551   :  { %9787 = vmatprep.subr.bf16.mxu1 %v9786_v23 }
 0x554   :  { %9789 = vmatpush3.bf16.msra.mxu1 %v9786_v23 }
 0x555   :  { %9934 = vmatprep.subr.bf16.mxu1 %v10599_v11 }
 0x557   :  { %8815 = vmatmul.mubr.msk.f32.vlgmr.msra.gmra.mrb[10].mxu1 %vm14001_vm0, %v11364_v62  ;;  %vm14009_vm0 = vmmov %vm14007_vm2 }
 0x558   :  { %8817 = vmatprep.mubr.f32.mxu1 %v11367_v63  ;;  %9936 = vmatpush3.bf16.msk.msra.mxu1 %vm10851_vm8, %v13906_v0 }
 0x559   :  { %9937 = vmatprep.subr.bf16.mxu1 %v10599_v11 }
 0x55b   :  { %8818 = vmatmul.mubr.msk.f32.gmra.mrb[12].mxu1 %vm14002_vm13, %v11370_v8  ;;  %vm14010_vm13 = vcmask 1045504  }
 0x55c   :  { %9939 = vmatpush3.bf16.msk.msra.mxu1 %vm10883_vm11, %v13906_v0  ;;  %9051 = vmatprep.mubr.msk.f32.mxu1 %vm10601_vm5, %v13885_v2 }
 0x55d   :  { %9940 = vmatprep.subr.bf16.mxu1 %v10599_v11 }
 0x560   :  { %9942 = vmatpush3.bf16.msk.msra.mxu1 %vm11042_vm3, %v13906_v0 }
 0x561   :  { %9943 = vmatprep.subr.bf16.mxu1 %v10599_v11 }
 0x564   :  { %9945 = vmatpush3.bf16.msk.msra.mxu1 %vm11058_vm10, %v13906_v0 }
 0x565   :  { %9946 = vmatprep.subr.bf16.mxu1 %v10599_v11 }
 0x568   :  { %9948 = vmatpush3.bf16.msk.msra.mxu1 %vm11074_vm9, %v13906_v0 }
 0x569   :  { %9949 = vmatprep.subr.bf16.mxu1 %v10599_v11 }
 0x56c   :  { %9951 = vmatpush3.bf16.msk.msra.mxu1 %vm11090_vm6, %v13906_v0 }
 0x56d   :  { %9952 = vmatprep.subr.bf16.mxu1 %v10599_v11 }
 0x570   :  { %9954 = vmatpush3.bf16.msk.msra.mxu1 %vm11110_vm7, %v13906_v0 }
 0x571   :  { %9955 = vmatprep.subr.bf16.mxu1 %v10599_v11 }
 0x574   :  { %9957 = vmatpush3.bf16.msk.msra.mxu1 %vm11124_vm12, %v13906_v0 }
 0x575   :  { %9094 = vmatprep.subr.mxu1 %v13885_v2 }
 0x62a   :  { %v8816_v27 = vpop.f32.mrb[10].mxu1 }
 0x62b   :  { %v2995_v62 = vpop.f32.mrb[11].mxu1  ;;  %v3026_v63 = vadd.f32 %v8816_v27, %v7345_v22  ;;  %v3274_v27 = vld [vmem:[%s14004_s5] sm:$0x1] }
 0x62c   :  { %v3025_v8 = vadd.f32 %v7345_v22, %v2995_v62  ;;  %v7384_v62 = vld [vmem:[%s14005_s1 + $0x80] sm:$0xff] }
 0x62e   :  { %v8819_v24 = vpop.f32.mrb[12].mxu1  ;;  %v3029_v25 = vadd.f32 %v3026_v63, %v3025_v8 }
 0x62f   :  { %v3005_v26 = vpop.f32.mrb[13].mxu1  ;;  %v3028_v44 = vadd.f32 %v8819_v24, %v7345_v22 }
 0x630   :  { %v3027_v28 = vadd.f32 %v7345_v22, %v3005_v26 }
 0x632   :  { %v3030_v48 = vadd.f32 %v3029_v25, %v3027_v28  ;;  %v7386_v25 = vld [vmem:[%s14005_s1 + $0x90] sm:$0xff] }
 0x634   :  { %v3031_v29 = vadd.f32 %v3030_v48, %v3028_v44 }
 0x636   :  { %v3032_v30 = vrot.slane %v3031_v29, 4 }
 0x638   :  { %v3033_v10 = vadd.f32 %v3032_v30, %v3031_v29  ;;  %v7388_v29 = vld [vmem:[%s14005_s1 + $0xa0] sm:$0xff]  ;;  %v7389_v30 = vld [vmem:[%s14005_s1 + $0xa8] sm:$0xff] }
 0x63a   :  { %v3034_v32 = vrot.slane %v3033_v10, 2 }
 0x63c   :  { %v3035_v51 = vadd.f32 %v3034_v32, %v3033_v10  ;;  %v9846_v10 = vpack.c.bf16 %v7389_v30, %v7388_v29  ;;  %v7390_v32 = vld [vmem:[%s14005_s1 + $0xb0] sm:$0xff] }
 0x63e   :  { %v3036_v36 = vrot.slane %v3035_v51, 1 }
 0x640   :  { %v3037_v35 = vadd.f32 %v3036_v36, %v3035_v51  ;;  %v7391_v51 = vld [vmem:[%s14005_s1 + $0xb8] sm:$0xff] }
 0x641   :  { %v9850_v36 = vpack.c.bf16 %v7391_v51, %v7390_v32 }
 0x642   :  { %8853 = vmatmul.mubr.f32.vlgmr.msra.gmra.mrb[4].mxu0 %v3037_v35  ;;  %v7392_v35 = vld [vmem:[%s14005_s1 + $0xc0] sm:$0xff] }
 0x643   :  { %8856 = vmatpush3.msk.msra.mxu0 %vm11141_vm4, %v13883_v31  ;;  %8857 = vmatprep.mubr.msk.f32.mxu0 %vm10601_vm5, %v13885_v2 }
 0x644   :  { %9814 = vmatprep.subr.bf16.mxu0 %v10599_v11 }
 0x715   :  { %v3104_v52 = vpop.f32.mrb[4].mxu0 }
 0x716   :  { %v3108_v5 = vmul.f32 0.001953125, %v3104_v52  ;;  %v8854_v54 = vpop.f32.mrb[5].mxu0  ;;  %v7393_v52 = vld [vmem:[%s14005_s1 + $0xc8] sm:$0xff] }
 0x717   :  { %v7394_v54 = vld [vmem:[%s14005_s1 + $0xd0] sm:$0xff] }
 0x718   :  { %8858 = vmatmul.mubr.msk.f32.vlgmr.msra.gmra.mrb[6].mxu0 %vm13828_vm14, %v3108_v5  ;;  %v9854_v5 = vpack.c.bf16 %v7393_v52, %v7392_v35 }
 0x719   :  { %9816 = vmatpush3.bf16.msk.msra.mxu0 %vm10851_vm8, %v13906_v0  ;;  %8892 = vmatprep.mubr.msk.f32.mxu0 %vm10601_vm5, %v13885_v2 }
 0x71a   :  { %9817 = vmatprep.subr.bf16.mxu0 %v10599_v11 }
 0x71d   :  { %9819 = vmatpush3.bf16.msk.msra.mxu0 %vm10883_vm11, %v13906_v0 }
 0x71e   :  { %9820 = vmatprep.subr.bf16.mxu0 %v10599_v11 }
 0x721   :  { %9822 = vmatpush3.bf16.msk.msra.mxu0 %vm11042_vm3, %v13906_v0 }
 0x722   :  { %9823 = vmatprep.subr.bf16.mxu0 %v10599_v11 }
 0x725   :  { %9825 = vmatpush3.bf16.msk.msra.mxu0 %vm11058_vm10, %v13906_v0 }
 0x726   :  { %9826 = vmatprep.subr.bf16.mxu0 %v10599_v11 }
 0x729   :  { %9828 = vmatpush3.bf16.msk.msra.mxu0 %vm11074_vm9, %v13906_v0 }
 0x72a   :  { %9829 = vmatprep.subr.bf16.mxu0 %v10599_v11 }
 0x72d   :  { %9831 = vmatpush3.bf16.msk.msra.mxu0 %vm11090_vm6, %v13906_v0 }
 0x72e   :  { %9832 = vmatprep.subr.bf16.mxu0 %v10599_v11 }
 0x731   :  { %9834 = vmatpush3.bf16.msk.msra.mxu0 %vm11110_vm7, %v13906_v0 }
 0x732   :  { %9835 = vmatprep.subr.bf16.mxu0 %v10599_v11 }
 0x735   :  { %9837 = vmatpush3.bf16.msk.msra.mxu0 %vm11124_vm12, %v13906_v0 }
 0x736   :  { %8895 = vmatprep.subr.mxu0 %v13885_v2 }
 0x7eb   :  { %v3178_v40 = vpop.f32.mrb[6].mxu0 }
 0x7ec   :  { %v3185_v55 = vrot.slane %v3178_v40, %v11187_v38  ;;  %v8859_v19 = vpop.f32.mrb[7].mxu0  ;;  %v7395_v40 = vld [vmem:[%s14005_s1 + $0xd8] sm:$0xff] }
 0x7ed   :  { %v7396_v19 = vld [vmem:[%s14005_s1 + $0xe0] sm:$0xff] }
 0x7ee   :  { %v11645_v59 = vsub.f32 %v3025_v8, %v3185_v55  ;;  %v11647_v4 = vsub.f32 %v3026_v63, %v3185_v55  ;;  %v11649_v12 = vsub.f32 %v3027_v28, %v3185_v55  ;;  %v11651_v45 = vsub.f32 %v3028_v44, %v3185_v55  ;;  %v7385_v63 = vld [vmem:[%s14005_s1 + $0x88] sm:$0xff]  ;;  %v7387_v28 = vld [vmem:[%s14005_s1 + $0x98] sm:$0xff]  ;;  %v3359_v44 = vld [vmem:[%s14006_s0] sm:$0x1] }
 0x7ef   :  { %v9838_v26 = vpack.c.bf16 %v7385_v63, %v7384_v62  ;;  %v9842_v48 = vpack.c.bf16 %v7387_v28, %v7386_v25  ;;  %v9858_v55 = vpack.c.bf16 %v7395_v40, %v7394_v54 }
 0x7f0   :  { %v3190_v42 = vmul.f32 %v11645_v59, %v11645_v59  ;;  %v3191_v50 = vmul.f32 %v11647_v4, %v11647_v4  ;;  %v3192_v1 = vmul.f32 %v11649_v12, %v11649_v12  ;;  %v3193_v33 = vmul.f32 %v11651_v45, %v11651_v45 }
 0x7f2   :  { %v3194_v49 = vadd.f32 %v3191_v50, %v3190_v42  ;;  %v7397_v42 = vld [vmem:[%s14005_s1 + $0xe8] sm:$0xff]  ;;  %v7398_v50 = vld [vmem:[%s14005_s1 + $0xf0] sm:$0xff] }
 0x7f4   :  { %v3195_v13 = vadd.f32 %v3194_v49, %v3192_v1  ;;  %v9862_v1 = vpack.c.bf16 %v7397_v42, %v7396_v19  ;;  %v7399_v49 = vld [vmem:[%s14005_s1 + $0xf8] sm:$0xff] }
 0x7f6   :  { %v3196_v14 = vadd.f32 %v3195_v13, %v3193_v33  ;;  %v9866_v33 = vpack.c.bf16 %v7399_v49, %v7398_v50  ;;  %v3468_v13 = vld [vmem:[%s14005_s1] sm:$0xff] }
 0x7f8   :  { %v3197_v34 = vrot.slane %v3196_v14, 4 }
 0x7fa   :  { %v3198_v57 = vadd.f32 %v3197_v34, %v3196_v14  ;;  %v3469_v14 = vld [vmem:[%s14005_s1 + $0x8] sm:$0xff] }
 0x7fb   :  { %v9870_v34 = vpack.c.bf16 %v3469_v14, %v3468_v13  ;;  %v3472_v14 = vld [vmem:[%s14005_s1 + $0x20] sm:$0xff] }
 0x7fc   :  { %v3199_v43 = vrot.slane %v3198_v57, 2 }
 0x7fe   :  { %v3200_v15 = vadd.f32 %v3199_v43, %v3198_v57 }
 0x800   :  { %v3201_v16 = vrot.slane %v3200_v15, 1 }
 0x802   :  { %v3202_v17 = vadd.f32 %v3201_v16, %v3200_v15 }
 0x804   :  { %8893 = vmatmul.mubr.f32.vlgmr.msra.gmra.mrb[8].mxu0 %v3202_v17 }
 0x805   :  { %8896 = vmatpush3.msk.msra.mxu0 %vm11141_vm4, %v13883_v31  ;;  %8897 = vmatprep.mubr.msk.f32.mxu0 %vm10601_vm5, %v13885_v2 }
 0x806   :  { %8900 = vmatprep.subr.mxu0 %v13885_v2 }
 0x8d7   :  { %v3269_v18 = vpop.f32.mrb[8].mxu0 }
 0x8d8   :  { %v3273_v21 = vmul.f32 0.001953125, %v3269_v18  ;;  %v8894_v23 = vpop.f32.mrb[9].mxu0 }
 0x8da   :  { %v3275_v22 = vadd.f32 1e-05, %v3273_v21 }
 0x8dc   :  { %10525 = vrsqrt.f32 %v3275_v22 }
 0x8e6   :  { %v10526_v8 = vpop.eup %10525 }
 0x8e7   :  { %v3277_v24 = vmul.f32 %v10526_v8, %v3274_v27 }
 0x8e9   :  { %8898 = vmatmul.mubr.msk.f32.vlgmr.msra.gmra.mrb[10].mxu0 %vm13828_vm14, %v3277_v24 }
 0x8ea   :  { %8901 = vmatpush3.msk.msra.mxu0 %vm11141_vm4, %v13883_v31  ;;  %8902 = vmatprep.mubr.msk.f32.mxu0 %vm10601_vm5, %v13885_v2 }
 0x8eb   :  { %9839 = vmatprep.subr.bf16.mxu0 %v9838_v26 }
 0x8ed   :  { %8903 = vmatmul.mubr.msk.f32.vlgmr.msra.gmra.mrb[12].mxu0 %vm13828_vm14, %v3359_v44 }
 0x8ee   :  { %9841 = vmatpush3.bf16.msra.mxu0 %v9838_v26 }
 0x8ef   :  { %9843 = vmatprep.subr.bf16.mxu0 %v9842_v48 }
 0x8f2   :  { %9845 = vmatpush3.bf16.msra.mxu0 %v9842_v48 }
 0x8f3   :  { %9847 = vmatprep.subr.bf16.mxu0 %v9846_v10 }
 0x8f6   :  { %9849 = vmatpush3.bf16.msra.mxu0 %v9846_v10 }
 0x8f7   :  { %9851 = vmatprep.subr.bf16.mxu0 %v9850_v36 }
 0x8fa   :  { %9853 = vmatpush3.bf16.msra.mxu0 %v9850_v36 }
 0x8fb   :  { %9855 = vmatprep.subr.bf16.mxu0 %v9854_v5 }
 0x8fe   :  { %9857 = vmatpush3.bf16.msra.mxu0 %v9854_v5 }
 0x8ff   :  { %9859 = vmatprep.subr.bf16.mxu0 %v9858_v55 }
 0x902   :  { %9861 = vmatpush3.bf16.msra.mxu0 %v9858_v55 }
 0x903   :  { %9863 = vmatprep.subr.bf16.mxu0 %v9862_v1 }
 0x906   :  { %9865 = vmatpush3.bf16.msra.mxu0 %v9862_v1 }
 0x907   :  { %9867 = vmatprep.subr.bf16.mxu0 %v9866_v33 }
 0x90a   :  { %9869 = vmatpush3.bf16.msra.mxu0 %v9866_v33 }
 0x90b   :  { %9871 = vmatprep.subr.bf16.mxu0 %v9870_v34 }
 0x9bc   :  { %v3347_v57 = vpop.f32.mrb[10].mxu0 }
 0x9bd   :  { %v3354_v43 = vrot.slane %v3347_v57, %v11187_v38  ;;  %v8899_v15 = vpop.f32.mrb[11].mxu0  ;;  %v3473_v57 = vld [vmem:[%s14005_s1 + $0x28] sm:$0xff] }
 0x9bf   :  { %v3355_v16 = vmul.f32 %v3354_v43, %v11645_v59  ;;  %v3356_v18 = vmul.f32 %v3354_v43, %v11647_v4  ;;  %v3357_v21 = vmul.f32 %v3354_v43, %v11649_v12  ;;  %v3358_v23 = vmul.f32 %v3354_v43, %v11651_v45  ;;  %v3470_v59 = vld [vmem:[%s14005_s1 + $0x10] sm:$0xff]  ;;  %v3471_v4 = vld [vmem:[%s14005_s1 + $0x18] sm:$0xff] }
 0x9c0   :  { %v3429_v17 = vpop.f32.mrb[12].mxu0  ;;  %v9874_v30 = vpack.c.bf16 %v3471_v4, %v3470_v59  ;;  %v3482_v4 = vld [vmem:[%s14005_s1 + $0x70] sm:$0xff] }
 0x9c1   :  { %v3436_v22 = vrot.slane %v3429_v17, %v11187_v38  ;;  %v8904_v27 = vpop.f32.mrb[13].mxu0 }
 0x9c2   :  { %v3475_v27 = vld [vmem:[%s14005_s1 + $0x38] sm:$0xff] }
 0x9c3   :  { %v3437_v62 = vadd.f32 %v3436_v22, %v3355_v16  ;;  %v3438_v63 = vadd.f32 %v3436_v22, %v3356_v18  ;;  %v3439_v8 = vadd.f32 %v3436_v22, %v3357_v21  ;;  %v3440_v24 = vadd.f32 %v3436_v22, %v3358_v23  ;;  %v3474_v22 = vld [vmem:[%s14005_s1 + $0x30] sm:$0xff] }
 0x9c4   :  { %v9878_v23 = vpack.c.bf16 %v3473_v57, %v3472_v14  ;;  %v7416_v57 = vld [vmem:[%s14005_s1 + $0x170] sm:$0xff] }
 0x9c5   :  { %v3441_v26 = vmax.f32 %v3437_v62, 0.0  ;;  %v3442_v25 = vmax.f32 %v3438_v63, 0.0  ;;  %v3443_v28 = vmax.f32 %v3439_v8, 0.0  ;;  %v3444_v44 = vmax.f32 %v3440_v24, 0.0  ;;  %v3476_v62 = vld [vmem:[%s14005_s1 + $0x40] sm:$0xff]  ;;  %v3477_v63 = vld [vmem:[%s14005_s1 + $0x48] sm:$0xff] }
 0x9c6   :  { %v9886_v8 = vpack.c.bf16 %v3477_v63, %v3476_v62  ;;  %v3478_v24 = vld [vmem:[%s14005_s1 + $0x50] sm:$0xff] }
 0x9c7   :  { %v3450_v12 = vrot.slane %v3441_v26, 7  ;;  %v3451_v45 = vrot.slane %v3442_v25, 7  ;;  %v3453_v48 = vrot.slane %v3443_v28, 7  ;;  %v3455_v29 = vrot.slane %v3444_v44, 7  ;;  %v3479_v26 = vld [vmem:[%s14005_s1 + $0x58] sm:$0xff]  ;;  %v3480_v28 = vld [vmem:[%s14005_s1 + $0x60] sm:$0xff] }
 0x9c8   :  { %v9890_v25 = vpack.c.bf16 %v3479_v26, %v3478_v24  ;;  %v3481_v44 = vld [vmem:[%s14005_s1 + $0x68] sm:$0xff] }
 0x9c9   :  { %v11747_v10 = vsel %vm13826_vm1, %v3450_v12, %v3451_v45  ;;  %v3462_v32 = vsel %vm13826_vm1, 0.0, %v3450_v12  ;;  %v11751_v51 = vsel %vm13826_vm1, %v3451_v45, %v3453_v48  ;;  %v11754_v36 = vsel %vm13826_vm1, %v3453_v48, %v3455_v29  ;;  %v3483_v12 = vld [vmem:[%s14005_s1 + $0x78] sm:$0xff]  ;;  %v7402_v48 = vld [vmem:[%s14005_s1 + $0x100] sm:$0xff] }
 0x9ca   :  { %v3486_v35 = vrot.slane %v3462_v32, 1  ;;  %v3487_v52 = vrot.slane %v11747_v10, 1  ;;  %v3489_v5 = vrot.slane %v11751_v51, 1  ;;  %v3693_v54 = vrot.slane %v11751_v51, 2 }
 0x9cb   :  { %v3491_v40 = vrot.slane %v11754_v36, 1  ;;  %v3463_v55 = vsel %vm13826_vm1, %v3455_v29, 0.0  ;;  %v3690_v19 = vrot.slane %v3462_v32, 2  ;;  %v3691_v42 = vrot.slane %v11747_v10, 2  ;;  %vm14011_vm1 = vmmov %vm14010_vm13  ;;  %v7403_v29 = vld [vmem:[%s14005_s1 + $0x108] sm:$0xff] }
 0x9cc   :  { %v3488_v50 = vsel %vm14007_vm2, %v3486_v35, %v3487_v52  ;;  %v3490_v1 = vsel %vm14008_vm15, %v3487_v52, %v3489_v5  ;;  %v3493_v49 = vrot.slane %v3463_v55, 1  ;;  %v3695_v33 = vrot.slane %v11754_v36, 2  ;;  %vm14012_vm2 = vmmov %vm14009_vm0  ;;  %v7405_v35 = vld [vmem:[%s14005_s1 + $0x118] sm:$0xff] }
 0x9cd   :  { %8937 = vmatprep.mubr.f32.mxu0 %v3488_v50  ;;  %v3492_v13 = vsel %vm14009_vm0, %v3489_v5, %v3491_v40  ;;  %v3692_v43 = vsel %vm14010_vm13, %v3690_v19, %v3691_v42  ;;  %v11774_v15 = vsel %vm14011_vm1, %v3691_v42, %v3693_v54  ;;  %v3697_v16 = vrot.slane %v3463_v55, 2  ;;  %vm14013_vm15 = vmmov %vm14011_vm1  ;;  %v7406_v5 = vld [vmem:[%s14005_s1 + $0x120] sm:$0xff]  ;;  %v7408_v55 = vld [vmem:[%s14005_s1 + $0x130] sm:$0xff] }
 0x9ce   :  { %8938 = vmatmul.mubr.f32.vlgmr.msra.gmra.mrb[14].mxu0 %v3490_v1  ;;  %v3494_v17 = vsel %vm14012_vm2, %v3491_v40, %v3493_v49  ;;  %v11778_v18 = vsel %vm14013_vm15, %v3693_v54, %v3695_v33  ;;  %vm14014_vm0 = vmmov %vm14011_vm1  ;;  %vm14015_vm1 = vcmp.ge.s32.totalorder %v10771_v20, 0  ;;  %v9894_v59 = vpack.c.bf16 %v3481_v44, %v3480_v28  ;;  %v7407_v54 = vld [vmem:[%s14005_s1 + $0x128] sm:$0xff]  ;;  %v7409_v19 = vld [vmem:[%s14005_s1 + $0x138] sm:$0xff] }
 0x9cf   :  { %9873 = vmatpush3.bf16.msra.mxu0 %v9870_v34  ;;  %8940 = vmatprep.mubr.f32.mxu0 %v3492_v13  ;;  %v11781_v21 = vsel %vm14014_vm0, %v3695_v33, %v3697_v16  ;;  %v9882_v34 = vpack.c.bf16 %v3475_v27, %v3474_v22  ;;  %v9898_v45 = vpack.c.bf16 %v3483_v12, %v3482_v4  ;;  %vm14016_vm13 = vcmp.ge.s32.totalorder %v10806_v37, 0  ;;  %v7411_v42 = vld [vmem:[%s14005_s1 + $0x148] sm:$0xff]  ;;  %v7412_v1 = vld [vmem:[%s14005_s1 + $0x150] sm:$0xff]  ;;  %v7414_v33 = vld [vmem:[%s14005_s1 + $0x160] sm:$0xff] }
 0x9d0   :  { %9875 = vmatprep.subr.bf16.mxu0 %v9874_v30  ;;  %v9910_v40 = vpack.c.bf16 %v7407_v54, %v7406_v5  ;;  %v7415_v13 = vld [vmem:[%s14005_s1 + $0x168] sm:$0xff]  ;;  %vm14017_vm2 = vcmp.lt.s32.totalorder %v10966_v56, 16  ;;  %vm14018_vm15 = vcmp.lt.s32.totalorder %v10979_v3, 16  ;;  %vm14019_vm0 = vcmask 1040384  }
 0x9d1   :  { %v9926_v14 = vpack.c.bf16 %v7415_v13, %v7414_v33 }
 0x9d2   :  { %8941 = vmatmul.mubr.f32.gmra.mrb[16].mxu0 %v3494_v17  ;;  %v7420_v17 = vld [vmem:[%s13794_s10] ss:$0 sm:$0xff] }
 0x9d3   :  { %9877 = vmatpush3.bf16.msra.mxu0 %v9874_v30  ;;  %8975 = vmatprep.mubr.msk.f32.mxu0 %vm14015_vm1, %v3462_v32  ;;  %v9902_v30 = vpack.c.bf16 %v7403_v29, %v7402_v48  ;;  %v7404_v32 = vld [vmem:[%s14005_s1 + $0x110] sm:$0xff]  ;;  %vm14020_vm1 = vmmov %vm14019_vm0 }
 0x9d4   :  { %9879 = vmatprep.subr.bf16.mxu0 %v9878_v23  ;;  %v9906_v52 = vpack.c.bf16 %v7405_v35, %v7404_v32 }
 0x9d7   :  { %9881 = vmatpush3.bf16.msra.mxu0 %v9878_v23 }
 0x9d8   :  { %9883 = vmatprep.subr.bf16.mxu0 %v9882_v34 }
 0x9db   :  { %9885 = vmatpush3.bf16.msra.mxu0 %v9882_v34 }
 0x9dc   :  { %9887 = vmatprep.subr.bf16.mxu0 %v9886_v8 }
 0x9df   :  { %9889 = vmatpush3.bf16.msra.mxu0 %v9886_v8 }
 0x9e0   :  { %9891 = vmatprep.subr.bf16.mxu0 %v9890_v25 }
 0x9e3   :  { %9893 = vmatpush3.bf16.msra.mxu0 %v9890_v25 }
 0x9e4   :  { %9895 = vmatprep.subr.bf16.mxu0 %v9894_v59 }
 0x9e7   :  { %9897 = vmatpush3.bf16.msra.mxu0 %v9894_v59 }
 0x9e8   :  { %9899 = vmatprep.subr.bf16.mxu0 %v9898_v45 }
 0x9eb   :  { %9901 = vmatpush3.bf16.msra.mxu0 %v9898_v45 }
 0x9ec   :  { %9903 = vmatprep.subr.bf16.mxu0 %v9902_v30 }
 0x9ee   :  { %8976 = vmatmul.mubr.f32.vlgmr.msra.gmra.mrb[14].mxu0 %v11747_v10  ;;  %v9914_v10 = vpack.c.bf16 %v7409_v19, %v7408_v55 }
 0x9ef   :  { %8978 = vmatprep.mubr.msk.f32.mxu0 %vm14016_vm13, %v11751_v51  ;;  %9905 = vmatpush3.bf16.msra.mxu0 %v9902_v30  ;;  %v7410_v51 = vld [vmem:[%s14005_s1 + $0x140] sm:$0xff]  ;;  %vm14021_vm13 = vmmov %vm14019_vm0 }
 0x9f0   :  { %9907 = vmatprep.subr.bf16.mxu0 %v9906_v52  ;;  %v9918_v50 = vpack.c.bf16 %v7411_v42, %v7410_v51 }
 0x9f2   :  { %8979 = vmatmul.mubr.f32.gmra.mrb[16].mxu0 %v11754_v36  ;;  %v7413_v36 = vld [vmem:[%s14005_s1 + $0x158] sm:$0xff] }
 0x9f3   :  { %9909 = vmatpush3.bf16.msra.mxu0 %v9906_v52  ;;  %9013 = vmatprep.mubr.f32.mxu0 %v3692_v43  ;;  %v9922_v49 = vpack.c.bf16 %v7413_v36, %v7412_v1  ;;  %v7417_v43 = vld [vmem:[%s14005_s1 + $0x178] sm:$0xff] }
 0x9f4   :  { %9911 = vmatprep.subr.bf16.mxu0 %v9910_v40  ;;  %v9930_v16 = vpack.c.bf16 %v7417_v43, %v7416_v57 }
 0x9f7   :  { %9913 = vmatpush3.bf16.msra.mxu0 %v9910_v40 }
 0x9f8   :  { %9915 = vmatprep.subr.bf16.mxu0 %v9914_v10 }
 0x9fb   :  { %9917 = vmatpush3.bf16.msra.mxu0 %v9914_v10 }
 0x9fc   :  { %9919 = vmatprep.subr.bf16.mxu0 %v9918_v50 }
 0x9ff   :  { %9921 = vmatpush3.bf16.msra.mxu0 %v9918_v50 }
 0xa00   :  { %9923 = vmatprep.subr.bf16.mxu0 %v9922_v49 }
 0xa03   :  { %9925 = vmatpush3.bf16.msra.mxu0 %v9922_v49 }
 0xa04   :  { %9927 = vmatprep.subr.bf16.mxu0 %v9926_v14 }
 0xa07   :  { %9929 = vmatpush3.bf16.msra.mxu0 %v9926_v14 }
 0xa08   :  { %9931 = vmatprep.subr.bf16.mxu0 %v9930_v16 }
 0xa0b   :  { %9933 = vmatpush3.bf16.msra.mxu0 %v9930_v16 }
 0xa0c   :  { %9054 = vmatprep.subr.mxu0 %v13885_v2 }
 0xa0e   :  { %9014 = vmatmul.mubr.msk.f32.vlgmr.msra.gmra.mrb[14].mxu0 %vm14017_vm2, %v11774_v15  ;;  %vm14022_vm2 = vmmov %vm14019_vm0 }
 0xa0f   :  { %9016 = vmatprep.mubr.f32.mxu0 %v11778_v18  ;;  %9055 = vmatpush3.msk.msra.mxu0 %vm11141_vm4, %v13883_v31 }
 0xa10   :  { %9958 = vmatprep.subr.bf16.mxu0 %v10599_v11 }
 0xa12   :  { %9017 = vmatmul.mubr.msk.f32.gmra.mrb[16].mxu0 %vm14018_vm15, %v11781_v21  ;;  %vm14023_vm15 = vmmov %vm14019_vm0 }
 0xa13   :  { %9056 = vmatprep.mubr.msk.f32.mxu0 %vm10601_vm5, %v13885_v2 }
 0xae1   :  { %v9015_v15 = vpop.f32.mrb[14].mxu0 }
 0xae2   :  { %v3790_v23 = vpop.f32.mrb[15].mxu0  ;;  %v3821_v18 = vadd.f32 %v9015_v15, %v7420_v17  ;;  %v4069_v15 = vld [vmem:[%s13795_s11] sm:$0x1] }
 0xae3   :  { %v3820_v22 = vadd.f32 %v7420_v17, %v3790_v23  ;;  %v7459_v23 = vld [vmem:[%s13796_s13 + $0x80] sm:$0xff] }
 0xae5   :  { %v9018_v27 = vpop.f32.mrb[16].mxu0  ;;  %v3824_v62 = vadd.f32 %v3821_v18, %v3820_v22 }
 0xae6   :  { %v3800_v34 = vpop.f32.mrb[17].mxu0  ;;  %v3823_v8 = vadd.f32 %v9018_v27, %v7420_v17 }
 0xae7   :  { %v3822_v63 = vadd.f32 %v7420_v17, %v3800_v34 }
 0xae9   :  { %v3825_v24 = vadd.f32 %v3824_v62, %v3822_v63  ;;  %v7461_v62 = vld [vmem:[%s13796_s13 + $0x90] sm:$0xff] }
 0xaeb   :  { %v3826_v26 = vadd.f32 %v3825_v24, %v3823_v8 }
 0xaed   :  { %v3827_v25 = vrot.slane %v3826_v26, 4 }
 0xaef   :  { %v3828_v21 = vadd.f32 %v3827_v25, %v3826_v26  ;;  %v7463_v26 = vld [vmem:[%s13796_s13 + $0xa0] sm:$0xff]  ;;  %v7464_v25 = vld [vmem:[%s13796_s13 + $0xa8] sm:$0xff] }
 0xaf1   :  { %v3829_v28 = vrot.slane %v3828_v21, 2 }
 0xaf3   :  { %v3830_v44 = vadd.f32 %v3829_v28, %v3828_v21  ;;  %v9990_v21 = vpack.c.bf16 %v7464_v25, %v7463_v26  ;;  %v7465_v28 = vld [vmem:[%s13796_s13 + $0xb0] sm:$0xff] }
 0xaf5   :  { %v3831_v59 = vrot.slane %v3830_v44, 1 }
 0xaf7   :  { %v3832_v4 = vadd.f32 %v3831_v59, %v3830_v44  ;;  %v7466_v44 = vld [vmem:[%s13796_s13 + $0xb8] sm:$0xff] }
 0xaf8   :  { %v9994_v59 = vpack.c.bf16 %v7466_v44, %v7465_v28 }
 0xaf9   :  { %9052 = vmatmul.mubr.f32.vlgmr.msra.gmra.mrb[14].mxu1 %v3832_v4  ;;  %v7467_v4 = vld [vmem:[%s13796_s13 + $0xc0] sm:$0xff] }
 0xafa   :  { %9095 = vmatpush3.msk.msra.mxu1 %vm11141_vm4, %v13883_v31  ;;  %9096 = vmatprep.mubr.msk.f32.mxu1 %vm10601_vm5, %v13885_v2 }
 0xafb   :  { %9099 = vmatprep.subr.mxu1 %v13885_v2 }
 0xbcc   :  { %v3899_v12 = vpop.f32.mrb[14].mxu1 }
 0xbcd   :  { %v3903_v45 = vmul.f32 0.001953125, %v3899_v12  ;;  %v9053_v48 = vpop.f32.mrb[15].mxu1  ;;  %v7468_v12 = vld [vmem:[%s13796_s13 + $0xc8] sm:$0xff] }
 0xbce   :  { %v7469_v48 = vld [vmem:[%s13796_s13 + $0xd0] sm:$0xff] }
 0xbcf   :  { %9057 = vmatmul.mubr.msk.f32.vlgmr.msra.gmra.mrb[18].mxu0 %vm13828_vm14, %v3903_v45  ;;  %v9998_v45 = vpack.c.bf16 %v7468_v12, %v7467_v4 }
 0xbd0   :  { %9960 = vmatpush3.bf16.msk.msra.mxu0 %vm10851_vm8, %v13906_v0  ;;  %9091 = vmatprep.mubr.msk.f32.mxu0 %vm10601_vm5, %v13885_v2 }
 0xbd1   :  { %9961 = vmatprep.subr.bf16.mxu0 %v10599_v11 }
 0xbd4   :  { %9963 = vmatpush3.bf16.msk.msra.mxu0 %vm10883_vm11, %v13906_v0 }
 0xbd5   :  { %9964 = vmatprep.subr.bf16.mxu0 %v10599_v11 }
 0xbd8   :  { %9966 = vmatpush3.bf16.msk.msra.mxu0 %vm11042_vm3, %v13906_v0 }
 0xbd9   :  { %9967 = vmatprep.subr.bf16.mxu0 %v10599_v11 }
 0xbdc   :  { %9969 = vmatpush3.bf16.msk.msra.mxu0 %vm11058_vm10, %v13906_v0 }
 0xbdd   :  { %9970 = vmatprep.subr.bf16.mxu0 %v10599_v11 }
 0xbe0   :  { %9972 = vmatpush3.bf16.msk.msra.mxu0 %vm11074_vm9, %v13906_v0 }
 0xbe1   :  { %9973 = vmatprep.subr.bf16.mxu0 %v10599_v11 }
 0xbe4   :  { %9975 = vmatpush3.bf16.msk.msra.mxu0 %vm11090_vm6, %v13906_v0 }
 0xbe5   :  { %9976 = vmatprep.subr.bf16.mxu0 %v10599_v11 }
 0xbe8   :  { %9978 = vmatpush3.bf16.msk.msra.mxu0 %vm11110_vm7, %v13906_v0 }
 0xbe9   :  { %9979 = vmatprep.subr.bf16.mxu0 %v10599_v11 }
 0xbec   :  { %9981 = vmatpush3.bf16.msk.msra.mxu0 %vm11124_vm12, %v13906_v0 }
 0xbed   :  { %10078 = vmatprep.subr.bf16.mxu0 %v10599_v11 }
 0xca2   :  { %v3973_v29 = vpop.f32.mrb[18].mxu0 }
 0xca3   :  { %v3980_v30 = vrot.slane %v3973_v29, %v11187_v38  ;;  %v9058_v32 = vpop.f32.mrb[19].mxu0  ;;  %v7470_v29 = vld [vmem:[%s13796_s13 + $0xd8] sm:$0xff] }
 0xca4   :  { %v7471_v32 = vld [vmem:[%s13796_s13 + $0xe0] sm:$0xff] }
 0xca5   :  { %v11927_v35 = vsub.f32 %v3820_v22, %v3980_v30  ;;  %v11929_v52 = vsub.f32 %v3821_v18, %v3980_v30  ;;  %v11931_v5 = vsub.f32 %v3822_v63, %v3980_v30  ;;  %v11933_v54 = vsub.f32 %v3823_v8, %v3980_v30  ;;  %v7460_v18 = vld [vmem:[%s13796_s13 + $0x88] sm:$0xff]  ;;  %v7462_v63 = vld [vmem:[%s13796_s13 + $0x98] sm:$0xff]  ;;  %v4154_v8 = vld [vmem:[%s13797_s12] sm:$0x1] }
 0xca6   :  { %v9982_v34 = vpack.c.bf16 %v7460_v18, %v7459_v23  ;;  %v9986_v24 = vpack.c.bf16 %v7462_v63, %v7461_v62  ;;  %v10002_v30 = vpack.c.bf16 %v7470_v29, %v7469_v48 }
 0xca7   :  { %v3985_v40 = vmul.f32 %v11927_v35, %v11927_v35  ;;  %v3986_v55 = vmul.f32 %v11929_v52, %v11929_v52  ;;  %v3987_v19 = vmul.f32 %v11931_v5, %v11931_v5  ;;  %v3988_v51 = vmul.f32 %v11933_v54, %v11933_v54 }
 0xca9   :  { %v3989_v10 = vadd.f32 %v3986_v55, %v3985_v40  ;;  %v7472_v40 = vld [vmem:[%s13796_s13 + $0xe8] sm:$0xff]  ;;  %v7473_v55 = vld [vmem:[%s13796_s13 + $0xf0] sm:$0xff] }
 0xcab   :  { %v3990_v42 = vadd.f32 %v3989_v10, %v3987_v19  ;;  %v10006_v19 = vpack.c.bf16 %v7472_v40, %v7471_v32  ;;  %v7474_v10 = vld [vmem:[%s13796_s13 + $0xf8] sm:$0xff] }
 0xcad   :  { %v3991_v50 = vadd.f32 %v3990_v42, %v3988_v51  ;;  %v10010_v51 = vpack.c.bf16 %v7474_v10, %v7473_v55  ;;  %v4262_v42 = vld [vmem:[%s13796_s13] sm:$0xff] }
 0xcaf   :  { %v3992_v1 = vrot.slane %v3991_v50, 4 }
 0xcb1   :  { %v3993_v36 = vadd.f32 %v3992_v1, %v3991_v50  ;;  %v4263_v50 = vld [vmem:[%s13796_s13 + $0x8] sm:$0xff] }
 0xcb2   :  { %v10014_v1 = vpack.c.bf16 %v4263_v50, %v4262_v42  ;;  %v4266_v50 = vld [vmem:[%s13796_s13 + $0x20] sm:$0xff] }
 0xcb3   :  { %v3994_v49 = vrot.slane %v3993_v36, 2 }
 0xcb5   :  { %v3995_v33 = vadd.f32 %v3994_v49, %v3993_v36 }
 0xcb7   :  { %v3996_v13 = vrot.slane %v3995_v33, 1 }
 0xcb9   :  { %v3997_v14 = vadd.f32 %v3996_v13, %v3995_v33 }
 0xcbb   :  { %9092 = vmatmul.mubr.f32.vlgmr.msra.gmra.mrb[20].mxu0 %v3997_v14 }
 0xcbc   :  { %10080 = vmatpush3.bf16.msk.msra.mxu0 %vm10851_vm8, %v13906_v0  ;;  %9250 = vmatprep.mubr.msk.f32.mxu0 %vm10601_vm5, %v13885_v2 }
 0xcbd   :  { %10081 = vmatprep.subr.bf16.mxu0 %v10599_v11 }
 0xcc0   :  { %10083 = vmatpush3.bf16.msk.msra.mxu0 %vm10883_vm11, %v13906_v0 }
 0xcc1   :  { %10084 = vmatprep.subr.bf16.mxu0 %v10599_v11 }
 0xcc4   :  { %10086 = vmatpush3.bf16.msk.msra.mxu0 %vm11042_vm3, %v13906_v0 }
 0xcc5   :  { %10087 = vmatprep.subr.bf16.mxu0 %v10599_v11 }
 0xcc8   :  { %10089 = vmatpush3.bf16.msk.msra.mxu0 %vm11058_vm10, %v13906_v0 }
 0xcc9   :  { %10090 = vmatprep.subr.bf16.mxu0 %v10599_v11 }
 0xccc   :  { %10092 = vmatpush3.bf16.msk.msra.mxu0 %vm11074_vm9, %v13906_v0 }
 0xccd   :  { %10093 = vmatprep.subr.bf16.mxu0 %v10599_v11 }
 0xcd0   :  { %10095 = vmatpush3.bf16.msk.msra.mxu0 %vm11090_vm6, %v13906_v0 }
 0xcd1   :  { %10096 = vmatprep.subr.bf16.mxu0 %v10599_v11 }
 0xcd4   :  { %10098 = vmatpush3.bf16.msk.msra.mxu0 %vm11110_vm7, %v13906_v0 }
 0xcd5   :  { %10099 = vmatprep.subr.bf16.mxu0 %v10599_v11 }
 0xcd8   :  { %10101 = vmatpush3.bf16.msk.msra.mxu0 %vm11124_vm12, %v13906_v0 }
 0xcd9   :  { %9253 = vmatprep.subr.mxu0 %v13885_v2 }
 0xd8e   :  { %v4064_v57 = vpop.f32.mrb[20].mxu0 }
 0xd8f   :  { %v4068_v43 = vmul.f32 0.001953125, %v4064_v57  ;;  %v9093_v16 = vpop.f32.mrb[21].mxu0 }
 0xd91   :  { %v4070_v17 = vadd.f32 1e-05, %v4068_v43 }
 0xd93   :  { %10527 = vrsqrt.f32 %v4070_v17 }
 0xd9d   :  { %v10528_v22 = vpop.eup %10527 }
 0xd9e   :  { %v4072_v27 = vmul.f32 %v10528_v22, %v4069_v15 }
 0xda0   :  { %9097 = vmatmul.mubr.msk.f32.vlgmr.msra.gmra.mrb[16].mxu1 %vm13828_vm14, %v4072_v27 }
 0xda1   :  { %9100 = vmatpush3.msk.msra.mxu1 %vm11141_vm4, %v13883_v31  ;;  %9101 = vmatprep.mubr.msk.f32.mxu1 %vm10601_vm5, %v13885_v2 }
 0xda2   :  { %9983 = vmatprep.subr.bf16.mxu1 %v9982_v34 }
 0xda4   :  { %9102 = vmatmul.mubr.msk.f32.vlgmr.msra.gmra.mrb[18].mxu1 %vm13828_vm14, %v4154_v8 }
 0xda5   :  { %9985 = vmatpush3.bf16.msra.mxu1 %v9982_v34 }
 0xda6   :  { %9987 = vmatprep.subr.bf16.mxu1 %v9986_v24 }
 0xda9   :  { %9989 = vmatpush3.bf16.msra.mxu1 %v9986_v24 }
 0xdaa   :  { %9991 = vmatprep.subr.bf16.mxu1 %v9990_v21 }
 0xdad   :  { %9993 = vmatpush3.bf16.msra.mxu1 %v9990_v21 }
 0xdae   :  { %9995 = vmatprep.subr.bf16.mxu1 %v9994_v59 }
 0xdb1   :  { %9997 = vmatpush3.bf16.msra.mxu1 %v9994_v59 }
 0xdb2   :  { %9999 = vmatprep.subr.bf16.mxu1 %v9998_v45 }
 0xdb5   :  { %10001 = vmatpush3.bf16.msra.mxu1 %v9998_v45 }
 0xdb6   :  { %10003 = vmatprep.subr.bf16.mxu1 %v10002_v30 }
 0xdb9   :  { %10005 = vmatpush3.bf16.msra.mxu1 %v10002_v30 }
 0xdba   :  { %10007 = vmatprep.subr.bf16.mxu1 %v10006_v19 }
 0xdbd   :  { %10009 = vmatpush3.bf16.msra.mxu1 %v10006_v19 }
 0xdbe   :  { %10011 = vmatprep.subr.bf16.mxu1 %v10010_v51 }
 0xdc1   :  { %10013 = vmatpush3.bf16.msra.mxu1 %v10010_v51 }
 0xdc2   :  { %10015 = vmatprep.subr.bf16.mxu1 %v10014_v1 }
 0xe73   :  { %v4142_v36 = vpop.f32.mrb[16].mxu1 }
 0xe74   :  { %v4149_v49 = vrot.slane %v4142_v36, %v11187_v38  ;;  %v9098_v33 = vpop.f32.mrb[17].mxu1  ;;  %v4267_v36 = vld [vmem:[%s13796_s13 + $0x28] sm:$0xff] }
 0xe76   :  { %v4150_v13 = vmul.f32 %v4149_v49, %v11927_v35  ;;  %v4151_v57 = vmul.f32 %v4149_v49, %v11929_v52  ;;  %v4152_v43 = vmul.f32 %v4149_v49, %v11931_v5  ;;  %v4153_v16 = vmul.f32 %v4149_v49, %v11933_v54  ;;  %v4264_v35 = vld [vmem:[%s13796_s13 + $0x10] sm:$0xff]  ;;  %v4265_v52 = vld [vmem:[%s13796_s13 + $0x18] sm:$0xff] }
 0xe77   :  { %v4224_v14 = vpop.f32.mrb[18].mxu1  ;;  %v10018_v25 = vpack.c.bf16 %v4265_v52, %v4264_v35  ;;  %v4276_v52 = vld [vmem:[%s13796_s13 + $0x70] sm:$0xff] }
 0xe78   :  { %v4231_v17 = vrot.slane %v4224_v14, %v11187_v38  ;;  %v9103_v15 = vpop.f32.mrb[19].mxu1 }
 0xe79   :  { %v4269_v15 = vld [vmem:[%s13796_s13 + $0x38] sm:$0xff] }
 0xe7a   :  { %v4232_v23 = vadd.f32 %v4231_v17, %v4150_v13  ;;  %v4233_v18 = vadd.f32 %v4231_v17, %v4151_v57  ;;  %v4234_v22 = vadd.f32 %v4231_v17, %v4152_v43  ;;  %v4235_v27 = vadd.f32 %v4231_v17, %v4153_v16  ;;  %v4268_v17 = vld [vmem:[%s13796_s13 + $0x30] sm:$0xff] }
 0xe7b   :  { %v10022_v16 = vpack.c.bf16 %v4267_v36, %v4266_v50  ;;  %v7491_v36 = vld [vmem:[%s13796_s13 + $0x170] sm:$0xff] }
 0xe7c   :  { %v4236_v34 = vmax.f32 %v4232_v23, 0.0  ;;  %v4237_v62 = vmax.f32 %v4233_v18, 0.0  ;;  %v4238_v63 = vmax.f32 %v4234_v22, 0.0  ;;  %v4239_v8 = vmax.f32 %v4235_v27, 0.0  ;;  %v4270_v23 = vld [vmem:[%s13796_s13 + $0x40] sm:$0xff]  ;;  %v4271_v18 = vld [vmem:[%s13796_s13 + $0x48] sm:$0xff] }
 0xe7d   :  { %v10030_v22 = vpack.c.bf16 %v4271_v18, %v4270_v23  ;;  %v4272_v27 = vld [vmem:[%s13796_s13 + $0x50] sm:$0xff] }
 0xe7e   :  { %v4244_v5 = vrot.slane %v4236_v34, 7  ;;  %v4245_v54 = vrot.slane %v4237_v62, 7  ;;  %v4247_v24 = vrot.slane %v4238_v63, 7  ;;  %v4249_v26 = vrot.slane %v4239_v8, 7  ;;  %v4273_v34 = vld [vmem:[%s13796_s13 + $0x58] sm:$0xff]  ;;  %v4274_v63 = vld [vmem:[%s13796_s13 + $0x60] sm:$0xff] }
 0xe7f   :  { %v10034_v62 = vpack.c.bf16 %v4273_v34, %v4272_v27  ;;  %v4275_v8 = vld [vmem:[%s13796_s13 + $0x68] sm:$0xff] }
 0xe80   :  { %v12057_v21 = vsel %vm14019_vm0, %v4244_v5, %v4245_v54  ;;  %v4256_v28 = vsel %vm14020_vm1, 0.0, %v4244_v5  ;;  %v12061_v44 = vsel %vm14021_vm13, %v4245_v54, %v4247_v24  ;;  %v12064_v59 = vsel %vm14022_vm2, %v4247_v24, %v4249_v26  ;;  %v4277_v5 = vld [vmem:[%s13796_s13 + $0x78] sm:$0xff]  ;;  %v7477_v24 = vld [vmem:[%s13796_s13 + $0x100] sm:$0xff] }
 0xe81   :  { %v4280_v4 = vrot.slane %v4256_v28, 1  ;;  %v4281_v12 = vrot.slane %v12057_v21, 1  ;;  %v4283_v45 = vrot.slane %v12061_v44, 1  ;;  %v4487_v48 = vrot.slane %v12061_v44, 2 }
 0xe82   :  { %v4285_v29 = vrot.slane %v12064_v59, 1  ;;  %v4257_v30 = vsel %vm14023_vm15, %v4249_v26, 0.0  ;;  %v4484_v32 = vrot.slane %v4256_v28, 2  ;;  %v4485_v40 = vrot.slane %v12057_v21, 2  ;;  %v7478_v26 = vld [vmem:[%s13796_s13 + $0x108] sm:$0xff] }
 0xe83   :  { %vm14024_vm0 = vcmask 1046528   ;;  %v4287_v10 = vrot.slane %v4257_v30, 1  ;;  %v4489_v51 = vrot.slane %v12064_v59, 2  ;;  %vm14027_vm2 = vcmask 1045504  }
 0xe84   :  { %v4282_v55 = vsel %vm14024_vm0, %v4280_v4, %v4281_v12  ;;  %vm14025_vm1 = vmmov %vm14024_vm0  ;;  %v4486_v49 = vsel %vm14027_vm2, %v4484_v32, %v4485_v40  ;;  %v4491_v13 = vrot.slane %v4257_v30, 2  ;;  %v10038_v35 = vpack.c.bf16 %v4275_v8, %v4274_v63  ;;  %v7480_v4 = vld [vmem:[%s13796_s13 + $0x118] sm:$0xff]  ;;  %v7483_v30 = vld [vmem:[%s13796_s13 + $0x130] sm:$0xff] }
 0xe85   :  { %v4284_v19 = vsel %vm14025_vm1, %v4281_v12, %v4283_v45  ;;  %9136 = vmatprep.mubr.f32.mxu1 %v4282_v55  ;;  %vm14026_vm13 = vmmov %vm14024_vm0  ;;  %v4288_v14 = vsel %vm14024_vm0, %v4285_v29, %v4287_v10  ;;  %v10042_v54 = vpack.c.bf16 %v4277_v5, %v4276_v52  ;;  %v7484_v32 = vld [vmem:[%s13796_s13 + $0x138] sm:$0xff]  ;;  %vm14033_vm0 = vcmp.lt.s32.totalorder %v10966_v56, 16 }
 0xe86   :  { %v4286_v42 = vsel %vm14026_vm13, %v4283_v45, %v4285_v29  ;;  %vm14028_vm15 = vmmov %vm14027_vm2  ;;  %9137 = vmatmul.mubr.f32.vlgmr.msra.gmra.mrb[20].mxu1 %v4284_v19  ;;  %v7481_v45 = vld [vmem:[%s13796_s13 + $0x120] sm:$0xff]  ;;  %v7487_v19 = vld [vmem:[%s13796_s13 + $0x150] sm:$0xff] }
 0xe87   :  { %v12084_v33 = vsel %vm14028_vm15, %v4485_v40, %v4487_v48  ;;  %vm14029_vm1 = vmmov %vm14027_vm2  ;;  %10017 = vmatpush3.bf16.msra.mxu1 %v10014_v1  ;;  %9139 = vmatprep.mubr.f32.mxu1 %v4286_v42  ;;  %vm14031_vm2 = vcmp.ge.s32.totalorder %v10771_v20, 0  ;;  %v10026_v1 = vpack.c.bf16 %v4269_v15, %v4268_v17  ;;  %vm14032_vm15 = vcmp.ge.s32.totalorder %v10806_v37, 0  ;;  %v7486_v40 = vld [vmem:[%s13796_s13 + $0x148] sm:$0xff] }
 0xe88   :  { %v12088_v57 = vsel %vm14029_vm1, %v4487_v48, %v4489_v51  ;;  %vm14030_vm13 = vmmov %vm14029_vm1  ;;  %10019 = vmatprep.subr.bf16.mxu1 %v10018_v25  ;;  %v7482_v48 = vld [vmem:[%s13796_s13 + $0x128] sm:$0xff]  ;;  %vm14034_vm1 = vcmp.lt.s32.totalorder %v10979_v3, 16 }
 0xe89   :  { %v12091_v43 = vsel %vm14030_vm13, %v4489_v51, %v4491_v13  ;;  %v10054_v29 = vpack.c.bf16 %v7482_v48, %v7481_v45  ;;  %v7489_v51 = vld [vmem:[%s13796_s13 + $0x160] sm:$0xff]  ;;  %v7490_v42 = vld [vmem:[%s13796_s13 + $0x168] sm:$0xff]  ;;  %vm14035_vm13 = vcmask 1040384  }
 0xe8a   :  { %9140 = vmatmul.mubr.f32.gmra.mrb[22].mxu1 %v4288_v14  ;;  %v10070_v50 = vpack.c.bf16 %v7490_v42, %v7489_v51 }
 0xe8b   :  { %10021 = vmatpush3.bf16.msra.mxu1 %v10018_v25  ;;  %9174 = vmatprep.mubr.msk.f32.mxu1 %vm14031_vm2, %v4256_v28  ;;  %v10046_v25 = vpack.c.bf16 %v7478_v26, %v7477_v24  ;;  %v7479_v28 = vld [vmem:[%s13796_s13 + $0x110] sm:$0xff]  ;;  %vm14036_vm2 = vmmov %vm14035_vm13 }
 0xe8c   :  { %10023 = vmatprep.subr.bf16.mxu1 %v10022_v16  ;;  %v10050_v12 = vpack.c.bf16 %v7480_v4, %v7479_v28 }
 0xe8f   :  { %10025 = vmatpush3.bf16.msra.mxu1 %v10022_v16 }
 0xe90   :  { %10027 = vmatprep.subr.bf16.mxu1 %v10026_v1 }
 0xe93   :  { %10029 = vmatpush3.bf16.msra.mxu1 %v10026_v1 }
 0xe94   :  { %10031 = vmatprep.subr.bf16.mxu1 %v10030_v22 }
 0xe97   :  { %10033 = vmatpush3.bf16.msra.mxu1 %v10030_v22 }
 0xe98   :  { %10035 = vmatprep.subr.bf16.mxu1 %v10034_v62 }
 0xe9b   :  { %10037 = vmatpush3.bf16.msra.mxu1 %v10034_v62 }
 0xe9c   :  { %10039 = vmatprep.subr.bf16.mxu1 %v10038_v35 }
 0xe9f   :  { %10041 = vmatpush3.bf16.msra.mxu1 %v10038_v35 }
 0xea0   :  { %10043 = vmatprep.subr.bf16.mxu1 %v10042_v54 }
 0xea3   :  { %10045 = vmatpush3.bf16.msra.mxu1 %v10042_v54 }
 0xea4   :  { %10047 = vmatprep.subr.bf16.mxu1 %v10046_v25 }
 0xea6   :  { %9175 = vmatmul.mubr.f32.vlgmr.msra.gmra.mrb[20].mxu1 %v12057_v21  ;;  %v10058_v21 = vpack.c.bf16 %v7484_v32, %v7483_v30 }
 0xea7   :  { %9177 = vmatprep.mubr.msk.f32.mxu1 %vm14032_vm15, %v12061_v44  ;;  %10049 = vmatpush3.bf16.msra.mxu1 %v10046_v25  ;;  %v7485_v44 = vld [vmem:[%s13796_s13 + $0x140] sm:$0xff]  ;;  %vm14037_vm15 = vmmov %vm14036_vm2 }
 0xea8   :  { %10051 = vmatprep.subr.bf16.mxu1 %v10050_v12  ;;  %v10062_v55 = vpack.c.bf16 %v7486_v40, %v7485_v44 }
 0xeaa   :  { %9178 = vmatmul.mubr.f32.gmra.mrb[22].mxu1 %v12064_v59  ;;  %v7488_v59 = vld [vmem:[%s13796_s13 + $0x158] sm:$0xff] }
 0xeab   :  { %10053 = vmatpush3.bf16.msra.mxu1 %v10050_v12  ;;  %9212 = vmatprep.mubr.f32.mxu1 %v4486_v49  ;;  %v10066_v10 = vpack.c.bf16 %v7488_v59, %v7487_v19  ;;  %v7492_v49 = vld [vmem:[%s13796_s13 + $0x178] sm:$0xff] }
 0xeac   :  { %10055 = vmatprep.subr.bf16.mxu1 %v10054_v29  ;;  %v10074_v13 = vpack.c.bf16 %v7492_v49, %v7491_v36 }
 0xeaf   :  { %10057 = vmatpush3.bf16.msra.mxu1 %v10054_v29 }
 0xeb0   :  { %10059 = vmatprep.subr.bf16.mxu1 %v10058_v21 }
 0xeb3   :  { %10061 = vmatpush3.bf16.msra.mxu1 %v10058_v21 }
 0xeb4   :  { %10063 = vmatprep.subr.bf16.mxu1 %v10062_v55 }
 0xeb7   :  { %10065 = vmatpush3.bf16.msra.mxu1 %v10062_v55 }
 0xeb8   :  { %10067 = vmatprep.subr.bf16.mxu1 %v10066_v10 }
 0xebb   :  { %10069 = vmatpush3.bf16.msra.mxu1 %v10066_v10 }
 0xebc   :  { %10071 = vmatprep.subr.bf16.mxu1 %v10070_v50 }
 0xebf   :  { %10073 = vmatpush3.bf16.msra.mxu1 %v10070_v50 }
 0xec0   :  { %10075 = vmatprep.subr.bf16.mxu1 %v10074_v13 }
 0xec3   :  { %10077 = vmatpush3.bf16.msra.mxu1 %v10074_v13 }
 0xec4   :  { %10222 = vmatprep.subr.bf16.mxu1 %v10599_v11 }
 0xec6   :  { %9213 = vmatmul.mubr.msk.f32.vlgmr.msra.gmra.mrb[20].mxu1 %vm14033_vm0, %v12084_v33  ;;  %v7495_v33 = vld [vmem:[%s13798_s14] ss:$0 sm:$0xff]  ;;  %vm14038_vm0 = vmmov %vm14036_vm2 }
 0xec7   :  { %9215 = vmatprep.mubr.f32.mxu1 %v12088_v57  ;;  %10224 = vmatpush3.bf16.msk.msra.mxu1 %vm10851_vm8, %v13906_v0 }
 0xec8   :  { %10225 = vmatprep.subr.bf16.mxu1 %v10599_v11 }
 0xeca   :  { %9216 = vmatmul.mubr.msk.f32.gmra.mrb[22].mxu1 %vm14034_vm1, %v12091_v43  ;;  %vm14039_vm1 = vmmov %vm14038_vm0 }
 0xecb   :  { %10227 = vmatpush3.bf16.msk.msra.mxu1 %vm10883_vm11, %v13906_v0  ;;  %9449 = vmatprep.mubr.msk.f32.mxu1 %vm10601_vm5, %v13885_v2 }
 0xecc   :  { %10228 = vmatprep.subr.bf16.mxu1 %v10599_v11 }
 0xecf   :  { %10230 = vmatpush3.bf16.msk.msra.mxu1 %vm11042_vm3, %v13906_v0 }
 0xed0   :  { %10231 = vmatprep.subr.bf16.mxu1 %v10599_v11 }
 0xed3   :  { %10233 = vmatpush3.bf16.msk.msra.mxu1 %vm11058_vm10, %v13906_v0 }
 0xed4   :  { %10234 = vmatprep.subr.bf16.mxu1 %v10599_v11 }
 0xed7   :  { %10236 = vmatpush3.bf16.msk.msra.mxu1 %vm11074_vm9, %v13906_v0 }
 0xed8   :  { %10237 = vmatprep.subr.bf16.mxu1 %v10599_v11 }
 0xedb   :  { %10239 = vmatpush3.bf16.msk.msra.mxu1 %vm11090_vm6, %v13906_v0 }
 0xedc   :  { %10240 = vmatprep.subr.bf16.mxu1 %v10599_v11 }
 0xedf   :  { %10242 = vmatpush3.bf16.msk.msra.mxu1 %vm11110_vm7, %v13906_v0 }
 0xee0   :  { %10243 = vmatprep.subr.bf16.mxu1 %v10599_v11 }
 0xee3   :  { %10245 = vmatpush3.bf16.msk.msra.mxu1 %vm11124_vm12, %v13906_v0 }
 0xee4   :  { %9452 = vmatprep.subr.mxu1 %v13885_v2 }
 0xf99   :  { %v9214_v14 = vpop.f32.mrb[20].mxu1 }
 0xf9a   :  { %v4584_v57 = vpop.f32.mrb[21].mxu1  ;;  %v4615_v43 = vadd.f32 %v9214_v14, %v7495_v33  ;;  %v4863_v14 = vld [vmem:[%s13799_s15] sm:$0x1] }
 0xf9b   :  { %v4614_v16 = vadd.f32 %v7495_v33, %v4584_v57  ;;  %v7534_v57 = vld [vmem:[%s13800_s17 + $0x80] sm:$0xff] }
 0xf9d   :  { %v9217_v17 = vpop.f32.mrb[22].mxu1  ;;  %v4618_v1 = vadd.f32 %v4615_v43, %v4614_v16 }
 0xf9e   :  { %v4594_v15 = vpop.f32.mrb[23].mxu1  ;;  %v4617_v18 = vadd.f32 %v9217_v17, %v7495_v33 }
 0xf9f   :  { %v4616_v23 = vadd.f32 %v7495_v33, %v4594_v15 }
 0xfa1   :  { %v4619_v22 = vadd.f32 %v4618_v1, %v4616_v23  ;;  %v7536_v1 = vld [vmem:[%s13800_s17 + $0x90] sm:$0xff] }
 0xfa3   :  { %v4620_v27 = vadd.f32 %v4619_v22, %v4617_v18 }
 0xfa5   :  { %v4621_v34 = vrot.slane %v4620_v27, 4 }
 0xfa7   :  { %v4622_v62 = vadd.f32 %v4621_v34, %v4620_v27  ;;  %v7538_v27 = vld [vmem:[%s13800_s17 + $0xa0] sm:$0xff]  ;;  %v7539_v34 = vld [vmem:[%s13800_s17 + $0xa8] sm:$0xff] }
 0xfa9   :  { %v4623_v63 = vrot.slane %v4622_v62, 2 }
 0xfab   :  { %v4624_v8 = vadd.f32 %v4623_v63, %v4622_v62  ;;  %v10134_v62 = vpack.c.bf16 %v7539_v34, %v7538_v27  ;;  %v7540_v63 = vld [vmem:[%s13800_s17 + $0xb0] sm:$0xff] }
 0xfad   :  { %v4625_v35 = vrot.slane %v4624_v8, 1 }
 0xfaf   :  { %v4626_v52 = vadd.f32 %v4625_v35, %v4624_v8  ;;  %v7541_v8 = vld [vmem:[%s13800_s17 + $0xb8] sm:$0xff] }
 0xfb0   :  { %v10138_v35 = vpack.c.bf16 %v7541_v8, %v7540_v63 }
 0xfb1   :  { %9251 = vmatmul.mubr.f32.vlgmr.msra.gmra.mrb[22].mxu0 %v4626_v52  ;;  %v7542_v52 = vld [vmem:[%s13800_s17 + $0xc0] sm:$0xff] }
 0xfb2   :  { %9254 = vmatpush3.msk.msra.mxu0 %vm11141_vm4, %v13883_v31  ;;  %9255 = vmatprep.mubr.msk.f32.mxu0 %vm10601_vm5, %v13885_v2 }
 0xfb3   :  { %10102 = vmatprep.subr.bf16.mxu0 %v10599_v11 }
0x1084   :  { %v4693_v5 = vpop.f32.mrb[22].mxu0 }
0x1085   :  { %v4697_v54 = vmul.f32 0.001953125, %v4693_v5  ;;  %v9252_v24 = vpop.f32.mrb[23].mxu0  ;;  %v7543_v5 = vld [vmem:[%s13800_s17 + $0xc8] sm:$0xff] }
0x1086   :  { %v7544_v24 = vld [vmem:[%s13800_s17 + $0xd0] sm:$0xff] }
0x1087   :  { %9256 = vmatmul.mubr.msk.f32.vlgmr.msra.gmra.mrb[24].mxu0 %vm13828_vm14, %v4697_v54  ;;  %v10142_v54 = vpack.c.bf16 %v7543_v5, %v7542_v52 }
0x1088   :  { %10104 = vmatpush3.bf16.msk.msra.mxu0 %vm10851_vm8, %v13906_v0  ;;  %9290 = vmatprep.mubr.msk.f32.mxu0 %vm10601_vm5, %v13885_v2 }
0x1089   :  { %10105 = vmatprep.subr.bf16.mxu0 %v10599_v11 }
0x108c   :  { %10107 = vmatpush3.bf16.msk.msra.mxu0 %vm10883_vm11, %v13906_v0 }
0x108d   :  { %10108 = vmatprep.subr.bf16.mxu0 %v10599_v11 }
0x1090   :  { %10110 = vmatpush3.bf16.msk.msra.mxu0 %vm11042_vm3, %v13906_v0 }
0x1091   :  { %10111 = vmatprep.subr.bf16.mxu0 %v10599_v11 }
0x1094   :  { %10113 = vmatpush3.bf16.msk.msra.mxu0 %vm11058_vm10, %v13906_v0 }
0x1095   :  { %10114 = vmatprep.subr.bf16.mxu0 %v10599_v11 }
0x1098   :  { %10116 = vmatpush3.bf16.msk.msra.mxu0 %vm11074_vm9, %v13906_v0 }
0x1099   :  { %10117 = vmatprep.subr.bf16.mxu0 %v10599_v11 }
0x109c   :  { %10119 = vmatpush3.bf16.msk.msra.mxu0 %vm11090_vm6, %v13906_v0 }
0x109d   :  { %10120 = vmatprep.subr.bf16.mxu0 %v10599_v11 }
0x10a0   :  { %10122 = vmatpush3.bf16.msk.msra.mxu0 %vm11110_vm7, %v13906_v0 }
0x10a1   :  { %10123 = vmatprep.subr.bf16.mxu0 %v10599_v11 }
0x10a4   :  { %10125 = vmatpush3.bf16.msk.msra.mxu0 %vm11124_vm12, %v13906_v0 }
0x10a5   :  { %9293 = vmatprep.subr.mxu0 %v13885_v2 }
0x115a   :  { %v4767_v26 = vpop.f32.mrb[24].mxu0 }
0x115b   :  { %v4774_v25 = vrot.slane %v4767_v26, %v11187_v38  ;;  %v9257_v28 = vpop.f32.mrb[25].mxu0  ;;  %v7545_v26 = vld [vmem:[%s13800_s17 + $0xd8] sm:$0xff] }
0x115c   :  { %v7546_v28 = vld [vmem:[%s13800_s17 + $0xe0] sm:$0xff] }
0x115d   :  { %v12265_v4 = vsub.f32 %v4614_v16, %v4774_v25  ;;  %v12267_v12 = vsub.f32 %v4615_v43, %v4774_v25  ;;  %v12269_v45 = vsub.f32 %v4616_v23, %v4774_v25  ;;  %v12271_v48 = vsub.f32 %v4617_v18, %v4774_v25  ;;  %v7535_v43 = vld [vmem:[%s13800_s17 + $0x88] sm:$0xff]  ;;  %v7537_v23 = vld [vmem:[%s13800_s17 + $0x98] sm:$0xff]  ;;  %v4948_v18 = vld [vmem:[%s13801_s16] sm:$0x1] }
0x115e   :  { %v10126_v15 = vpack.c.bf16 %v7535_v43, %v7534_v57  ;;  %v10130_v22 = vpack.c.bf16 %v7537_v23, %v7536_v1  ;;  %v10146_v25 = vpack.c.bf16 %v7545_v26, %v7544_v24 }
0x115f   :  { %v4779_v29 = vmul.f32 %v12265_v4, %v12265_v4  ;;  %v4780_v30 = vmul.f32 %v12267_v12, %v12267_v12  ;;  %v4781_v32 = vmul.f32 %v12269_v45, %v12269_v45  ;;  %v4782_v44 = vmul.f32 %v12271_v48, %v12271_v48 }
0x1161   :  { %v4783_v21 = vadd.f32 %v4780_v30, %v4779_v29  ;;  %v7547_v29 = vld [vmem:[%s13800_s17 + $0xe8] sm:$0xff]  ;;  %v7548_v30 = vld [vmem:[%s13800_s17 + $0xf0] sm:$0xff] }
0x1163   :  { %v4784_v40 = vadd.f32 %v4783_v21, %v4781_v32  ;;  %v10150_v32 = vpack.c.bf16 %v7547_v29, %v7546_v28  ;;  %v7549_v21 = vld [vmem:[%s13800_s17 + $0xf8] sm:$0xff] }
0x1165   :  { %v4785_v55 = vadd.f32 %v4784_v40, %v4782_v44  ;;  %v10154_v44 = vpack.c.bf16 %v7549_v21, %v7548_v30  ;;  %v5056_v40 = vld [vmem:[%s13800_s17] sm:$0xff] }
0x1167   :  { %v4786_v19 = vrot.slane %v4785_v55, 4 }
0x1169   :  { %v4787_v59 = vadd.f32 %v4786_v19, %v4785_v55  ;;  %v5057_v55 = vld [vmem:[%s13800_s17 + $0x8] sm:$0xff] }
0x116a   :  { %v10158_v19 = vpack.c.bf16 %v5057_v55, %v5056_v40  ;;  %v5060_v55 = vld [vmem:[%s13800_s17 + $0x20] sm:$0xff] }
0x116b   :  { %v4788_v10 = vrot.slane %v4787_v59, 2 }
0x116d   :  { %v4789_v51 = vadd.f32 %v4788_v10, %v4787_v59 }
0x116f   :  { %v4790_v42 = vrot.slane %v4789_v51, 1 }
0x1171   :  { %v4791_v50 = vadd.f32 %v4790_v42, %v4789_v51 }
0x1173   :  { %9291 = vmatmul.mubr.f32.vlgmr.msra.gmra.mrb[26].mxu0 %v4791_v50 }
0x1174   :  { %9294 = vmatpush3.msk.msra.mxu0 %vm11141_vm4, %v13883_v31  ;;  %9295 = vmatprep.mubr.msk.f32.mxu0 %vm10601_vm5, %v13885_v2 }
0x1175   :  { %9298 = vmatprep.subr.mxu0 %v13885_v2 }
0x1246   :  { %v4858_v36 = vpop.f32.mrb[26].mxu0 }
0x1247   :  { %v4862_v49 = vmul.f32 0.001953125, %v4858_v36  ;;  %v9292_v13 = vpop.f32.mrb[27].mxu0 }
0x1249   :  { %v4864_v33 = vadd.f32 1e-05, %v4862_v49 }
0x124b   :  { %10529 = vrsqrt.f32 %v4864_v33 }
0x1255   :  { %v10530_v16 = vpop.eup %10529 }
0x1256   :  { %v4866_v17 = vmul.f32 %v10530_v16, %v4863_v14 }
0x1258   :  { %9296 = vmatmul.mubr.msk.f32.vlgmr.msra.gmra.mrb[28].mxu0 %vm13828_vm14, %v4866_v17 }
0x1259   :  { %9299 = vmatpush3.msk.msra.mxu0 %vm11141_vm4, %v13883_v31  ;;  %9300 = vmatprep.mubr.msk.f32.mxu0 %vm10601_vm5, %v13885_v2 }
0x125a   :  { %10127 = vmatprep.subr.bf16.mxu0 %v10126_v15 }
0x125c   :  { %9301 = vmatmul.mubr.msk.f32.vlgmr.msra.gmra.mrb[30].mxu0 %vm13828_vm14, %v4948_v18 }
0x125d   :  { %10129 = vmatpush3.bf16.msra.mxu0 %v10126_v15 }
0x125e   :  { %10131 = vmatprep.subr.bf16.mxu0 %v10130_v22 }
0x1261   :  { %10133 = vmatpush3.bf16.msra.mxu0 %v10130_v22 }
0x1262   :  { %10135 = vmatprep.subr.bf16.mxu0 %v10134_v62 }
0x1265   :  { %10137 = vmatpush3.bf16.msra.mxu0 %v10134_v62 }
0x1266   :  { %10139 = vmatprep.subr.bf16.mxu0 %v10138_v35 }
0x1269   :  { %10141 = vmatpush3.bf16.msra.mxu0 %v10138_v35 }
0x126a   :  { %10143 = vmatprep.subr.bf16.mxu0 %v10142_v54 }
0x126d   :  { %10145 = vmatpush3.bf16.msra.mxu0 %v10142_v54 }
0x126e   :  { %10147 = vmatprep.subr.bf16.mxu0 %v10146_v25 }
0x1271   :  { %10149 = vmatpush3.bf16.msra.mxu0 %v10146_v25 }
0x1272   :  { %10151 = vmatprep.subr.bf16.mxu0 %v10150_v32 }
0x1275   :  { %10153 = vmatpush3.bf16.msra.mxu0 %v10150_v32 }
0x1276   :  { %10155 = vmatprep.subr.bf16.mxu0 %v10154_v44 }
0x1279   :  { %10157 = vmatpush3.bf16.msra.mxu0 %v10154_v44 }
0x127a   :  { %10159 = vmatprep.subr.bf16.mxu0 %v10158_v19 }
0x132b   :  { %v4936_v59 = vpop.f32.mrb[28].mxu0 }
0x132c   :  { %v4943_v10 = vrot.slane %v4936_v59, %v11187_v38  ;;  %v9297_v51 = vpop.f32.mrb[29].mxu0  ;;  %v5061_v59 = vld [vmem:[%s13800_s17 + $0x28] sm:$0xff] }
0x132e   :  { %v4944_v42 = vmul.f32 %v4943_v10, %v12265_v4  ;;  %v4945_v36 = vmul.f32 %v4943_v10, %v12267_v12  ;;  %v4946_v49 = vmul.f32 %v4943_v10, %v12269_v45  ;;  %v4947_v13 = vmul.f32 %v4943_v10, %v12271_v48  ;;  %v5058_v4 = vld [vmem:[%s13800_s17 + $0x10] sm:$0xff]  ;;  %v5059_v12 = vld [vmem:[%s13800_s17 + $0x18] sm:$0xff] }
0x132f   :  { %v5018_v50 = vpop.f32.mrb[30].mxu0  ;;  %v10162_v34 = vpack.c.bf16 %v5059_v12, %v5058_v4  ;;  %v5070_v4 = vld [vmem:[%s13800_s17 + $0x70] sm:$0xff]  ;;  %v5071_v12 = vld [vmem:[%s13800_s17 + $0x78] sm:$0xff] }
0x1330   :  { %v5025_v33 = vrot.slane %v5018_v50, %v11187_v38  ;;  %v9302_v14 = vpop.f32.mrb[31].mxu0 }
0x1331   :  { %v5063_v14 = vld [vmem:[%s13800_s17 + $0x38] sm:$0xff] }
0x1332   :  { %v5026_v57 = vadd.f32 %v5025_v33, %v4944_v42  ;;  %v5027_v43 = vadd.f32 %v5025_v33, %v4945_v36  ;;  %v5028_v16 = vadd.f32 %v5025_v33, %v4946_v49  ;;  %v5029_v17 = vadd.f32 %v5025_v33, %v4947_v13  ;;  %v5062_v33 = vld [vmem:[%s13800_s17 + $0x30] sm:$0xff] }
0x1333   :  { %v10166_v13 = vpack.c.bf16 %v5061_v59, %v5060_v55  ;;  %v7567_v55 = vld [vmem:[%s13800_s17 + $0x178] sm:$0xff] }
0x1334   :  { %v5030_v15 = vmax.f32 %v5026_v57, 0.0  ;;  %v5031_v1 = vmax.f32 %v5027_v43, 0.0  ;;  %v5032_v23 = vmax.f32 %v5028_v16, 0.0  ;;  %v5033_v18 = vmax.f32 %v5029_v17, 0.0  ;;  %v5064_v57 = vld [vmem:[%s13800_s17 + $0x40] sm:$0xff]  ;;  %v5065_v43 = vld [vmem:[%s13800_s17 + $0x48] sm:$0xff] }
0x1335   :  { %v10174_v16 = vpack.c.bf16 %v5065_v43, %v5064_v57  ;;  %v5066_v17 = vld [vmem:[%s13800_s17 + $0x50] sm:$0xff] }
0x1336   :  { %v5038_v45 = vrot.slane %v5030_v15, 7  ;;  %v5039_v48 = vrot.slane %v5031_v1, 7  ;;  %v5041_v22 = vrot.slane %v5032_v23, 7  ;;  %v5043_v27 = vrot.slane %v5033_v18, 7  ;;  %v5068_v1 = vld [vmem:[%s13800_s17 + $0x60] sm:$0xff]  ;;  %v5069_v23 = vld [vmem:[%s13800_s17 + $0x68] sm:$0xff] }
0x1337   :  { %v10182_v18 = vpack.c.bf16 %v5069_v23, %v5068_v1 }
0x1338   :  { %v12367_v62 = vsel %vm14035_vm13, %v5038_v45, %v5039_v48  ;;  %v5050_v63 = vsel %vm14036_vm2, 0.0, %v5038_v45  ;;  %v12371_v8 = vsel %vm14037_vm15, %v5039_v48, %v5041_v22  ;;  %v12374_v35 = vsel %vm14038_vm0, %v5041_v22, %v5043_v27  ;;  %v7552_v48 = vld [vmem:[%s13800_s17 + $0x100] sm:$0xff]  ;;  %v7553_v22 = vld [vmem:[%s13800_s17 + $0x108] sm:$0xff] }
0x1339   :  { %v5074_v52 = vrot.slane %v5050_v63, 1  ;;  %v5075_v5 = vrot.slane %v12367_v62, 1  ;;  %v5077_v54 = vrot.slane %v12371_v8, 1  ;;  %v5281_v24 = vrot.slane %v12371_v8, 2 }
0x133a   :  { %v5079_v26 = vrot.slane %v12374_v35, 1  ;;  %v5051_v25 = vsel %vm14039_vm1, %v5043_v27, 0.0  ;;  %v5278_v28 = vrot.slane %v5050_v63, 2  ;;  %v5279_v29 = vrot.slane %v12367_v62, 2 }
0x133b   :  { %vm14040_vm13 = vcmask 1046528   ;;  %v5081_v21 = vrot.slane %v5051_v25, 1  ;;  %v5283_v44 = vrot.slane %v12374_v35, 2  ;;  %vm14043_vm0 = vcmask 1045504  }
0x133c   :  { %v5076_v30 = vsel %vm14040_vm13, %v5074_v52, %v5075_v5  ;;  %vm14041_vm2 = vmmov %vm14040_vm13  ;;  %v5280_v10 = vsel %vm14043_vm0, %v5278_v28, %v5279_v29  ;;  %v5285_v42 = vrot.slane %v5051_v25, 2  ;;  %v10186_v45 = vpack.c.bf16 %v5071_v12, %v5070_v4  ;;  %v7559_v25 = vld [vmem:[%s13800_s17 + $0x138] sm:$0xff] }
0x133d   :  { %v5078_v32 = vsel %vm14041_vm2, %v5075_v5, %v5077_v54  ;;  %9335 = vmatprep.mubr.f32.mxu0 %v5076_v30  ;;  %vm14042_vm15 = vmmov %vm14041_vm2  ;;  %v10190_v27 = vpack.c.bf16 %v7553_v22, %v7552_v48  ;;  %v7556_v5 = vld [vmem:[%s13800_s17 + $0x120] sm:$0xff] }
0x133e   :  { %v5080_v40 = vsel %vm14042_vm15, %v5077_v54, %v5079_v26  ;;  %vm14044_vm1 = vmmov %vm14043_vm0  ;;  %9336 = vmatmul.mubr.f32.vlgmr.msra.gmra.mrb[32].mxu0 %v5078_v32  ;;  %v7557_v54 = vld [vmem:[%s13800_s17 + $0x128] sm:$0xff]  ;;  %v7564_v32 = vld [vmem:[%s13800_s17 + $0x160] sm:$0xff] }
0x133f   :  { %v12394_v51 = vsel %vm14044_vm1, %v5279_v29, %v5281_v24  ;;  %vm14045_vm13 = vmmov %vm14041_vm2  ;;  %10161 = vmatpush3.bf16.msra.mxu0 %v10158_v19  ;;  %9338 = vmatprep.mubr.f32.mxu0 %v5080_v40  ;;  %v10170_v19 = vpack.c.bf16 %v5063_v14, %v5062_v33  ;;  %vm14049_vm1 = vcmp.ge.s32.totalorder %v10806_v37, 0  ;;  %v7560_v37 = vld [vmem:[%s13800_s17 + $0x140] sm:$0xff]  ;;  %v7562_v29 = vld [vmem:[%s13800_s17 + $0x150] sm:$0xff] }
0x1340   :  { %v5082_v50 = vsel %vm14045_vm13, %v5079_v26, %v5081_v21  ;;  %vm14046_vm2 = vmmov %vm14043_vm0  ;;  %10163 = vmatprep.subr.bf16.mxu0 %v10162_v34  ;;  %v7558_v26 = vld [vmem:[%s13800_s17 + $0x130] sm:$0xff]  ;;  %v7565_v21 = vld [vmem:[%s13800_s17 + $0x168] sm:$0xff]  ;;  %vm14050_vm13 = vcmp.lt.s32.totalorder %v10966_v56, 16 }
0x1341   :  { %v12398_v36 = vsel %vm14046_vm2, %v5281_v24, %v5283_v44  ;;  %vm14047_vm15 = vmmov %vm14043_vm0  ;;  %vm14048_vm0 = vcmp.ge.s32.totalorder %v10771_v20, 0  ;;  %v5067_v20 = vld [vmem:[%s13800_s17 + $0x58] sm:$0xff]  ;;  %v10198_v24 = vpack.c.bf16 %v7557_v54, %v7556_v5  ;;  %v7566_v40 = vld [vmem:[%s13800_s17 + $0x170] sm:$0xff]  ;;  %vm14051_vm2 = vcmp.lt.s32.totalorder %v10979_v3, 16 }
0x1342   :  { %v12401_v49 = vsel %vm14047_vm15, %v5283_v44, %v5285_v42  ;;  %9339 = vmatmul.mubr.f32.gmra.mrb[34].mxu0 %v5082_v50  ;;  %v10178_v15 = vpack.c.bf16 %v5067_v20, %v5066_v17  ;;  %v10214_v44 = vpack.c.bf16 %v7565_v21, %v7564_v32  ;;  %v10218_v59 = vpack.c.bf16 %v7567_v55, %v7566_v40  ;;  %v5830_v21 = vld [vmem:[%s13803_s21 + $0x10] sm:$0xff]  ;;  %v5839_v55 = vld [vmem:[%s13803_s21 + $0x58] sm:$0xff] }
0x1343   :  { %10165 = vmatpush3.bf16.msra.mxu0 %v10162_v34  ;;  %9373 = vmatprep.mubr.msk.f32.mxu0 %vm14048_vm0, %v5050_v63  ;;  %v7554_v34 = vld [vmem:[%s13800_s17 + $0x110] sm:$0xff]  ;;  %v7555_v63 = vld [vmem:[%s13800_s17 + $0x118] sm:$0xff] }
0x1344   :  { %10167 = vmatprep.subr.bf16.mxu0 %v10166_v13  ;;  %v10194_v52 = vpack.c.bf16 %v7555_v63, %v7554_v34 }
0x1347   :  { %10169 = vmatpush3.bf16.msra.mxu0 %v10166_v13 }
0x1348   :  { %10171 = vmatprep.subr.bf16.mxu0 %v10170_v19 }
0x134b   :  { %10173 = vmatpush3.bf16.msra.mxu0 %v10170_v19 }
0x134c   :  { %10175 = vmatprep.subr.bf16.mxu0 %v10174_v16 }
0x134f   :  { %10177 = vmatpush3.bf16.msra.mxu0 %v10174_v16 }
0x1350   :  { %10179 = vmatprep.subr.bf16.mxu0 %v10178_v15 }
0x1353   :  { %10181 = vmatpush3.bf16.msra.mxu0 %v10178_v15 }
0x1354   :  { %10183 = vmatprep.subr.bf16.mxu0 %v10182_v18 }
0x1357   :  { %10185 = vmatpush3.bf16.msra.mxu0 %v10182_v18 }
0x1358   :  { %10187 = vmatprep.subr.bf16.mxu0 %v10186_v45 }
0x135b   :  { %10189 = vmatpush3.bf16.msra.mxu0 %v10186_v45 }
0x135c   :  { %10191 = vmatprep.subr.bf16.mxu0 %v10190_v27 }
0x135e   :  { %9374 = vmatmul.mubr.f32.vlgmr.msra.gmra.mrb[32].mxu0 %v12367_v62  ;;  %v10202_v62 = vpack.c.bf16 %v7559_v25, %v7558_v26 }
0x135f   :  { %9376 = vmatprep.mubr.msk.f32.mxu0 %vm14049_vm1, %v12371_v8  ;;  %10193 = vmatpush3.bf16.msra.mxu0 %v10190_v27  ;;  %v7561_v8 = vld [vmem:[%s13800_s17 + $0x148] sm:$0xff] }
0x1360   :  { %10195 = vmatprep.subr.bf16.mxu0 %v10194_v52  ;;  %v10206_v28 = vpack.c.bf16 %v7561_v8, %v7560_v37 }
0x1362   :  { %9377 = vmatmul.mubr.f32.gmra.mrb[34].mxu0 %v12374_v35  ;;  %v7563_v35 = vld [vmem:[%s13800_s17 + $0x158] sm:$0xff] }
0x1363   :  { %10197 = vmatpush3.bf16.msra.mxu0 %v10194_v52  ;;  %9411 = vmatprep.mubr.f32.mxu0 %v5280_v10  ;;  %v10210_v30 = vpack.c.bf16 %v7563_v35, %v7562_v29  ;;  %v7570_v10 = vld [vmem:[%s13802_s18] ss:$0 sm:$0xff]  ;;  %v5831_v35 = vld [vmem:[%s13803_s21 + $0x18] sm:$0xff] }
0x1364   :  { %10199 = vmatprep.subr.bf16.mxu0 %v10198_v24 }
0x1367   :  { %10201 = vmatpush3.bf16.msra.mxu0 %v10198_v24 }
0x1368   :  { %10203 = vmatprep.subr.bf16.mxu0 %v10202_v62 }
0x136b   :  { %10205 = vmatpush3.bf16.msra.mxu0 %v10202_v62 }
0x136c   :  { %10207 = vmatprep.subr.bf16.mxu0 %v10206_v28 }
0x136f   :  { %10209 = vmatpush3.bf16.msra.mxu0 %v10206_v28 }
0x1370   :  { %10211 = vmatprep.subr.bf16.mxu0 %v10210_v30 }
0x1373   :  { %10213 = vmatpush3.bf16.msra.mxu0 %v10210_v30  ;;  %v5835_v30 = vld [vmem:[%s13803_s21 + $0x38] sm:$0xff] }
0x1374   :  { %10215 = vmatprep.subr.bf16.mxu0 %v10214_v44  ;;  %v10302_v32 = vpack.c.bf16 %v5835_v30, %v5831_v35  ;;  %v5837_v35 = vld [vmem:[%s13803_s21 + $0x48] sm:$0xff] }
0x1375   :  { %v5841_v30 = vld [vmem:[%s13803_s21 + $0x68] sm:$0xff] }
0x1377   :  { %10217 = vmatpush3.bf16.msra.mxu0 %v10214_v44  ;;  %v5834_v44 = vld [vmem:[%s13803_s21 + $0x30] sm:$0xff] }
0x1378   :  { %10219 = vmatprep.subr.bf16.mxu0 %v10218_v59  ;;  %v10304_v40 = vpack.c.bf16 %v5834_v44, %v5830_v21  ;;  %v10274_v44 = vpack.c.bf16 %v5841_v30, %v5837_v35  ;;  %v5882_v35 = vld [vmem:[%s13803_s21 + $0x1b0] sm:$0xff]  ;;  %v5885_v30 = vld [vmem:[%s13803_s21 + $0x1c8] sm:$0xff] }
0x137b   :  { %10221 = vmatpush3.bf16.msra.mxu0 %v10218_v59  ;;  %v5843_v59 = vld [vmem:[%s13803_s21 + $0x78] sm:$0xff] }
0x137c   :  { %10303 = vmatprep.subr.bf16.mxu0 %v10302_v32  ;;  %v5742_v32 = vld [vmem:[%s13805_s20] sm:$0x1] }
0x137e   :  { %9412 = vmatmul.mubr.msk.f32.vlgmr.msra.gmra.mrb[32].mxu0 %vm14050_vm13, %v12394_v51 }
0x137f   :  { %9414 = vmatprep.mubr.f32.mxu0 %v12398_v36  ;;  %10305 = vmatpush1.bf16.msra.mxu0 %v10304_v40  ;;  %v5836_v40 = vld [vmem:[%s13803_s21 + $0x40] sm:$0xff] }
0x1382   :  { %9415 = vmatmul.mubr.msk.f32.gmra.mrb[34].mxu0 %vm14051_vm2, %v12401_v49 }
0x1383   :  { %6067 = vmatprep.mubr.f32.mxu0 %v13885_v2 }
0x1451   :  { %v9413_v42 = vpop.f32.mrb[32].mxu0 }
0x1452   :  { %v5378_v50 = vpop.f32.mrb[33].mxu0  ;;  %v5409_v13 = vadd.f32 %v9413_v42, %v7570_v10  ;;  %v5838_v42 = vld [vmem:[%s13803_s21 + $0x50] sm:$0xff] }
0x1453   :  { %v5408_v33 = vadd.f32 %v7570_v10, %v5378_v50  ;;  %v5842_v50 = vld [vmem:[%s13803_s21 + $0x70] sm:$0xff] }
0x1455   :  { %v9416_v14 = vpop.f32.mrb[34].mxu0  ;;  %v5412_v56 = vadd.f32 %v5409_v13, %v5408_v33 }
0x1456   :  { %v5388_v19 = vpop.f32.mrb[35].mxu0  ;;  %v5411_v57 = vadd.f32 %v9416_v14, %v7570_v10  ;;  %v5851_v14 = vld [vmem:[%s13803_s21 + $0xb8] sm:$0xff] }
0x1457   :  { %v5410_v51 = vadd.f32 %v7570_v10, %v5388_v19  ;;  %v10306_v10 = vpack.c.bf16 %v5843_v59, %v5839_v55  ;;  %v5840_v55 = vld [vmem:[%s13803_s21 + $0x60] sm:$0xff]  ;;  %v5845_v59 = vld [vmem:[%s13803_s21 + $0x88] sm:$0xff] }
0x1459   :  { %v5413_v36 = vadd.f32 %v5412_v56, %v5410_v51  ;;  %10307 = vmatprep.subr.bf16.mxu0 %v10306_v10  ;;  %v5846_v56 = vld [vmem:[%s13803_s21 + $0x90] sm:$0xff]  ;;  %v5849_v10 = vld [vmem:[%s13803_s21 + $0xa8] sm:$0xff] }
0x145b   :  { %v5414_v43 = vadd.f32 %v5413_v36, %v5411_v57  ;;  %v5855_v36 = vld [vmem:[%s13803_s21 + $0xd8] sm:$0xff] }
0x145d   :  { %v5415_v16 = vrot.slane %v5414_v43, 4 }
0x145f   :  { %v5416_v3 = vadd.f32 %v5415_v16, %v5414_v43  ;;  %v5859_v43 = vld [vmem:[%s13803_s21 + $0xf8] sm:$0xff] }
0x1460   :  { %v10314_v16 = vpack.c.bf16 %v5859_v43, %v5855_v36  ;;  %v5856_v36 = vld [vmem:[%s13803_s21 + $0xe0] sm:$0xff]  ;;  %v5861_v43 = vld [vmem:[%s13803_s21 + $0x108] sm:$0xff] }
0x1461   :  { %v5417_v49 = vrot.slane %v5416_v3, 2 }
0x1463   :  { %v5418_v17 = vadd.f32 %v5417_v49, %v5416_v3  ;;  %v5854_v3 = vld [vmem:[%s13803_s21 + $0xd0] sm:$0xff] }
0x1464   :  { %v5858_v49 = vld [vmem:[%s13803_s21 + $0xf0] sm:$0xff] }
0x1465   :  { %v5419_v20 = vrot.slane %v5418_v17, 1 }
0x1467   :  { %v5420_v15 = vadd.f32 %v5419_v20, %v5418_v17  ;;  %v10316_v17 = vpack.c.bf16 %v5858_v49, %v5854_v3  ;;  %v5863_v20 = vld [vmem:[%s13803_s21 + $0x118] sm:$0xff] }
0x1469   :  { %9450 = vmatmul.mubr.f32.vlgmr.msra.gmra.mrb[24].mxu1 %v5420_v15  ;;  %v5867_v15 = vld [vmem:[%s13803_s21 + $0x138] sm:$0xff] }
0x146a   :  { %9453 = vmatpush3.msk.msra.mxu1 %vm11141_vm4, %v13883_v31  ;;  %9454 = vmatprep.mubr.msk.f32.mxu1 %vm10601_vm5, %v13885_v2 }
0x146b   :  { %10246 = vmatprep.subr.bf16.mxu1 %v10599_v11 }
0x153c   :  { %v5487_v1 = vpop.f32.mrb[24].mxu1 }
0x153d   :  { %v5491_v23 = vmul.f32 0.001953125, %v5487_v1  ;;  %v9451_v18 = vpop.f32.mrb[25].mxu1  ;;  %v10318_v1 = vpack.c.bf16 %v5867_v15, %v5863_v20  ;;  %v5864_v20 = vld [vmem:[%s13803_s21 + $0x120] sm:$0xff]  ;;  %v5869_v15 = vld [vmem:[%s13803_s21 + $0x148] sm:$0xff] }
0x153e   :  { %v5866_v18 = vld [vmem:[%s13803_s21 + $0x130] sm:$0xff] }
0x153f   :  { %9455 = vmatmul.mubr.msk.f32.vlgmr.msra.gmra.mrb[26].mxu1 %vm13828_vm14, %v5491_v23  ;;  %v5862_v23 = vld [vmem:[%s13803_s21 + $0x110] sm:$0xff] }
0x1540   :  { %10248 = vmatpush3.bf16.msk.msra.mxu1 %vm10851_vm8, %v13906_v0  ;;  %9489 = vmatprep.mubr.msk.f32.mxu1 %vm10601_vm5, %v13885_v2 }
0x1541   :  { %10249 = vmatprep.subr.bf16.mxu1 %v10599_v11 }
0x1544   :  { %10251 = vmatpush3.bf16.msk.msra.mxu1 %vm10883_vm11, %v13906_v0 }
0x1545   :  { %10252 = vmatprep.subr.bf16.mxu1 %v10599_v11 }
0x1548   :  { %10254 = vmatpush3.bf16.msk.msra.mxu1 %vm11042_vm3, %v13906_v0 }
0x1549   :  { %10255 = vmatprep.subr.bf16.mxu1 %v10599_v11 }
0x154c   :  { %10257 = vmatpush3.bf16.msk.msra.mxu1 %vm11058_vm10, %v13906_v0 }
0x154d   :  { %10258 = vmatprep.subr.bf16.mxu1 %v10599_v11 }
0x1550   :  { %10260 = vmatpush3.bf16.msk.msra.mxu1 %vm11074_vm9, %v13906_v0 }
0x1551   :  { %10261 = vmatprep.subr.bf16.mxu1 %v10599_v11 }
0x1554   :  { %10263 = vmatpush3.bf16.msk.msra.mxu1 %vm11090_vm6, %v13906_v0 }
0x1555   :  { %10264 = vmatprep.subr.bf16.mxu1 %v10599_v11 }
0x1558   :  { %10266 = vmatpush3.bf16.msk.msra.mxu1 %vm11110_vm7, %v13906_v0 }
0x1559   :  { %10267 = vmatprep.subr.bf16.mxu1 %v10599_v11 }
0x155c   :  { %10269 = vmatpush3.bf16.msk.msra.mxu1 %vm11124_vm12, %v13906_v0 }
0x155d   :  { %9492 = vmatprep.subr.mxu1 %v13885_v2 }
0x1612   :  { %v5561_v4 = vpop.f32.mrb[26].mxu1 }
0x1613   :  { %v5568_v12 = vrot.slane %v5561_v4, %v11187_v38  ;;  %v9456_v45 = vpop.f32.mrb[27].mxu1  ;;  %v10320_v4 = vpack.c.bf16 %v5866_v18, %v5862_v23 }
0x1614   :  { %v5875_v45 = vld [vmem:[%s13803_s21 + $0x178] sm:$0xff] }
0x1615   :  { %v12541_v48 = vsub.f32 %v5408_v33, %v5568_v12  ;;  %v12543_v22 = vsub.f32 %v5409_v13, %v5568_v12  ;;  %v12545_v27 = vsub.f32 %v5410_v51, %v5568_v12  ;;  %v12547_v34 = vsub.f32 %v5411_v57, %v5568_v12  ;;  %v5847_v33 = vld [vmem:[%s13803_s21 + $0x98] sm:$0xff]  ;;  %v5850_v51 = vld [vmem:[%s13803_s21 + $0xb0] sm:$0xff] }
0x1616   :  { %v10308_v13 = vpack.c.bf16 %v5842_v50, %v5838_v42  ;;  %v10310_v19 = vpack.c.bf16 %v5851_v14, %v5847_v33  ;;  %v10312_v57 = vpack.c.bf16 %v5850_v51, %v5846_v56  ;;  %v5871_v12 = vld [vmem:[%s13803_s21 + $0x158] sm:$0xff]  ;;  %v10276_v42 = vpack.c.bf16 %v5840_v55, %v5836_v40  ;;  %v5848_v33 = vld [vmem:[%s13803_s21 + $0xa0] sm:$0xff]  ;;  %v5853_v14 = vld [vmem:[%s13803_s21 + $0xc8] sm:$0xff] }
0x1617   :  { %v5573_v11 = vmul.f32 %v12541_v48, %v12541_v48  ;;  %v5574_v63 = vmul.f32 %v12543_v22, %v12543_v22  ;;  %v5575_v52 = vmul.f32 %v12545_v27, %v12545_v27  ;;  %v5576_v54 = vmul.f32 %v12547_v34, %v12547_v34  ;;  %v5887_v40 = vld [vmem:[%s13803_s21 + $0x1d8] sm:$0xff] }
0x1618   :  { %10309 = vmatpush1.bf16.msra.mxu0 %v10308_v13  ;;  %v10278_v50 = vpack.c.bf16 %v5849_v10, %v5845_v59  ;;  %v5844_v13 = vld [vmem:[%s13803_s21 + $0x80] sm:$0xff]  ;;  %v5891_v55 = vld [vmem:[%s13803_s21 + $0x1f8] sm:$0xff] }
0x1619   :  { %v5577_v5 = vadd.f32 %v5574_v63, %v5573_v11  ;;  %10311 = vmatprep.subr.bf16.mxu0 %v10310_v19  ;;  %v10322_v11 = vpack.c.bf16 %v5875_v45, %v5871_v12  ;;  %v5857_v19 = vld [vmem:[%s13803_s21 + $0xe8] sm:$0xff]  ;;  %v10280_v56 = vpack.c.bf16 %v5848_v33, %v5844_v13  ;;  %v5872_v12 = vld [vmem:[%s13803_s21 + $0x160] sm:$0xff]  ;;  %v5870_v45 = vld [vmem:[%s13803_s21 + $0x150] sm:$0xff]  ;;  %v10330_v10 = vpack.c.bf16 %v5891_v55, %v5887_v40 }
0x161a   :  { %v10282_v51 = vpack.c.bf16 %v5857_v19, %v5853_v14  ;;  %v5884_v59 = vld [vmem:[%s13803_s21 + $0x1c0] sm:$0xff]  ;;  %v5890_v13 = vld [vmem:[%s13803_s21 + $0x1f0] sm:$0xff]  ;;  %v402_v19 = vadd.s32 128, %v10746_v6  ;;  %v437_v55 = vadd.s32 408, %v10746_v6 }
0x161b   :  { %v5578_v24 = vadd.f32 %v5577_v5, %v5575_v52 }
0x161c   :  { %10313 = vmatpush1.bf16.msra.mxu0 %v10312_v57  ;;  %v5852_v57 = vld [vmem:[%s13803_s21 + $0xc0] sm:$0xff] }
0x161d   :  { %v5579_v26 = vadd.f32 %v5578_v24, %v5576_v54  ;;  %10315 = vmatprep.subr.bf16.mxu0 %v10314_v16  ;;  %v5657_v24 = vld [vmem:[%s13804_s19] sm:$0x1]  ;;  %v5865_v16 = vld [vmem:[%s13803_s21 + $0x128] sm:$0xff]  ;;  %v10284_v3 = vpack.c.bf16 %v5856_v36, %v5852_v57  ;;  %v435_v57 = vadd.s32 392, %v10746_v6  ;;  %v454_v36 = vand.u32 7, %v402_v19 }
0x161e   :  { %v10286_v49 = vpack.c.bf16 %v5865_v16, %v5861_v43  ;;  %v14070_v19 = vmov 0 }
0x161f   :  { %v5580_v25 = vrot.slane %v5579_v26, 4 }
0x1620   :  { %10317 = vmatpush1.bf16.msra.mxu0 %v10316_v17  ;;  %v5860_v17 = vld [vmem:[%s13803_s21 + $0x100] sm:$0xff] }
0x1621   :  { %v5581_v62 = vadd.f32 %v5580_v25, %v5579_v26  ;;  %10319 = vmatprep.subr.bf16.mxu0 %v10318_v1  ;;  %v5829_v26 = vld [vmem:[%s13803_s21 + $0x8] sm:$0xff]  ;;  %v10288_v23 = vpack.c.bf16 %v5864_v20, %v5860_v17  ;;  %v14054_v17 = vmov 0  ;;  %v5897_v20 = vrot.slane %v5892_v9, %v11187_v38 }
0x1622   :  { %v5833_v25 = vld [vmem:[%s13803_s21 + $0x28] sm:$0xff] }
0x1623   :  { %v5582_v37 = vrot.slane %v5581_v62, 2  ;;  %v5873_v1 = vld [vmem:[%s13803_s21 + $0x168] sm:$0xff] }
0x1624   :  { %10321 = vmatpush1.bf16.msra.mxu0 %v10320_v4  ;;  %v10290_v18 = vpack.c.bf16 %v5873_v1, %v5869_v15  ;;  %v5868_v4 = vld [vmem:[%s13803_s21 + $0x140] sm:$0xff] }
0x1625   :  { %v5583_v8 = vadd.f32 %v5582_v37, %v5581_v62  ;;  %10323 = vmatprep.subr.bf16.mxu0 %v10322_v11  ;;  %v10292_v11 = vpack.c.bf16 %v5872_v12, %v5868_v4 }
0x1627   :  { %v5584_v28 = vrot.slane %v5583_v8, 1 }
0x1629   :  { %v5585_v29 = vadd.f32 %v5584_v28, %v5583_v8  ;;  %v10270_v8 = vpack.c.bf16 %v5833_v25, %v5829_v26  ;;  %v5828_v28 = vld [vmem:[%s13803_s21] sm:$0xff]  ;;  %v5883_v25 = vld [vmem:[%s13803_s21 + $0x1b8] sm:$0xff] }
0x162b   :  { %9490 = vmatmul.mubr.f32.vlgmr.msra.gmra.mrb[28].mxu1 %v5585_v29  ;;  %v5832_v29 = vld [vmem:[%s13803_s21 + $0x20] sm:$0xff] }
0x162c   :  { %9493 = vmatpush3.msk.msra.mxu1 %vm11141_vm4, %v13883_v31  ;;  %9494 = vmatprep.mubr.msk.f32.mxu1 %vm10601_vm5, %v13885_v2  ;;  %v10272_v21 = vpack.c.bf16 %v5832_v29, %v5828_v28  ;;  %v5878_v28 = vld [vmem:[%s13803_s21 + $0x190] sm:$0xff] }
0x162d   :  { %9497 = vmatprep.subr.mxu1 %v13885_v2 }
0x16fe   :  { %v5652_v63 = vpop.f32.mrb[28].mxu1 }
0x16ff   :  { %v5656_v52 = vmul.f32 0.001953125, %v5652_v63  ;;  %v9491_v5 = vpop.f32.mrb[29].mxu1  ;;  %v5874_v63 = vld [vmem:[%s13803_s21 + $0x170] sm:$0xff] }
0x1700   :  { %v5877_v5 = vld [vmem:[%s13803_s21 + $0x188] sm:$0xff] }
0x1701   :  { %v5658_v54 = vadd.f32 1e-05, %v5656_v52  ;;  %v10324_v52 = vpack.c.bf16 %v5874_v63, %v5870_v45 }
0x1703   :  { %10531 = vrsqrt.f32 %v5658_v54  ;;  %v5881_v54 = vld [vmem:[%s13803_s21 + $0x1a8] sm:$0xff]  ;;  %10325 = vmatpush1.bf16.msra.mxu0 %v10324_v52 }
0x1704   :  { %v10294_v26 = vpack.c.bf16 %v5881_v54, %v5877_v5 }
0x170d   :  { %v10532_v62 = vpop.eup %10531 }
0x170e   :  { %v5660_v37 = vmul.f32 %v10532_v62, %v5657_v24  ;;  %v5879_v24 = vld [vmem:[%s13803_s21 + $0x198] sm:$0xff] }
0x170f   :  { %v10326_v62 = vpack.c.bf16 %v5883_v25, %v5879_v24 }
0x1710   :  { %9495 = vmatmul.mubr.msk.f32.vlgmr.msra.gmra.mrb[30].mxu1 %vm13828_vm14, %v5660_v37  ;;  %v5876_v37 = vld [vmem:[%s13803_s21 + $0x180] sm:$0xff] }
0x1711   :  { %9498 = vmatpush3.msk.msra.mxu1 %vm11141_vm4, %v13883_v31  ;;  %9499 = vmatprep.mubr.msk.f32.mxu1 %vm10601_vm5, %v13885_v2  ;;  %vm12774_vm5 = vcmp.eq.s32.totalorder %v454_v36, %v10824_v46 }
0x1712   :  { %10271 = vmatprep.subr.bf16.mxu1 %v10270_v8  ;;  %v5880_v8 = vld [vmem:[%s13803_s21 + $0x1a0] sm:$0xff]  ;;  %10327 = vmatprep.subr.bf16.mxu0 %v10326_v62 }
0x1713   :  { %v10296_v29 = vpack.c.bf16 %v5880_v8, %v5876_v37  ;;  %v419_v37 = vadd.s32 264, %v10746_v6 }
0x1714   :  { %9500 = vmatmul.mubr.msk.f32.vlgmr.msra.gmra.mrb[32].mxu1 %vm13828_vm14, %v5742_v32  ;;  %v5889_v32 = vld [vmem:[%s13803_s21 + $0x1e8] sm:$0xff] }
0x1715   :  { %10273 = vmatpush1.bf16.msra.mxu1 %v10272_v21  ;;  %5978 = vmatprep.mubr.f32.mxu1 %v13885_v2  ;;  %v10328_v21 = vpack.c.bf16 %v5882_v35, %v5878_v28  ;;  %v573_v28 = vand.u32 7, %v419_v37  ;;  %v405_v35 = vadd.s32 152, %v10746_v6 }
0x1716   :  { %10275 = vmatprep.subr.bf16.mxu1 %v10274_v44  ;;  %v10298_v44 = vpack.c.bf16 %v5889_v32, %v5885_v30  ;;  %v14060_v30 = vmov 0  ;;  %v14062_v32 = vmov 0 }
0x1717   :  { %10329 = vmatpush1.bf16.msra.mxu0 %v10328_v21  ;;  %vm12838_vm14 = vcmp.eq.s32.totalorder %v573_v28, %v10824_v46  ;;  %v436_v21 = vadd.s32 400, %v10746_v6  ;;  %v475_v40 = vand.u32 7, %v405_v35  ;;  %v424_v28 = vadd.s32 304, %v10746_v6 }
0x1718   :  { %10331 = vmatprep.subr.bf16.mxu0 %v10330_v10  ;;  %v14063_v32 = vsel %vm12838_vm14, 4294967295, %v14062_v32  ;;  %v420_v10 = vadd.s32 272, %v10746_v6  ;;  %v14090_v35 = vmov 0 }
0x1719   :  { %10277 = vmatpush1.bf16.msra.mxu1 %v10276_v42  ;;  %v5888_v42 = vld [vmem:[%s13803_s21 + $0x1e0] sm:$0xff] }
0x171a   :  { %10279 = vmatprep.subr.bf16.mxu1 %v10278_v50  ;;  %v5886_v50 = vld [vmem:[%s13803_s21 + $0x1d0] sm:$0xff]  ;;  %v10300_v33 = vpack.c.bf16 %v5888_v42, %v5884_v59  ;;  %v692_v59 = vand.u32 7, %v436_v21  ;;  %v14064_v42 = vmov 0  ;;  %v14092_v21 = vmov 0 }
0x171b   :  { %v10332_v14 = vpack.c.bf16 %v5890_v13, %v5886_v50  ;;  %v14067_v50 = vmov 0  ;;  %v421_v13 = vadd.s32 280, %v10746_v6 }
0x171d   :  { %10281 = vmatpush1.bf16.msra.mxu1 %v10280_v56  ;;  %10333 = vmatpush1.bf16.msra.mxu0 %v10332_v14  ;;  %v403_v56 = vadd.s32 136, %v10746_v6  ;;  %v699_v14 = vand.u32 7, %v437_v55  ;;  %v14095_v55 = vmov 0 }
0x171e   :  { %10283 = vmatprep.subr.bf16.mxu1 %v10282_v51  ;;  %v434_v51 = vadd.s32 384, %v10746_v6 }
0x171f   :  { %v461_v43 = vand.u32 7, %v403_v56  ;;  %v580_v56 = vand.u32 7, %v420_v10  ;;  %vm12886_vm4 = vcmp.eq.s32.totalorder %v699_v14, %v10824_v46  ;;  %v608_v10 = vand.u32 7, %v424_v28 }
0x1720   :  { %v678_v16 = vand.u32 7, %v434_v51  ;;  %v407_v51 = vadd.s32 168, %v10746_v6  ;;  %v411_v14 = vadd.s32 200, %v10746_v6 }
0x1721   :  { %10285 = vmatpush1.bf16.msra.mxu1 %v10284_v3  ;;  %v685_v3 = vand.u32 7, %v435_v57  ;;  %vm12779_vm15 = vcmp.eq.s32.totalorder %v461_v43, %v10824_v46  ;;  %v587_v57 = vand.u32 7, %v421_v13  ;;  %v438_v43 = vadd.s32 416, %v10746_v6 }
0x1722   :  { %10287 = vmatprep.subr.bf16.mxu1 %v10286_v49  ;;  %v14052_v49 = vmov 0  ;;  %v14055_v17 = vsel %vm12779_vm15, 4294967295, %v14054_v17  ;;  %vm12784_vm0 = vcmp.eq.s32.totalorder %v678_v16, %v10824_v46  ;;  %vm13827_vm13 = vmpackc.low %vm12779_vm15, %vm12774_vm5  ;;  %vm12872_vm15 = vcmp.eq.s32.totalorder %v692_v59, %v10824_v46 }
0x1723   :  { %v14053_v49 = vsel %vm12774_vm5, 4294967295, %v14052_v49  ;;  %vm12789_vm1 = vcmp.eq.s32.totalorder %v685_v3, %v10824_v46  ;;  %vm12861_vm5 = vcmp.eq.s32.totalorder %v475_v40, %v10824_v46  ;;  %v14071_v19 = vsel %vm12872_vm15, 4294967295, %v14070_v19 }
0x1724   :  { %vm13829_vm2 = vmpackc.low %vm12789_vm1, %vm12784_vm0  ;;  %v14068_v50 = vsel %vm12861_vm5, 4294967295, %v14067_v50  ;;  %v439_v16 = vadd.s32 424, %v10746_v6  ;;  %v14072_v3 = vmov 0  ;;  %v410_v40 = vadd.s32 192, %v10746_v6 }
0x1725   :  { %10289 = vmatpush1.bf16.msra.mxu1 %v10288_v23  ;;  %10367 = vmatprep.subr.msk.bf16.mxu0 %vm13829_vm2, %v13906_v0  ;;  %14069 = vst [vmem:[#allocation11_spill] sm:$0xff] %v14068_v50  ;;  %v14073_v3 = vsel %vm12886_vm4, 4294967295, %v14072_v3  ;;  %v14098_v59 = vmov 0 }
0x1726   :  { %10291 = vmatprep.subr.bf16.mxu1 %v10290_v18 }
0x1729   :  { %10293 = vmatpush1.bf16.msra.mxu1 %v10292_v11 }
0x172a   :  { %10295 = vmatprep.subr.bf16.mxu1 %v10294_v26 }
0x172d   :  { %10297 = vmatpush1.bf16.msra.mxu1 %v10296_v29  ;;  %v404_v29 = vadd.s32 144, %v10746_v6 }
0x172e   :  { %10299 = vmatprep.subr.bf16.mxu1 %v10298_v44 }
0x172f   :  { %v468_v44 = vand.u32 7, %v404_v29  ;;  %v425_v29 = vadd.s32 312, %v10746_v6 }
0x1731   :  { %10301 = vmatpush1.bf16.msra.mxu1 %v10300_v33  ;;  %v406_v33 = vadd.s32 160, %v10746_v6  ;;  %v615_v13 = vand.u32 7, %v425_v29 }
0x1732   :  { %10335 = vmatprep.subr.msk.bf16.mxu1 %vm13827_vm13, %v13906_v0 }
0x1733   :  { %v482_v36 = vand.u32 7, %v406_v33 }
0x17e3   :  { %v5730_v1 = vpop.f32.mrb[30].mxu1 }
0x17e4   :  { %v5737_v23 = vrot.slane %v5730_v1, %v11187_v38  ;;  %v9496_v18 = vpop.f32.mrb[31].mxu1  ;;  %v14074_v1 = vmov 0 }
0x17e5   :  { %v422_v18 = vadd.s32 288, %v10746_v6 }
0x17e6   :  { %v5738_v4 = vmul.f32 %v5737_v23, %v12541_v48  ;;  %v5739_v63 = vmul.f32 %v5737_v23, %v12543_v22  ;;  %v5740_v52 = vmul.f32 %v5737_v23, %v12545_v27  ;;  %v5741_v5 = vmul.f32 %v5737_v23, %v12547_v34 }
0x17e7   :  { %v5812_v12 = vpop.f32.mrb[32].mxu1  ;;  %v418_v34 = vadd.s32 256, %v10746_v6  ;;  %v489_v23 = vand.u32 7, %v407_v51  ;;  %v442_v51 = vadd.s32 448, %v10746_v6 }
0x17e8   :  { %v5819_v45 = vrot.slane %v5812_v12, %v11187_v38  ;;  %v9501_v11 = vpop.f32.mrb[33].mxu1  ;;  %v14078_v12 = vmov 0 }
0x17e9   :  { %v566_v8 = vand.u32 7, %v418_v34  ;;  %v713_v11 = vand.u32 7, %v439_v16  ;;  %v441_v34 = vadd.s32 440, %v10746_v6  ;;  %v426_v16 = vadd.s32 320, %v10746_v6 }
0x17ea   :  { %v5820_v54 = vadd.f32 %v5819_v45, %v5738_v4  ;;  %v5821_v24 = vadd.f32 %v5819_v45, %v5739_v63  ;;  %v5822_v26 = vadd.f32 %v5819_v45, %v5740_v52  ;;  %v5823_v25 = vadd.f32 %v5819_v45, %v5741_v5 }
0x17eb   :  { %vm12833_vm13 = vcmp.eq.s32.totalorder %v566_v8, %v10824_v46  ;;  %v706_v45 = vand.u32 7, %v438_v43  ;;  %v14081_v63 = vmov 0  ;;  %v423_v52 = vadd.s32 296, %v10746_v6 }
0x17ec   :  { %v5824_v62 = vmax.f32 %v5820_v54, 0.0  ;;  %v5825_v48 = vmax.f32 %v5821_v24, 0.0  ;;  %v5826_v22 = vmax.f32 %v5822_v26, 0.0  ;;  %v5827_v27 = vmax.f32 %v5823_v25, 0.0  ;;  %vm13832_vm2 = vmpackc.low %vm12838_vm14, %vm12833_vm13 }
0x17ed   :  { %v14061_v30 = vsel %vm12833_vm13, 4294967295, %v14060_v30  ;;  %vm12894_vm13 = vcmp.eq.s32.totalorder %v580_v56, %v10824_v46  ;;  %vm12924_vm14 = vcmp.eq.s32.totalorder %v489_v23, %v10824_v46  ;;  %v594_v5 = vand.u32 7, %v422_v18 }
0x17ee   :  { %5979 = vmatmul.mubr.f32.vlgmr.msra.gmra.mrb[34].mxu1 %v5824_v62  ;;  %6068 = vmatmul.mubr.f32.vlgmr.msra.gmra.mrb[36].mxu0 %v5824_v62  ;;  %v14075_v1 = vsel %vm12894_vm13, 4294967295, %v14074_v1  ;;  %v14082_v63 = vsel %vm12924_vm14, 4294967295, %v14081_v63  ;;  %v408_v54 = vadd.s32 176, %v10746_v6  ;;  %v14084_v24 = vmov 0 }
0x17ef   :  { %5984 = vmatprep.mubr.f32.mxu1 %v13885_v2  ;;  %6073 = vmatprep.mubr.f32.mxu0 %v13885_v2  ;;  %14083 = vst [vmem:[#allocation13_spill] sm:$0xff] %v14082_v63  ;;  %v14086_v26 = vmov 0  ;;  %v409_v25 = vadd.s32 184, %v10746_v6  ;;  %v440_v62 = vadd.s32 432, %v10746_v6  ;;  %v510_v56 = vand.u32 7, %v410_v40 }
0x17f0   :  { %10337 = vmatpush3.bf16.msk.msra.mxu1 %vm10851_vm8, %v13906_v0  ;;  %10369 = vmatpush3.bf16.msk.msra.mxu0 %vm13832_vm2, %v13906_v0  ;;  %vm12856_vm8 = vcmp.eq.s32.totalorder %v468_v44, %v10824_v46  ;;  %v727_v44 = vand.u32 7, %v441_v34  ;;  %v443_v43 = vadd.s32 456, %v10746_v6  ;;  %v517_v23 = vand.u32 7, %v411_v14 }
0x17f1   :  { %v14065_v42 = vsel %vm12856_vm8, 4294967295, %v14064_v42  ;;  %vm13837_vm2 = vmpackc.low %vm12861_vm5, %vm12856_vm8  ;;  %vm12904_vm8 = vcmp.eq.s32.totalorder %v587_v57, %v10824_v46  ;;  %v503_v37 = vand.u32 7, %v409_v25  ;;  %v720_v8 = vand.u32 7, %v440_v62 }
0x17f2   :  { %5985 = vmatmul.mubr.f32.gmra.mrb[36].mxu1 %v5825_v48  ;;  %6074 = vmatmul.mubr.f32.gmra.mrb[38].mxu0 %v5825_v48  ;;  %14066 = vst [vmem:[#allocation10_spill] sm:$0xff] %v14065_v42  ;;  %vm13845_vm5 = vmpackc.low %vm12904_vm8, %vm12894_vm13  ;;  %v601_v48 = vand.u32 7, %v423_v52  ;;  %vm12963_vm13 = vcmp.eq.s32.totalorder %v594_v5, %v10824_v46  ;;  %v14102_v57 = vmov 0  ;;  %v14106_v18 = vmov 0 }
0x17f3   :  { %5990 = vmatprep.mubr.f32.mxu1 %v13885_v2  ;;  %6079 = vmatprep.mubr.f32.mxu0 %v13885_v2  ;;  %v741_v52 = vand.u32 7, %v443_v43  ;;  %v622_v5 = vand.u32 7, %v426_v16  ;;  %v413_v25 = vadd.s32 216, %v10746_v6  ;;  %v14109_v62 = vmov 0 }
0x17f4   :  { %10339 = vmatprep.subr.msk.bf16.mxu1 %vm13837_vm2, %v13906_v0  ;;  %vm13842_vm2 = vmpackc.low %vm12886_vm4, %vm12872_vm15  ;;  %vm12941_vm15 = vcmp.eq.s32.totalorder %v706_v45, %v10824_v46  ;;  %vm12946_vm4 = vcmp.eq.s32.totalorder %v713_v11, %v10824_v46  ;;  %v734_v45 = vand.u32 7, %v442_v51  ;;  %v427_v11 = vadd.s32 328, %v10746_v6 }
0x17f5   :  { %10341 = vmatpush3.bf16.msk.msra.mxu1 %vm10883_vm11, %v13906_v0  ;;  %vm12909_vm11 = vcmp.eq.s32.totalorder %v482_v36, %v10824_v46  ;;  %10371 = vmatprep.subr.msk.bf16.mxu0 %vm13842_vm2, %v13906_v0  ;;  %v14085_v24 = vsel %vm12941_vm15, 4294967295, %v14084_v24  ;;  %v14087_v26 = vsel %vm12946_vm4, 4294967295, %v14086_v26  ;;  %v14104_v36 = vmov 0 }
0x17f6   :  { %5991 = vmatmul.mubr.f32.gmra.mrb[38].mxu1 %v5826_v22  ;;  %6080 = vmatmul.mubr.f32.gmra.mrb[40].mxu0 %v5826_v22  ;;  %v14079_v12 = vsel %vm12909_vm11, 4294967295, %v14078_v12  ;;  %vm13847_vm2 = vmpackc.low %vm12924_vm14, %vm12909_vm11  ;;  %v14088_v22 = vmov 0  ;;  %vm13000_vm14 = vcmp.eq.s32.totalorder %v720_v8, %v10824_v46  ;;  %v444_v34 = vadd.s32 464, %v10746_v6 }
0x17f7   :  { %5996 = vmatprep.mubr.f32.mxu1 %v13885_v2  ;;  %6085 = vmatprep.mubr.f32.mxu0 %v13885_v2  ;;  %14080 = vst [vmem:[#allocation12_spill] sm:$0xff] %v14079_v12  ;;  %v14089_v22 = vsel %vm12963_vm13, 4294967295, %v14088_v22  ;;  %v14099_v59 = vsel %vm13000_vm14, 4294967295, %v14098_v59  ;;  %v14116_v8 = vmov 0  ;;  %v531_v29 = vand.u32 7, %v413_v25 }
0x17f8   :  { %10373 = vmatpush3.bf16.msk.msra.mxu0 %vm13845_vm5, %v13906_v0  ;;  %10343 = vmatprep.subr.msk.bf16.mxu1 %vm13847_vm2, %v13906_v0  ;;  %vm13849_vm5 = vmpackc.low %vm12946_vm4, %vm12941_vm15  ;;  %vm12980_vm2 = vcmp.eq.s32.totalorder %v601_v48, %v10824_v46  ;;  %vm13015_vm4 = vcmp.eq.s32.totalorder %v727_v44, %v10824_v46  ;;  %v14118_v44 = vmov 0  ;;  %v445_v40 = vadd.s32 472, %v10746_v6 }
0x17f9   :  { %10375 = vmatprep.subr.msk.bf16.mxu0 %vm13849_vm5, %v13906_v0  ;;  %10345 = vmatpush3.bf16.msk.msra.mxu1 %vm11042_vm3, %v13906_v0  ;;  %v14091_v35 = vsel %vm12980_vm2, 4294967295, %v14090_v35  ;;  %vm13854_vm5 = vmpackc.low %vm12980_vm2, %vm12963_vm13  ;;  %vm12995_vm3 = vcmp.eq.s32.totalorder %v503_v37, %v10824_v46  ;;  %vm13032_vm13 = vcmp.eq.s32.totalorder %v608_v10, %v10824_v46  ;;  %vm13037_vm2 = vcmp.eq.s32.totalorder %v615_v13, %v10824_v46 }
0x17fa   :  { %5997 = vmatmul.mubr.f32.gmra.mrb[40].mxu1 %v5827_v27  ;;  %6086 = vmatmul.mubr.f32.gmra.mrb[42].mxu0 %v5827_v27  ;;  %v496_v27 = vand.u32 7, %v408_v54  ;;  %v14096_v55 = vsel %vm12995_vm3, 4294967295, %v14095_v55  ;;  %v14103_v57 = vsel %vm13032_vm13, 4294967295, %v14102_v57  ;;  %v14105_v36 = vsel %vm13037_vm2, 4294967295, %v14104_v36 }
0x17fb   :  { %14097 = vst [vmem:[#allocation15_spill] sm:$0xff] %v14096_v55  ;;  %v412_v54 = vadd.s32 208, %v10746_v6  ;;  %v748_v10 = vand.u32 7, %v444_v34  ;;  %v428_v13 = vadd.s32 336, %v10746_v6  ;;  %v14120_v14 = vmov 0 }
0x17fc   :  { %vm12985_vm11 = vcmp.eq.s32.totalorder %v496_v27, %v10824_v46  ;;  %10377 = vmatpush3.bf16.msk.msra.mxu0 %vm13854_vm5, %v13906_v0  ;;  %vm13859_vm5 = vmpackc.low %vm13015_vm4, %vm13000_vm14  ;;  %v629_v27 = vand.u32 7, %v427_v11  ;;  %v429_v51 = vadd.s32 344, %v10746_v6  ;;  %v414_v43 = vadd.s32 224, %v10746_v6 }
0x17fd   :  { %v14093_v21 = vsel %vm12985_vm11, 4294967295, %v14092_v21  ;;  %vm13857_vm15 = vmpackc.low %vm12995_vm3, %vm12985_vm11  ;;  %10379 = vmatprep.subr.msk.bf16.mxu0 %vm13859_vm5, %v13906_v0  ;;  %vm13057_vm11 = vcmp.eq.s32.totalorder %v510_v56, %v10824_v46  ;;  %vm13071_vm5 = vcmp.eq.s32.totalorder %v517_v23, %v10824_v46  ;;  %v524_v28 = vand.u32 7, %v412_v54 }
0x17fe   :  { %14094 = vst [vmem:[#allocation14_spill] sm:$0xff] %v14093_v21  ;;  %10347 = vmatprep.subr.msk.bf16.mxu1 %vm13857_vm15, %v13906_v0  ;;  %vm13862_vm15 = vmpackc.low %vm13037_vm2, %vm13032_vm13  ;;  %v14107_v18 = vsel %vm13057_vm11, 4294967295, %v14106_v18  ;;  %v14110_v62 = vsel %vm13071_vm5, 4294967295, %v14109_v62  ;;  %vm13091_vm13 = vcmp.eq.s32.totalorder %v622_v5, %v10824_v46  ;;  %vm13106_vm14 = vcmp.eq.s32.totalorder %v629_v27, %v10824_v46 }
0x17ff   :  { %10349 = vmatpush3.bf16.msk.msra.mxu1 %vm11058_vm10, %v13906_v0  ;;  %14108 = vst [vmem:[#allocation16_spill] sm:$0xff] %v14107_v18  ;;  %14111 = vst [vmem:[#allocation17_spill] sm:$0xff] %v14110_v62  ;;  %vm13076_vm10 = vcmp.eq.s32.totalorder %v734_v45, %v10824_v46  ;;  %v14117_v8 = vsel %vm13091_vm13, 4294967295, %v14116_v8  ;;  %v14119_v44 = vsel %vm13106_vm14, 4294967295, %v14118_v44  ;;  %v14123_v56 = vmov 0 }
0x1800   :  { %10381 = vmatpush3.bf16.msk.msra.mxu0 %vm13862_vm15, %v13906_v0  ;;  %vm13866_vm3 = vmpackc.low %vm13071_vm5, %vm13057_vm11  ;;  %vm13086_vm15 = vcmp.eq.s32.totalorder %v741_v52, %v10824_v46  ;;  %vm13126_vm11 = vcmp.eq.s32.totalorder %v524_v28, %v10824_v46  ;;  %vm13131_vm5 = vcmp.eq.s32.totalorder %v531_v29, %v10824_v46  ;;  %v755_v16 = vand.u32 7, %v445_v40 }
0x1801   :  { %10351 = vmatprep.subr.msk.bf16.mxu1 %vm13866_vm3, %v13906_v0  ;;  %vm13869_vm2 = vmpackc.low %vm13086_vm15, %vm13076_vm10  ;;  %v14121_v14 = vsel %vm13126_vm11, 4294967295, %v14120_v14  ;;  %v14124_v56 = vsel %vm13131_vm5, 4294967295, %v14123_v56  ;;  %v14126_v23 = vmov 0  ;;  %v636_v45 = vand.u32 7, %v428_v13 }
0x1802   :  { %10383 = vmatprep.subr.msk.bf16.mxu0 %vm13869_vm2, %v13906_v0  ;;  %vm13871_vm3 = vmpackc.low %vm13106_vm14, %vm13091_vm13  ;;  %14122 = vst [vmem:[#allocation18_spill] sm:$0xff] %v14121_v14  ;;  %v415_v11 = vadd.s32 232, %v10746_v6  ;;  %v643_v52 = vand.u32 7, %v429_v51  ;;  %v538_v5 = vand.u32 7, %v414_v43  ;;  %v446_v54 = vadd.s32 480, %v10746_v6  ;;  %v14247_v48 = vld [vmem:[#allocation15_spill] sm:$0xff] }
0x1803   :  { %10353 = vmatpush3.bf16.msk.msra.mxu1 %vm11074_vm9, %v13906_v0  ;;  %14125 = vst [vmem:[#allocation19_spill] sm:$0xff] %v14124_v56  ;;  %vm13873_vm2 = vmpackc.low %vm13131_vm5, %vm13126_vm11  ;;  %vm13148_vm9 = vcmp.eq.s32.totalorder %v748_v10, %v10824_v46  ;;  %v447_v25 = vadd.s32 488, %v10746_v6  ;;  %v14128_v27 = vmov 0  ;;  %vm13167_vm13 = vcmp.eq.s32.totalorder %v636_v45, %v10824_v46 }
0x1804   :  { %10385 = vmatpush3.bf16.msk.msra.mxu0 %vm13871_vm3, %v13906_v0  ;;  %v14127_v23 = vsel %vm13148_vm9, 4294967295, %v14126_v23  ;;  %10355 = vmatprep.subr.msk.bf16.mxu1 %vm13873_vm2, %v13906_v0  ;;  %vm13162_vm3 = vcmp.eq.s32.totalorder %v755_v16, %v10824_v46  ;;  %v14130_v34 = vmov 0  ;;  %v545_v28 = vand.u32 7, %v415_v11 }
0x1805   :  { %v14129_v27 = vsel %vm13162_vm3, 4294967295, %v14128_v27  ;;  %v14131_v34 = vsel %vm13167_vm13, 4294967295, %v14130_v34  ;;  %v430_v29 = vadd.s32 352, %v10746_v6  ;;  %vm13878_vm2 = vmpackc.low %vm13162_vm3, %vm13148_vm9  ;;  %vm13180_vm11 = vcmp.eq.s32.totalorder %v643_v52, %v10824_v46  ;;  %v14249_v37 = vld [vmem:[#allocation14_spill] sm:$0xff] }
0x1806   :  { %vm13185_vm5 = vcmp.eq.s32.totalorder %v538_v5, %v10824_v46  ;;  %v14134_v10 = vmov 0  ;;  %v762_v13 = vand.u32 7, %v446_v54  ;;  %v769_v51 = vand.u32 7, %v447_v25  ;;  %10387 = vmatprep.subr.msk.bf16.mxu0 %vm13878_vm2, %v13906_v0 }
0x1807   :  { %10357 = vmatpush3.bf16.msk.msra.mxu1 %vm11090_vm6, %v13906_v0  ;;  %v14135_v10 = vsel %vm13185_vm5, 4294967295, %v14134_v10  ;;  %vm13881_vm6 = vmpackc.low %vm13180_vm11, %vm13167_vm13  ;;  %vm13200_vm14 = vcmp.eq.s32.totalorder %v545_v28, %v10824_v46  ;;  %v14137_v43 = vmov 0  ;;  %v431_v16 = vadd.s32 360, %v10746_v6 }
0x1808   :  { %14136 = vst [vmem:[#allocation20_spill] sm:$0xff] %v14135_v10  ;;  %v14138_v43 = vsel %vm13200_vm14, 4294967295, %v14137_v43  ;;  %v650_v45 = vand.u32 7, %v430_v29  ;;  %v416_v11 = vadd.s32 240, %v10746_v6  ;;  %10389 = vmatpush3.bf16.msk.msra.mxu0 %vm13881_vm6, %v13906_v0  ;;  %vm13887_vm2 = vmpackc.low %vm13200_vm14, %vm13185_vm5  ;;  %vm13217_vm9 = vcmp.eq.s32.totalorder %v762_v13, %v10824_v46 }
0x1809   :  { %14139 = vst [vmem:[#allocation21_spill] sm:$0xff] %v14138_v43  ;;  %v14140_v52 = vmov 0  ;;  %vm13222_vm3 = vcmp.eq.s32.totalorder %v769_v51, %v10824_v46  ;;  %v14142_v5 = vmov 0  ;;  %v417_v54 = vadd.s32 248, %v10746_v6  ;;  %10359 = vmatprep.subr.msk.bf16.mxu1 %vm13887_vm2, %v13906_v0  ;;  %v14263_v40 = vld [vmem:[#allocation18_spill] sm:$0xff] }
0x180a   :  { %v14141_v52 = vsel %vm13217_vm9, 4294967295, %v14140_v52  ;;  %v14143_v5 = vsel %vm13222_vm3, 4294967295, %v14142_v5  ;;  %v448_v25 = vadd.s32 496, %v10746_v6  ;;  %vm13891_vm6 = vmpackc.low %vm13222_vm3, %vm13217_vm9  ;;  %v657_v28 = vand.u32 7, %v431_v16 }
0x180b   :  { %vm13239_vm13 = vcmp.eq.s32.totalorder %v650_v45, %v10824_v46  ;;  %v14144_v29 = vmov 0  ;;  %v552_v13 = vand.u32 7, %v416_v11  ;;  %v449_v51 = vadd.s32 504, %v10746_v6  ;;  %10391 = vmatprep.subr.msk.bf16.mxu0 %vm13891_vm6, %v13906_v0  ;;  %10361 = vmatpush3.bf16.msk.msra.mxu1 %vm11110_vm7, %v13906_v0 }
0x180c   :  { %v14145_v29 = vsel %vm13239_vm13, 4294967295, %v14144_v29  ;;  %v559_v16 = vand.u32 7, %v417_v54  ;;  %v776_v31 = vand.u32 7, %v448_v25  ;;  %v432_v45 = vadd.s32 368, %v10746_v6 }
0x180d   :  { %v433_v2 = vadd.s32 376, %v10746_v6  ;;  %vm13256_vm2 = vcmp.eq.s32.totalorder %v657_v28, %v10824_v46  ;;  %v14146_v11 = vmov 0  ;;  %vm13261_vm5 = vcmp.eq.s32.totalorder %v552_v13, %v10824_v46 }
0x180e   :  { %v14147_v11 = vsel %vm13256_vm2, 4294967295, %v14146_v11  ;;  %v14148_v10 = vmov 0  ;;  %v783_v43 = vand.u32 7, %v449_v51  ;;  %vm13896_vm6 = vmpackc.low %vm13256_vm2, %vm13239_vm13  ;;  %vm13270_vm7 = vcmp.eq.s32.totalorder %v559_v16, %v10824_v46 }
0x180f   :  { %v14149_v10 = vsel %vm13261_vm5, 4294967295, %v14148_v10  ;;  %v14151_v54 = vmov 0  ;;  %vm13275_vm14 = vcmp.eq.s32.totalorder %v776_v31, %v10824_v46  ;;  %v664_v28 = vand.u32 7, %v432_v45  ;;  %10393 = vmatpush3.bf16.msk.msra.mxu0 %vm13896_vm6, %v13906_v0  ;;  %vm13899_vm9 = vmpackc.low %vm13270_vm7, %vm13261_vm5 }
0x1810   :  { %14150 = vst [vmem:[#allocation22_spill] sm:$0xff] %v14149_v10  ;;  %v14152_v54 = vsel %vm13270_vm7, 4294967295, %v14151_v54  ;;  %v671_v13 = vand.u32 7, %v433_v2  ;;  %vm13290_vm3 = vcmp.eq.s32.totalorder %v783_v43, %v10824_v46  ;;  %10363 = vmatprep.subr.msk.bf16.mxu1 %vm13899_vm9, %v13906_v0  ;;  %v14158_v2 = vmov 0 }
0x1811   :  { %14153 = vst [vmem:[#allocation23_spill] sm:$0xff] %v14152_v54  ;;  %vm13900_vm6 = vmpackc.low %vm13290_vm3, %vm13275_vm14  ;;  %vm13305_vm13 = vcmp.eq.s32.totalorder %v664_v28, %v10824_v46  ;;  %v14160_v43 = vmov 0  ;;  %10365 = vmatpush3.bf16.msk.msra.mxu1 %vm11124_vm12, %v13906_v0  ;;  %v5904_v45 = vsub.s32 2, %v10746_v6  ;;  %v5900_v10 = vsub.s32 1, %v10746_v6 }
0x1812   :  { %v14159_v2 = vsel %vm13305_vm13, 4294967295, %v14158_v2  ;;  %vm13310_vm2 = vcmp.eq.s32.totalorder %v671_v13, %v10824_v46  ;;  %10395 = vmatprep.subr.msk.bf16.mxu0 %vm13900_vm6, %v13906_v0  ;;  %vm14162_vm6 = vmpackc.low %vm12789_vm1, %vm12784_vm0  ;;  %v5908_v54 = vsub.s32 3, %v10746_v6  ;;  %vm14182_vm0 = vnez %v14061_v30 }
0x1813   :  { %v14161_v43 = vsel %vm13310_vm2, 4294967295, %v14160_v43  ;;  %vm13940_vm9 = vmpackc.low %vm13310_vm2, %vm13305_vm13  ;;  %v5905_v58 = vrot.slane %v5892_v9, %v5904_v45  ;;  %v5901_v56 = vrot.slane %v5892_v9, %v5900_v10  ;;  %vm14185_vm12 = vnez %v14071_v19 }
0x1814   :  { %10397 = vmatpush3.bf16.msk.msra.mxu0 %vm13940_vm9, %v13906_v0  ;;  %v5909_v53 = vrot.slane %v5892_v9, %v5908_v54  ;;  %vm14184_vm9 = vnez %v14073_v3  ;;  %vm14187_vm7 = vnez %v14075_v1  ;;  %vm14189_vm2 = vnez %v14087_v26 }
0x1815   :  { %10431 = vmatprep.subr.msk.bf16.mxu0 %vm14162_vm6, %v13906_v0  ;;  %vm14181_vm6 = vnez %v14063_v32  ;;  %vm14186_vm5 = vmpackc.low %vm14184_vm9, %vm14185_vm12  ;;  %vm14193_vm9 = vnez %v14089_v22  ;;  %v1171_v19 = vadd.s32 256, %v10824_v46 }
0x1816   :  { %vm14183_vm1 = vmpackc.low %vm14181_vm6, %vm14182_vm0  ;;  %vm14190_vm6 = vnez %v14085_v24 }
0x1817   :  { %vm14188_vm13 = vmpackc.low %vm12904_vm8, %vm14187_vm7  ;;  %vm14195_vm8 = vnez %v14099_v59  ;;  %v14277_v31 = vld [vmem:[#allocation22_spill] sm:$0xff] }
0x1818   :  { %vm14191_vm0 = vmpackc.low %vm14189_vm2, %vm14190_vm6  ;;  %v14275_v25 = vld [vmem:[#allocation23_spill] sm:$0xff] }
0x1819   :  { %vm14196_vm7 = vmpackc.low %vm13015_vm4, %vm14195_vm8  ;;  %vm14202_vm4 = vnez %v14117_v8  ;;  %v14252_v8 = vld [vmem:[#allocation4_spill] sm:$0xff] }
0x181a   :  { %vm14200_vm6 = vmpackc.low %vm13086_vm15, %vm13076_vm10  ;;  %vm14207_vm10 = vnez %v14131_v34  ;;  %v14261_v34 = vld [vmem:[#allocation19_spill] sm:$0xff] }
0x181b   :  { %vm14208_vm15 = vmpackc.low %vm13180_vm11, %vm14207_vm10  ;;  %vm14227_vm10 = vcmask 64512  }
0x181c   :  { %vm14215_vm11 = vmpackc.low %vm13290_vm3, %vm13275_vm14  ;;  %vm14224_vm14 = vnez %v13983_v41  ;;  %v6639_v41 = vld [vmem:[%s13808_s23] sm:$0x1] }
0x18c1   :  { %v5980_v51 = vpop.f32.mrb[34].mxu1  ;;  %v6069_v16 = vpop.f32.mrb[36].mxu0 }
0x18c2   :  { %v5982_v28 = vpop.f32.mrb[35].mxu1  ;;  %v6071_v13 = vpop.f32.mrb[37].mxu0  ;;  %v13354_v12 = vadd.f32 %v5980_v51, %v5897_v20  ;;  %v13356_v63 = vadd.f32 %v6069_v16, %v5905_v58 }
0x18c3   :  { %v13364_v54 = vadd.f32 %v6071_v13, %v5909_v53 }
0x18c4   :  { %14167 = vst [vmem:[#allocation28_spill] sm:$0xff] %v13354_v12  ;;  %14168 = vst [vmem:[#allocation29_spill] sm:$0xff] %v13356_v63 }
0x18c5   :  { %v5986_v61 = vpop.f32.mrb[36].mxu1  ;;  %v6075_v15 = vpop.f32.mrb[38].mxu0  ;;  %14172 = vst [vmem:[#allocation33_spill] sm:$0xff] %v13364_v54 }
0x18c6   :  { %v5988_v0 = vpop.f32.mrb[37].mxu1  ;;  %v6077_v14 = vpop.f32.mrb[39].mxu0  ;;  %v13346_v18 = vadd.f32 %v5986_v61, %v5897_v20  ;;  %v13348_v62 = vadd.f32 %v6075_v15, %v5905_v58  ;;  %v13362_v61 = vadd.f32 %v5982_v28, %v5901_v56 }
0x18c7   :  { %v13350_v47 = vadd.f32 %v5988_v0, %v5901_v56  ;;  %v13352_v21 = vadd.f32 %v6077_v14, %v5909_v53 }
0x18c8   :  { %14163 = vst [vmem:[#allocation24_spill] sm:$0xff] %v13346_v18  ;;  %14164 = vst [vmem:[#allocation25_spill] sm:$0xff] %v13348_v62  ;;  %v6092_v51 = vadd.f32 %v13346_v18, %v13354_v12  ;;  %v6110_v16 = vadd.f32 %v13348_v62, %v13356_v63 }
0x18c9   :  { %14165 = vst [vmem:[#allocation26_spill] sm:$0xff] %v13350_v47  ;;  %14166 = vst [vmem:[#allocation27_spill] sm:$0xff] %v13352_v21  ;;  %v5992_v55 = vpop.f32.mrb[38].mxu1  ;;  %v6081_v39 = vpop.f32.mrb[40].mxu0 }
0x18ca   :  { %v13358_v38 = vadd.f32 %v5992_v55, %v5897_v20  ;;  %v13360_v45 = vadd.f32 %v6081_v39, %v5905_v58  ;;  %v5994_v10 = vpop.f32.mrb[39].mxu1  ;;  %v6083_v9 = vpop.f32.mrb[41].mxu0  ;;  %14171 = vst [vmem:[#allocation32_spill] sm:$0xff] %v13362_v61  ;;  %v6101_v39 = vadd.f32 %v13350_v47, %v13362_v61  ;;  %v6119_v55 = vadd.f32 %v13352_v21, %v13364_v54 }
0x18cb   :  { %v13366_v0 = vadd.f32 %v5994_v10, %v5901_v56  ;;  %v13368_v14 = vadd.f32 %v6083_v9, %v5909_v53 }
0x18cc   :  { %14169 = vst [vmem:[#allocation30_spill] sm:$0xff] %v13358_v38  ;;  %14170 = vst [vmem:[#allocation31_spill] sm:$0xff] %v13360_v45  ;;  %v6093_v13 = vadd.f32 %v6092_v51, %v13358_v38  ;;  %v6111_v10 = vadd.f32 %v6110_v16, %v13360_v45 }
0x18cd   :  { %14173 = vst [vmem:[#allocation34_spill] sm:$0xff] %v13366_v0  ;;  %14174 = vst [vmem:[#allocation35_spill] sm:$0xff] %v13368_v14  ;;  %v5998_v28 = vpop.f32.mrb[40].mxu1  ;;  %v6087_v15 = vpop.f32.mrb[42].mxu0  ;;  %v6102_v62 = vadd.f32 %v6101_v39, %v13366_v0  ;;  %v6120_v63 = vadd.f32 %v6119_v55, %v13368_v14 }
0x18ce   :  { %v13380_v9 = vadd.f32 %v5998_v28, %v5897_v20  ;;  %v13382_v7 = vadd.f32 %v6087_v15, %v5905_v58  ;;  %v6000_v18 = vpop.f32.mrb[41].mxu1  ;;  %v6089_v12 = vpop.f32.mrb[43].mxu0 }
0x18cf   :  { %v13386_v47 = vadd.f32 %v6000_v18, %v5901_v56  ;;  %v13388_v61 = vadd.f32 %v6089_v12, %v5909_v53 }
0x18d0   :  { %14175 = vst [vmem:[#allocation36_spill] sm:$0xff] %v13380_v9  ;;  %14176 = vst [vmem:[#allocation37_spill] sm:$0xff] %v13382_v7  ;;  %v6094_v21 = vadd.f32 %v6093_v13, %v13380_v9  ;;  %v6112_v51 = vadd.f32 %v6111_v10, %v13382_v7 }
0x18d1   :  { %14177 = vst [vmem:[#allocation38_spill] sm:$0xff] %v13386_v47  ;;  %14178 = vst [vmem:[#allocation39_spill] sm:$0xff] %v13388_v61  ;;  %v6103_v16 = vadd.f32 %v6102_v62, %v13386_v47  ;;  %v6121_v20 = vadd.f32 %v6120_v63, %v13388_v61 }
0x18d2   :  { %v6095_v58 = vrot.slane %v6094_v21, 4  ;;  %v6113_v28 = vrot.slane %v6112_v51, 4 }
0x18d3   :  { %v6104_v15 = vrot.slane %v6103_v16, 4  ;;  %v6122_v54 = vrot.slane %v6121_v20, 4 }
0x18d4   :  { %v6096_v45 = vadd.f32 %v6095_v58, %v6094_v21  ;;  %v6114_v39 = vadd.f32 %v6113_v28, %v6112_v51  ;;  %v14179_v21 = vmov 0.0   ;;  %v14285_v58 = vld [vmem:[#allocation30_spill] sm:$0xff] }
0x18d5   :  { %v6105_v0 = vadd.f32 %v6104_v15, %v6103_v16  ;;  %v6123_v55 = vadd.f32 %v6122_v54, %v6121_v20  ;;  %v14180_v54 = vmov 1.0|1.0   ;;  %v14284_v16 = vld [vmem:[#allocation24_spill] sm:$0xff] }
0x18d6   :  { %v6097_v18 = vrot.slane %v6096_v45, 2  ;;  %v6115_v56 = vrot.slane %v6114_v39, 2 }
0x18d7   :  { %v6106_v53 = vrot.slane %v6105_v0, 2  ;;  %v6124_v12 = vrot.slane %v6123_v55, 2  ;;  %v14286_v15 = vld [vmem:[#allocation36_spill] sm:$0xff] }
0x18d8   :  { %v6098_v14 = vadd.f32 %v6097_v18, %v6096_v45  ;;  %v6116_v13 = vadd.f32 %v6115_v56, %v6114_v39  ;;  %v14282_v45 = vld [vmem:[#allocation9_spill] sm:$0xff]  ;;  %v14288_v56 = vld [vmem:[#allocation26_spill] sm:$0xff] }
0x18d9   :  { %v6107_v9 = vadd.f32 %v6106_v53, %v6105_v0  ;;  %v6125_v10 = vadd.f32 %v6124_v12, %v6123_v55  ;;  %v14287_v55 = vld [vmem:[#allocation32_spill] sm:$0xff] }
0x18da   :  { %v6099_v7 = vrot.slane %v6098_v14, 1  ;;  %v6117_v62 = vrot.slane %v6116_v13, 1 }
0x18db   :  { %v6108_v47 = vrot.slane %v6107_v9, 1  ;;  %v6126_v63 = vrot.slane %v6125_v10, 1 }
0x18dc   :  { %v6100_v42 = vadd.f32 %v6099_v7, %v6098_v14  ;;  %v6118_v50 = vadd.f32 %v6117_v62, %v6116_v13  ;;  %v1170_v7 = vadd.s32 128, %v10824_v46 }
0x18dd   :  { %v6109_v61 = vadd.f32 %v6108_v47, %v6107_v9  ;;  %v6127_v38 = vadd.f32 %v6126_v63, %v6125_v10  ;;  %v1172_v47 = vadd.s32 384, %v10824_v46  ;;  %v14235_v46 = vld [vmem:[#allocation10_spill] sm:$0xff]  ;;  %v14283_v9 = vld [vmem:[#allocation28_spill] sm:$0xff] }
0x18de   :  { %v14289_v63 = vld [vmem:[#allocation34_spill] sm:$0xff] }
0x18df   :  { %6192 = vmatprep.mubr.f32.mxu1 %v6109_v61  ;;  %6262 = vmatprep.mubr.f32.mxu0 %v6127_v38  ;;  %v1177_v38 = vand.u32 7, %v1170_v7  ;;  %v1191_v30 = vand.u32 7, %v1172_v47 }
0x18e0   :  { %6193 = vmatmul.mubr.f32.vlgmr.msra.gmra.mrb[42].mxu1 %v6100_v42  ;;  %6263 = vmatmul.mubr.f32.vlgmr.msra.gmra.mrb[44].mxu0 %v6118_v50  ;;  %v14221_v42 = vmov 1.0  }
0x18e1   :  { %6336 = vmatprep.mubr.f32.mxu1 %v14179_v21  ;;  %10433 = vmatpush3.bf16.msk.msra.mxu0 %vm14183_vm1, %v14180_v54  ;;  %vm14192_vm1 = vnez %v14091_v35  ;;  %vm13496_vm3 = vcmp.eq.s32.totalorder %v1191_v30, %v10746_v6  ;;  %v1184_v35 = vand.u32 7, %v1171_v19 }
0x18e2   :  { %10435 = vmatprep.subr.msk.bf16.mxu0 %vm14186_vm5, %v14180_v54  ;;  %vm14194_vm12 = vmpackc.low %vm14192_vm1, %vm14193_vm9  ;;  %vm14197_vm5 = vnez %v14105_v36  ;;  %vm14204_vm9 = vnez %v14129_v27  ;;  %v14238_v36 = vld [vmem:[#allocation2_spill] sm:$0xff]  ;;  %v14259_v27 = vld [vmem:[#allocation5_spill] sm:$0xff] }
0x18e5   :  { %10437 = vmatpush3.bf16.msk.msra.mxu0 %vm14188_vm13, %v14180_v54  ;;  %vm14198_vm13 = vnez %v14103_v57 }
0x18e6   :  { %10439 = vmatprep.subr.msk.bf16.mxu0 %vm14191_vm0, %v14180_v54  ;;  %vm14199_vm2 = vmpackc.low %vm14197_vm5, %vm14198_vm13  ;;  %vm14201_vm0 = vnez %v14119_v44  ;;  %vm14210_vm5 = vnez %v14141_v52  ;;  %v14254_v44 = vld [vmem:[#allocation17_spill] sm:$0xff]  ;;  %v14266_v52 = vld [vmem:[#allocation6_spill] sm:$0xff] }
0x18e7   :  { %vm14203_vm1 = vmpackc.low %vm14201_vm0, %vm14202_vm4  ;;  %vm14216_vm4 = vnez %v14161_v43 }
0x18e9   :  { %10441 = vmatpush3.bf16.msk.msra.mxu0 %vm14194_vm12, %v14180_v54  ;;  %vm14205_vm12 = vnez %v14127_v23  ;;  %v14256_v23 = vld [vmem:[#allocation16_spill] sm:$0xff] }
0x18ea   :  { %10443 = vmatprep.subr.msk.bf16.mxu0 %vm14196_vm7, %v14180_v54  ;;  %vm14206_vm8 = vmpackc.low %vm14204_vm9, %vm14205_vm12  ;;  %vm14209_vm7 = vnez %v14143_v5  ;;  %vm13488_vm12 = vcmp.eq.s32.totalorder %v1177_v38, %v10746_v6  ;;  %v14268_v5 = vld [vmem:[#allocation21_spill] sm:$0xff] }
0x18eb   :  { %vm14211_vm13 = vmpackc.low %vm14209_vm7, %vm14210_vm5  ;;  %7673 = vmatprep.subr.msk.mxu1 %vm13488_vm12, %v14221_v42  ;;  %vm14229_vm7 = vnez %v14053_v49  ;;  %v14240_v49 = vld [vmem:[#allocation13_spill] sm:$0xff] }
0x18ec   :  { %7674 = vmatpush1.msk.msra.mxu1 %vm14224_vm14, %v14221_v42 }
0x18ed   :  { %10445 = vmatpush3.bf16.msk.msra.mxu0 %vm14199_vm2, %v14180_v54  ;;  %vm14212_vm2 = vnez %v14147_v11  ;;  %7676 = vmatprep.subr.msk.mxu1 %vm13496_vm3, %v14221_v42  ;;  %v14273_v11 = vld [vmem:[#allocation7_spill] sm:$0xff] }
0x18ee   :  { %10447 = vmatprep.subr.msk.bf16.mxu0 %vm14200_vm6, %v14180_v54  ;;  %vm14213_vm6 = vnez %v14145_v29  ;;  %v14270_v29 = vld [vmem:[#allocation20_spill] sm:$0xff] }
0x18ef   :  { %vm14214_vm0 = vmpackc.low %vm14212_vm2, %vm14213_vm6  ;;  %vm14232_vm2 = vnez %v13959_v60  ;;  %v14245_v60 = vld [vmem:[#allocation3_spill] sm:$0xff] }
0x18f1   :  { %10449 = vmatpush3.bf16.msk.msra.mxu0 %vm14203_vm1, %v14180_v54  ;;  %vm14217_vm1 = vnez %v14159_v2  ;;  %v14280_v2 = vld [vmem:[#allocation8_spill] sm:$0xff] }
0x18f2   :  { %10451 = vmatprep.subr.msk.bf16.mxu0 %vm14206_vm8, %v14180_v54  ;;  %vm14218_vm9 = vmpackc.low %vm14216_vm4, %vm14217_vm1  ;;  %vm13511_vm8 = vcmp.eq.s32.totalorder %v1184_v35, %v10746_v6  ;;  %v14233_v6 = vld [vmem:[#allocation11_spill] sm:$0xff]  ;;  %vm14239_vm4 = vnez %v14238_v36  ;;  %vm14241_vm1 = vnez %v14240_v49  ;;  %v14294_v49 = vld [vmem:[#allocation33_spill] sm:$0xff] }
0x18f3   :  { %vm14234_vm6 = vnez %v14233_v6  ;;  %v14293_v6 = vld [vmem:[#allocation31_spill] sm:$0xff] }
0x18f5   :  { %10453 = vmatpush3.bf16.msk.msra.mxu0 %vm14208_vm15, %v14180_v54  ;;  %vm14228_vm15 = vnez %v14055_v17  ;;  %v14242_v17 = vld [vmem:[#allocation12_spill] sm:$0xff] }
0x18f6   :  { %10455 = vmatprep.subr.msk.bf16.mxu0 %vm14211_vm13, %v14180_v54  ;;  %vm14230_vm5 = vmpackc.low %vm14228_vm15, %vm14229_vm7  ;;  %vm14246_vm15 = vnez %v14245_v60  ;;  %vm14248_vm7 = vnez %v14247_v48  ;;  %v14295_v60 = vld [vmem:[#allocation27_spill] sm:$0xff] }
0x18f7   :  { %vm14231_vm13 = vmmov %vm14227_vm10 }
0x18f9   :  { %10457 = vmatpush3.bf16.msk.msra.mxu0 %vm14214_vm0, %v14180_v54  ;;  %vm14236_vm0 = vnez %v14235_v46 }
0x18fa   :  { %10459 = vmatprep.subr.msk.bf16.mxu0 %vm14215_vm11, %v14180_v54  ;;  %vm14237_vm11 = vmpackc.low %vm14234_vm6, %vm14236_vm0  ;;  %vm14255_vm6 = vnez %v14254_v44  ;;  %vm14257_vm0 = vnez %v14256_v23  ;;  %v14297_v23 = vld [vmem:[#allocation37_spill] sm:$0xff] }
0x18fd   :  { %10461 = vmatpush3.bf16.msk.msra.mxu0 %vm14218_vm9, %v14180_v54  ;;  %vm14243_vm9 = vnez %v14242_v17 }
0x18fe   :  { %7749 = vmatprep.subr.msk.mxu0 %vm13488_vm12, %v14221_v42 }
0x19b3   :  { %v8327_v3 = vpop.f32.mrb[42].mxu1  ;;  %v8362_v1 = vpop.f32.mrb[44].mxu0 }
0x19b4   :  { %v8328_v4 = vpop.f32.mrb[43].mxu1  ;;  %v8363_v24 = vpop.f32.mrb[45].mxu0 }
0x19b5   :  { %v8329_v26 = vadd.f32 %v8328_v4, %v8327_v3  ;;  %v8364_v22 = vadd.f32 %v8363_v24, %v8362_v1  ;;  %v14290_v1 = vld [vmem:[#allocation38_spill] sm:$0xff] }
0x19b7   :  { %v6265_v59 = vadd.f32 %v8364_v22, %v8329_v26  ;;  %v14291_v22 = vld [vmem:[#allocation29_spill] sm:$0xff] }
0x19b9   :  { %v6268_v33 = vmul.f32 0.00048828125, %v6265_v59  ;;  %v14292_v59 = vld [vmem:[#allocation25_spill] sm:$0xff] }
0x19bb   :  { %7675 = vmatmul.mubr.msk.f32.vlgmr.msra.gmra.mrb[44].mxu1 %vm14227_vm10, %v6268_v33  ;;  %vm14244_vm10 = vmpackc.low %vm14241_vm1, %vm14243_vm9  ;;  %vm14262_vm1 = vnez %v14261_v34  ;;  %vm14264_vm9 = vnez %v14263_v40 }
0x19bc   :  { %7677 = vmatpush1.msk.msra.mxu1 %vm13511_vm8, %v14221_v42  ;;  %6407 = vmatprep.mubr.f32.mxu1 %v14179_v21 }
0x19bd   :  { %10399 = vmatprep.subr.msk.bf16.mxu1 %vm14230_vm5, %v14180_v54  ;;  %vm14250_vm5 = vnez %v14249_v37  ;;  %v14296_v37 = vld [vmem:[#allocation35_spill] sm:$0xff] }
0x19bf   :  { %7678 = vmatmul.mubr.msk.f32.vlgmr.msra.gmra.mrb[46].mxu1 %vm14231_vm13, %v6268_v33  ;;  %vm14251_vm13 = vmpackc.low %vm14248_vm7, %vm14250_vm5  ;;  %vm14269_vm7 = vnez %v14268_v5  ;;  %vm14271_vm5 = vnez %v14270_v29  ;;  %v14298_v5 = vld [vmem:[#allocation39_spill] sm:$0xff] }
0x19c0   :  { %10401 = vmatpush3.bf16.msk.msra.mxu1 %vm14232_vm2, %v14180_v54  ;;  %vm14253_vm2 = vnez %v14252_v8 }
0x19c1   :  { %10403 = vmatprep.subr.msk.bf16.mxu1 %vm14237_vm11, %v14180_v54  ;;  %vm14258_vm11 = vmpackc.low %vm14255_vm6, %vm14257_vm0  ;;  %vm14276_vm6 = vnez %v14275_v25  ;;  %vm14278_vm0 = vnez %v14277_v31 }
0x19c4   :  { %10405 = vmatpush3.bf16.msk.msra.mxu1 %vm14239_vm4, %v14180_v54  ;;  %vm14260_vm4 = vnez %v14259_v27 }
0x19c5   :  { %10407 = vmatprep.subr.msk.bf16.mxu1 %vm14244_vm10, %v14180_v54  ;;  %vm14265_vm10 = vmpackc.low %vm14262_vm1, %vm14264_vm9 }
0x19c8   :  { %10409 = vmatpush3.bf16.msk.msra.mxu1 %vm14246_vm15, %v14180_v54  ;;  %vm14267_vm15 = vnez %v14266_v52 }
0x19c9   :  { %10411 = vmatprep.subr.msk.bf16.mxu1 %vm14251_vm13, %v14180_v54  ;;  %vm14272_vm13 = vmpackc.low %vm14269_vm7, %vm14271_vm5 }
0x19cc   :  { %10413 = vmatpush3.bf16.msk.msra.mxu1 %vm14253_vm2, %v14180_v54  ;;  %vm14274_vm2 = vnez %v14273_v11 }
0x19cd   :  { %10415 = vmatprep.subr.msk.bf16.mxu1 %vm14258_vm11, %v14180_v54  ;;  %vm14279_vm11 = vmpackc.low %vm14276_vm6, %vm14278_vm0 }
0x19d0   :  { %10417 = vmatpush3.bf16.msk.msra.mxu1 %vm14260_vm4, %v14180_v54  ;;  %vm14281_vm4 = vnez %v14280_v2 }
0x19d1   :  { %10419 = vmatprep.subr.msk.bf16.mxu1 %vm14265_vm10, %v14180_v54 }
0x19d4   :  { %10421 = vmatpush3.bf16.msk.msra.mxu1 %vm14267_vm15, %v14180_v54 }
0x19d5   :  { %10423 = vmatprep.subr.msk.bf16.mxu1 %vm14272_vm13, %v14180_v54 }
0x19d8   :  { %10425 = vmatpush3.bf16.msk.msra.mxu1 %vm14274_vm2, %v14180_v54 }
0x19d9   :  { %10427 = vmatprep.subr.msk.bf16.mxu1 %vm14279_vm11, %v14180_v54 }
0x19dc   :  { %10429 = vmatpush3.bf16.msk.msra.mxu1 %vm14281_vm4, %v14180_v54 }
0x19dd   :  { %7743 = vmatprep.subr.msk.mxu1 %vm13488_vm12, %v14221_v42  ;;  %vm14299_vm12 = vcmask 64512  }
0x19de   :  { %vm14301_vm1 = vmmov %vm14299_vm12 }
0x19df   :  { %vm14302_vm9 = vmmov %vm14301_vm1 }
0x1a8e   :  { %v6338_v43 = vpop.f32.mrb[44].mxu1 }
0x1a8f   :  { %v6417_v61 = vrot.slane %v6338_v43, %v14282_v45  ;;  %v6340_v0 = vpop.f32.mrb[45].mxu1 }
0x1a90   :  { %v6421_v14 = vrot.slane %v6340_v0, %v14282_v45 }
0x1a91   :  { %v13599_v51 = vsub.f32 %v14283_v9, %v6417_v61  ;;  %v13602_v20 = vsub.f32 %v14284_v16, %v6417_v61  ;;  %v13605_v28 = vsub.f32 %v14285_v58, %v6417_v61  ;;  %v13608_v39 = vsub.f32 %v14286_v15, %v6417_v61 }
0x1a92   :  { %v13611_v18 = vsub.f32 %v14287_v55, %v6421_v14  ;;  %v13614_v53 = vsub.f32 %v14288_v56, %v6421_v14  ;;  %v6409_v12 = vpop.f32.mrb[46].mxu1  ;;  %v13621_v54 = vsub.f32 %v14289_v63, %v6421_v14  ;;  %v13634_v4 = vsub.f32 %v14290_v1, %v6421_v14 }
0x1a93   :  { %v6446_v13 = vmul.f32 %v13599_v51, %v13599_v51  ;;  %v6450_v10 = vmul.f32 %v13602_v20, %v13602_v20  ;;  %v6411_v62 = vpop.f32.mrb[47].mxu1  ;;  %v6454_v38 = vmul.f32 %v13605_v28, %v13605_v28  ;;  %v6425_v32 = vrot.slane %v6409_v12, %v14282_v45 }
0x1a94   :  { %v6447_v7 = vmul.f32 %v13611_v18, %v13611_v18  ;;  %v6451_v47 = vmul.f32 %v13614_v53, %v13614_v53  ;;  %v6429_v19 = vrot.slane %v6411_v62, %v14282_v45  ;;  %v6458_v3 = vmul.f32 %v13608_v39, %v13608_v39 }
0x1a95   :  { %v6462_v30 = vadd.f32 %v6450_v10, %v6446_v13  ;;  %v13637_v35 = vsub.f32 %v14291_v22, %v6425_v32  ;;  %v13640_v33 = vsub.f32 %v14292_v59, %v6425_v32  ;;  %v13643_v46 = vsub.f32 %v14293_v6, %v6425_v32 }
0x1a96   :  { %v6471_v24 = vadd.f32 %v6451_v47, %v6447_v7  ;;  %v6455_v36 = vmul.f32 %v13621_v54, %v13621_v54  ;;  %v13648_v17 = vsub.f32 %v14294_v49, %v6429_v19  ;;  %v13651_v48 = vsub.f32 %v14295_v60, %v6429_v19 }
0x1a97   :  { %v6463_v26 = vadd.f32 %v6462_v30, %v6454_v38  ;;  %v13654_v8 = vsub.f32 %v14296_v37, %v6429_v19  ;;  %v13657_v27 = vsub.f32 %v14297_v23, %v6425_v32  ;;  %v6448_v34 = vmul.f32 %v13637_v35, %v13637_v35 }
0x1a98   :  { %v6452_v40 = vmul.f32 %v13640_v33, %v13640_v33  ;;  %v6459_v52 = vmul.f32 %v13634_v4, %v13634_v4  ;;  %v13666_v29 = vsub.f32 %v14298_v5, %v6429_v19  ;;  %v6449_v11 = vmul.f32 %v13648_v17, %v13648_v17 }
0x1a99   :  { %v6464_v44 = vadd.f32 %v6463_v26, %v6458_v3  ;;  %v6453_v25 = vmul.f32 %v13651_v48, %v13651_v48  ;;  %v6456_v31 = vmul.f32 %v13643_v46, %v13643_v46  ;;  %v6472_v43 = vadd.f32 %v6471_v24, %v6455_v36 }
0x1a9a   :  { %v6480_v2 = vadd.f32 %v6452_v40, %v6448_v34  ;;  %v6457_v0 = vmul.f32 %v13654_v8, %v13654_v8  ;;  %v6460_v9 = vmul.f32 %v13657_v27, %v13657_v27  ;;  %v6461_v55 = vmul.f32 %v13666_v29, %v13666_v29  ;;  %v6820_v34 = vld [vmem:[%s13807_s24] sm:$0x1] }
0x1a9b   :  { %v6465_v61 = vrot.slane %v6464_v44, 4  ;;  %v6489_v14 = vadd.f32 %v6453_v25, %v6449_v11  ;;  %v6473_v58 = vadd.f32 %v6472_v43, %v6459_v52 }
0x1a9c   :  { %v6481_v16 = vadd.f32 %v6480_v2, %v6456_v31 }
0x1a9d   :  { %v6466_v15 = vadd.f32 %v6465_v61, %v6464_v44  ;;  %v6490_v56 = vadd.f32 %v6489_v14, %v6457_v0  ;;  %v6474_v13 = vrot.slane %v6473_v58, 4 }
0x1a9e   :  { %v6482_v12 = vadd.f32 %v6481_v16, %v6460_v9 }
0x1a9f   :  { %v6467_v10 = vrot.slane %v6466_v15, 2  ;;  %v6491_v62 = vadd.f32 %v6490_v56, %v6461_v55  ;;  %v6475_v63 = vadd.f32 %v6474_v13, %v6473_v58 }
0x1aa0   :  { %v6483_v7 = vrot.slane %v6482_v12, 4 }
0x1aa1   :  { %v6468_v47 = vadd.f32 %v6467_v10, %v6466_v15  ;;  %v6492_v38 = vrot.slane %v6491_v62, 4  ;;  %v6476_v30 = vrot.slane %v6475_v63, 2 }
0x1aa2   :  { %v6484_v32 = vadd.f32 %v6483_v7, %v6482_v12 }
0x1aa3   :  { %v6493_v19 = vadd.f32 %v6492_v38, %v6491_v62  ;;  %v6477_v3 = vadd.f32 %v6476_v30, %v6475_v63  ;;  %v6469_v24 = vrot.slane %v6468_v47, 1 }
0x1aa4   :  { %v6485_v1 = vrot.slane %v6484_v32, 2 }
0x1aa5   :  { %v6494_v26 = vrot.slane %v6493_v19, 2  ;;  %v6478_v22 = vrot.slane %v6477_v3, 1  ;;  %v6470_v60 = vadd.f32 %v6469_v24, %v6468_v47 }
0x1aa6   :  { %v6486_v59 = vadd.f32 %v6485_v1, %v6484_v32 }
0x1aa7   :  { %v6495_v6 = vadd.f32 %v6494_v26, %v6493_v19  ;;  %v6479_v36 = vadd.f32 %v6478_v22, %v6477_v3 }
0x1aa8   :  { %v6487_v49 = vrot.slane %v6486_v59, 1 }
0x1aa9   :  { %v6496_v37 = vrot.slane %v6495_v6, 1  ;;  %6562 = vmatprep.mubr.f32.mxu1 %v6479_v36 }
0x1aaa   :  { %6563 = vmatmul.mubr.f32.vlgmr.msra.gmra.mrb[48].mxu1 %v6470_v60  ;;  %v6488_v23 = vadd.f32 %v6487_v49, %v6486_v59 }
0x1aab   :  { %v6497_v44 = vadd.f32 %v6496_v37, %v6495_v6  ;;  %7744 = vmatpush1.msk.msra.mxu1 %vm14224_vm14, %v14221_v42  ;;  %6710 = vmatprep.mubr.f32.mxu1 %v14179_v21 }
0x1aac   :  { %7746 = vmatprep.subr.msk.mxu1 %vm13496_vm3, %v14221_v42 }
0x1aad   :  { %6632 = vmatprep.mubr.f32.mxu0 %v6497_v44 }
0x1aae   :  { %6633 = vmatmul.mubr.f32.vlgmr.msra.gmra.mrb[46].mxu0 %v6488_v23 }
0x1aaf   :  { %7750 = vmatpush1.msk.msra.mxu0 %vm14224_vm14, %v14221_v42  ;;  %6888 = vmatprep.mubr.f32.mxu0 %v14179_v21  ;;  %vm14300_vm14 = vmmov %vm14299_vm12 }
0x1ab2   :  { %7751 = vmatmul.mubr.msk.f32.vlgmr.msra.gmra.mrb[48].mxu0 %vm14299_vm12, %v6820_v34 }
0x1b7d   :  { %v8397_v40 = vpop.f32.mrb[48].mxu1 }
0x1b7e   :  { %v8398_v52 = vpop.f32.mrb[49].mxu1 }
0x1b7f   :  { %v8399_v5 = vadd.f32 %v8398_v52, %v8397_v40 }
0x1b81   :  { %v8432_v11 = vpop.f32.mrb[46].mxu0 }
0x1b82   :  { %v8433_v25 = vpop.f32.mrb[47].mxu0 }
0x1b83   :  { %v8434_v31 = vadd.f32 %v8433_v25, %v8432_v11 }
0x1b85   :  { %v6635_v2 = vadd.f32 %v8434_v31, %v8399_v5  ;;  %v6890_v9 = vpop.f32.mrb[48].mxu0 }
0x1b86   :  { %v6892_v16 = vpop.f32.mrb[49].mxu0  ;;  %v6969_v56 = vrot.slane %v6890_v9, %v14282_v45 }
0x1b87   :  { %v6638_v43 = vmul.f32 0.00048828125, %v6635_v2  ;;  %v6973_v12 = vrot.slane %v6892_v16, %v14282_v45 }
0x1b89   :  { %v6640_v61 = vadd.f32 1e-05, %v6638_v43 }
0x1b8b   :  { %10533 = vrsqrt.f32 %v6640_v61 }
0x1b95   :  { %v10534_v0 = vpop.eup %10533 }
0x1b96   :  { %v6642_v14 = vmul.f32 %v10534_v0, %v6639_v41 }
0x1b98   :  { %7745 = vmatmul.mubr.msk.f32.vlgmr.msra.gmra.mrb[50].mxu1 %vm14300_vm14, %v6642_v14 }
0x1b99   :  { %7747 = vmatpush1.msk.msra.mxu1 %vm13511_vm8, %v14221_v42  ;;  %6781 = vmatprep.mubr.f32.mxu1 %v14179_v21 }
0x1b9a   :  { %7752 = vmatprep.subr.msk.mxu1 %vm13496_vm3, %v14221_v42 }
0x1b9c   :  { %7748 = vmatmul.mubr.msk.f32.vlgmr.msra.gmra.mrb[52].mxu1 %vm14301_vm1, %v6642_v14 }
0x1b9d   :  { %7753 = vmatpush1.msk.msra.mxu1 %vm13511_vm8, %v14221_v42  ;;  %6959 = vmatprep.mubr.f32.mxu1 %v14179_v21 }
0x1ba0   :  { %7754 = vmatmul.mubr.msk.f32.vlgmr.msra.gmra.mrb[54].mxu1 %vm14302_vm9, %v6820_v34 }
0x1c6b   :  { %v6712_v58 = vpop.f32.mrb[50].mxu1 }
0x1c6c   :  { %v6791_v15 = vrot.slane %v6712_v58, %v14282_v45  ;;  %v6714_v55 = vpop.f32.mrb[51].mxu1 }
0x1c6d   :  { %v6795_v50 = vrot.slane %v6714_v55, %v14282_v45 }
0x1c6e   :  { %v6804_v13 = vmul.f32 %v6791_v15, %v13599_v51  ;;  %v6808_v42 = vmul.f32 %v6791_v15, %v13602_v20  ;;  %v6812_v21 = vmul.f32 %v6791_v15, %v13605_v28  ;;  %v6816_v57 = vmul.f32 %v6791_v15, %v13608_v39 }
0x1c6f   :  { %v6805_v10 = vmul.f32 %v6795_v50, %v13611_v18  ;;  %v6809_v62 = vmul.f32 %v6795_v50, %v13614_v53  ;;  %v6813_v63 = vmul.f32 %v6795_v50, %v13621_v54  ;;  %v6817_v7 = vmul.f32 %v6795_v50, %v13634_v4  ;;  %v6783_v47 = vpop.f32.mrb[52].mxu1 }
0x1c70   :  { %v6982_v38 = vadd.f32 %v6969_v56, %v6804_v13  ;;  %v6986_v30 = vadd.f32 %v6969_v56, %v6808_v42  ;;  %v6990_v32 = vadd.f32 %v6969_v56, %v6812_v21  ;;  %v6994_v19 = vadd.f32 %v6969_v56, %v6816_v57  ;;  %v6785_v51 = vpop.f32.mrb[53].mxu1 }
0x1c71   :  { %v6983_v3 = vadd.f32 %v6973_v12, %v6805_v10  ;;  %v6987_v20 = vadd.f32 %v6973_v12, %v6809_v62  ;;  %v6991_v1 = vadd.f32 %v6973_v12, %v6813_v63  ;;  %v6995_v28 = vadd.f32 %v6973_v12, %v6817_v7 }
0x1c72   :  { %v6998_v24 = vsub.f32 0.0, %v6982_v38  ;;  %v7002_v39 = vsub.f32 0.0, %v6986_v30  ;;  %v7006_v26 = vsub.f32 0.0, %v6990_v32  ;;  %v7010_v18 = vsub.f32 0.0, %v6994_v19 }
0x1c73   :  { %v6999_v22 = vsub.f32 0.0, %v6983_v3  ;;  %v7003_v53 = vsub.f32 0.0, %v6987_v20  ;;  %v7007_v59 = vsub.f32 0.0, %v6991_v1  ;;  %v7011_v54 = vsub.f32 0.0, %v6995_v28  ;;  %v6961_v6 = vpop.f32.mrb[54].mxu1 }
0x1c74   :  { %v7014_v4 = vmul.f32 1.442695, %v6998_v24  ;;  %v7022_v36 = vmul.f32 1.442695, %v7002_v39  ;;  %v7030_v49 = vmul.f32 1.442695, %v7006_v26  ;;  %v6799_v60 = vrot.slane %v6783_v47, %v14282_v45 }
0x1c75   :  { %v7038_v37 = vmul.f32 1.442695, %v7010_v18  ;;  %v6803_v44 = vrot.slane %v6785_v51, %v14282_v45  ;;  %v7016_v23 = vmul.f32 1.442695, %v6999_v22  ;;  %v7024_v34 = vmul.f32 1.442695, %v7003_v53 }
0x1c76   :  { %10535 = vpow2.f32 %v7014_v4  ;;  %v6963_v40 = vpop.f32.mrb[55].mxu1  ;;  %v7032_v52 = vmul.f32 1.442695, %v7007_v59  ;;  %v7040_v5 = vmul.f32 1.442695, %v7011_v54  ;;  %v6806_v11 = vmul.f32 %v6799_v60, %v13637_v35 }
0x1c77   :  { %10537 = vpow2.f32 %v7022_v36  ;;  %v6810_v25 = vmul.f32 %v6799_v60, %v13640_v33  ;;  %v6814_v31 = vmul.f32 %v6799_v60, %v13643_v46  ;;  %v6818_v2 = vmul.f32 %v6799_v60, %v13657_v27 }
0x1c78   :  { %10539 = vpow2.f32 %v7030_v49  ;;  %v6807_v43 = vmul.f32 %v6803_v44, %v13648_v17  ;;  %v6977_v61 = vrot.slane %v6961_v6, %v14282_v45  ;;  %v6981_v41 = vrot.slane %v6963_v40, %v14282_v45 }
0x1c79   :  { %10541 = vpow2.f32 %v7038_v37  ;;  %v6811_v0 = vmul.f32 %v6803_v44, %v13651_v48  ;;  %v6815_v14 = vmul.f32 %v6803_v44, %v13654_v8  ;;  %v6819_v35 = vmul.f32 %v6803_v44, %v13666_v29 }
0x1c7a   :  { %10543 = vpow2.f32 %v7016_v23  ;;  %v6984_v33 = vadd.f32 %v6977_v61, %v6806_v11  ;;  %v6988_v9 = vadd.f32 %v6977_v61, %v6810_v25  ;;  %v6992_v46 = vadd.f32 %v6977_v61, %v6814_v31 }
0x1c7b   :  { %10545 = vpow2.f32 %v7024_v34  ;;  %v6996_v27 = vadd.f32 %v6977_v61, %v6818_v2  ;;  %v6985_v16 = vadd.f32 %v6981_v41, %v6807_v43  ;;  %v6989_v58 = vadd.f32 %v6981_v41, %v6811_v0 }
0x1c7c   :  { %10547 = vpow2.f32 %v7032_v52  ;;  %v7000_v17 = vsub.f32 0.0, %v6984_v33  ;;  %v7004_v15 = vsub.f32 0.0, %v6988_v9  ;;  %v6993_v55 = vadd.f32 %v6981_v41, %v6815_v14 }
0x1c7d   :  { %10549 = vpow2.f32 %v7040_v5  ;;  %v6997_v45 = vadd.f32 %v6981_v41, %v6819_v35  ;;  %v7008_v57 = vsub.f32 0.0, %v6992_v46  ;;  %v7012_v63 = vsub.f32 0.0, %v6996_v27 }
0x1c7e   :  { %v7018_v56 = vmul.f32 1.442695, %v7000_v17  ;;  %v7026_v50 = vmul.f32 1.442695, %v7004_v15  ;;  %v7001_v38 = vsub.f32 0.0, %v6985_v16  ;;  %v7005_v28 = vsub.f32 0.0, %v6989_v58 }
0x1c7f   :  { %v7034_v3 = vmul.f32 1.442695, %v7008_v57  ;;  %v7042_v1 = vmul.f32 1.442695, %v7012_v63  ;;  %v7009_v24 = vsub.f32 0.0, %v6993_v55  ;;  %v7013_v26 = vsub.f32 0.0, %v6997_v45 }
0x1c80   :  { %v10536_v48 = vpop.eup %10535  ;;  %10551 = vpow2.f32 %v7018_v56  ;;  %v7020_v39 = vmul.f32 1.442695, %v7001_v38  ;;  %v7028_v59 = vmul.f32 1.442695, %v7005_v28 }
0x1c81   :  { %v10538_v12 = vpop.eup %10537  ;;  %v7046_v8 = vadd.f32 1.0, %v10536_v48  ;;  %10553 = vpow2.f32 %v7026_v50  ;;  %v7036_v4 = vmul.f32 1.442695, %v7009_v24  ;;  %v7044_v49 = vmul.f32 1.442695, %v7013_v26 }
0x1c82   :  { %v10540_v29 = vpop.eup %10539  ;;  %v7050_v13 = vadd.f32 1.0, %v10538_v12 }
0x1c83   :  { %v10542_v42 = vpop.eup %10541  ;;  %v7054_v21 = vadd.f32 1.0, %v10540_v29  ;;  %10555 = vrcp.f32 %v7046_v8 }
0x1c84   :  { %v10544_v10 = vpop.eup %10543  ;;  %v7058_v62 = vadd.f32 1.0, %v10542_v42  ;;  %10557 = vrcp.f32 %v7050_v13 }
0x1c85   :  { %v10546_v7 = vpop.eup %10545  ;;  %10559 = vrcp.f32 %v7054_v21  ;;  %v7047_v47 = vadd.f32 1.0, %v10544_v10 }
0x1c86   :  { %v10548_v30 = vpop.eup %10547  ;;  %10561 = vrcp.f32 %v7058_v62  ;;  %v7051_v32 = vadd.f32 1.0, %v10546_v7 }
0x1c87   :  { %v10550_v19 = vpop.eup %10549  ;;  %v7055_v51 = vadd.f32 1.0, %v10548_v30  ;;  %10563 = vrcp.f32 %v7047_v47 }
0x1c88   :  { %v7059_v20 = vadd.f32 1.0, %v10550_v19  ;;  %10565 = vrcp.f32 %v7051_v32 }
0x1c89   :  { %10567 = vrcp.f32 %v7055_v51 }
0x1c8a   :  { %10569 = vrcp.f32 %v7059_v20  ;;  %v10552_v18 = vpop.eup %10551 }
0x1c8b   :  { %10571 = vpow2.f32 %v7034_v3  ;;  %v10554_v22 = vpop.eup %10553  ;;  %v7048_v53 = vadd.f32 1.0, %v10552_v18 }
0x1c8c   :  { %10573 = vpow2.f32 %v7042_v1  ;;  %v7052_v6 = vadd.f32 1.0, %v10554_v22 }
0x1c8d   :  { %v10556_v54 = vpop.eup %10555  ;;  %10575 = vpow2.f32 %v7020_v39 }
0x1c8e   :  { %v10558_v36 = vpop.eup %10557  ;;  %7094 = vst [vmem:[%s13809_s25] sm:$0xff] %v10556_v54  ;;  %10577 = vrcp.f32 %v7048_v53 }
0x1c8f   :  { %v10560_v60 = vpop.eup %10559  ;;  %7098 = vst [vmem:[%s13809_s25 + $0x20] sm:$0xff] %v10558_v36  ;;  %10579 = vrcp.f32 %v7052_v6 }
0x1c90   :  { %v10562_v37 = vpop.eup %10561  ;;  %7102 = vst [vmem:[%s13809_s25 + $0x40] sm:$0xff] %v10560_v60  ;;  %10581 = vpow2.f32 %v7028_v59 }
0x1c91   :  { %v10564_v44 = vpop.eup %10563  ;;  %7106 = vst [vmem:[%s13809_s25 + $0x60] sm:$0xff] %v10562_v37  ;;  %10583 = vpow2.f32 %v7036_v4 }
0x1c92   :  { %v10566_v23 = vpop.eup %10565  ;;  %7095 = vst [vmem:[%s13809_s25 + $0x8] sm:$0xff] %v10564_v44  ;;  %10585 = vpow2.f32 %v7044_v49 }
0x1c93   :  { %v10568_v34 = vpop.eup %10567  ;;  %7099 = vst [vmem:[%s13809_s25 + $0x28] sm:$0xff] %v10566_v23 }
0x1c94   :  { %v10570_v40 = vpop.eup %10569  ;;  %7103 = vst [vmem:[%s13809_s25 + $0x48] sm:$0xff] %v10568_v34 }
0x1c95   :  { %v10572_v52 = vpop.eup %10571  ;;  %7107 = vst [vmem:[%s13809_s25 + $0x68] sm:$0xff] %v10570_v40 }
0x1c96   :  { %v10574_v5 = vpop.eup %10573  ;;  %v7056_v11 = vadd.f32 1.0, %v10572_v52 }
0x1c97   :  { %v10576_v25 = vpop.eup %10575  ;;  %v7060_v31 = vadd.f32 1.0, %v10574_v5 }
0x1c98   :  { %v10578_v2 = vpop.eup %10577  ;;  %10587 = vrcp.f32 %v7056_v11  ;;  %v7049_v43 = vadd.f32 1.0, %v10576_v25 }
0x1c99   :  { %v10580_v61 = vpop.eup %10579  ;;  %10589 = vrcp.f32 %v7060_v31  ;;  %7096 = vst [vmem:[%s13809_s25 + $0x10] sm:$0xff] %v10578_v2 }
0x1c9a   :  { %v10582_v41 = vpop.eup %10581  ;;  %7100 = vst [vmem:[%s13809_s25 + $0x30] sm:$0xff] %v10580_v61  ;;  %10591 = vrcp.f32 %v7049_v43 }
0x1c9b   :  { %v10584_v0 = vpop.eup %10583  ;;  %v7053_v14 = vadd.f32 1.0, %v10582_v41 }
0x1c9c   :  { %v10586_v35 = vpop.eup %10585  ;;  %v7057_v33 = vadd.f32 1.0, %v10584_v0 }
0x1c9d   :  { %v7061_v9 = vadd.f32 1.0, %v10586_v35  ;;  %10593 = vrcp.f32 %v7053_v14 }
0x1c9e   :  { %10595 = vrcp.f32 %v7057_v33 }
0x1c9f   :  { %10597 = vrcp.f32 %v7061_v9 }
0x1ca2   :  { %v10588_v46 = vpop.eup %10587 }
0x1ca3   :  { %v10590_v27 = vpop.eup %10589  ;;  %7104 = vst [vmem:[%s13809_s25 + $0x50] sm:$0xff] %v10588_v46 }
0x1ca4   :  { %v10592_v16 = vpop.eup %10591  ;;  %7108 = vst [vmem:[%s13809_s25 + $0x70] sm:$0xff] %v10590_v27 }
0x1ca5   :  { %7097 = vst [vmem:[%s13809_s25 + $0x18] sm:$0xff] %v10592_v16 }
0x1ca7   :  { %v10594_v58 = vpop.eup %10593 }
0x1ca8   :  { %v10596_v17 = vpop.eup %10595  ;;  %7101 = vst [vmem:[%s13809_s25 + $0x38] sm:$0xff] %v10594_v58 }
0x1ca9   :  { %v10598_v15 = vpop.eup %10597  ;;  %7105 = vst [vmem:[%s13809_s25 + $0x58] sm:$0xff] %v10596_v17 }
0x1caa   :  { %7109 = vst [vmem:[%s13809_s25 + $0x78] sm:$0xff] %v10598_v15 }

</bundles_post_ra>
